<compile_context>
chip_gen: v6e
topology: v6e:2x2x1
jax: 0.10.0
libtpu: 0.0.40
codegen_flags: <defaults>
</compile_context>

<pallas_src>
import functools

import jax
import jax.numpy as jnp
from jax import lax
from jax.experimental import pallas as pl
from jax.experimental.pallas import tpu as pltpu


def _spatial_attention_kernel(x_ref, w_ref, o_ref, feat_ref, *, ks, pad, H, W, C, NB):
    """Fused SpatialAttention for NB images (one grid step).

    x_ref    : (NB, C, H*W)        VMEM  lane-dense input block
    w_ref    : (2*ks*ks,)          SMEM  conv1 weight, flattened from (1, 2, ks, ks) OIHW
    o_ref    : (NB, 1, H*Wp)       VMEM  flat conv+sigmoid output (cols >= W of each Wp-row are junk)
    feat_ref : (2, NB, (Hp+1)*Wp)  VMEM  scratch: zero-padded, row-major-flattened avg/max maps
    """
    Wp = W + 2 * pad
    Lout = H * Wp

    # ---- streamed channel-wise mean & max (lane-dense, only 2 accumulators live) ----
    x0 = x_ref[:, 0, :].astype(jnp.float32)                       # (NB, H*W)

    def chan_body(c, carry):
        s, m = carry
        xc = x_ref[:, c, :].astype(jnp.float32)
        return s + xc, jnp.maximum(m, xc)

    s, m = lax.fori_loop(1, C, chan_body, (x0, x0))
    avg = s * (1.0 / C)

    # ---- scatter the two maps into the zero-padded flat scratch ----
    # (zero halo == the conv's zero padding; extra trailing row keeps every tap slice in bounds)
    feat_ref[...] = jnp.zeros_like(feat_ref)
    for c_idx, fmap in ((0, avg), (1, m)):
        for h in range(H):
            dst = (pad + h) * Wp + pad
            feat_ref[c_idx, :, dst:dst + W] = fmap[:, h * W:h * W + W]

    # ---- ks x ks conv (2 -> 1 channels, no bias) as flat lane-shifted VPU FMAs ----
    # acc[n, h*Wp + w] = sum_{c,kh,kw} weight[c,kh,kw] * padded[c, n, (h+kh)*Wp + (w+kw)]
    # which equals the conv output at (h, w) for w < W (w >= W lanes are junk, dropped later).
    acc = jnp.zeros((NB, Lout), jnp.float32)
    for c_idx in range(2):
        for kh in range(ks):
            for kw in range(ks):
                wgt = w_ref[c_idx * ks * ks + kh * ks + kw]       # SMEM scalar weight
                off = kh * Wp + kw
                acc = acc + wgt * feat_ref[c_idx, :, off:off + Lout]

    # ---- sigmoid (EUP) + lane-dense store ----
    o_ref[:, 0, :] = jax.nn.sigmoid(acc).astype(o_ref.dtype)


def spatial_attention_forward(x, w, *, kernel_size=7, target_block_bytes=2 << 20):
    """Pallas forward of SpatialAttention.

    x : (N, C, H, W) float32
    w : (1, 2, ks, ks) float32   -- PyTorch conv1.weight (OIHW), bias=False
    returns (N, 1, H, W) float32
    """
    assert kernel_size in (3, 7), "kernel size must be 3 or 7"
    pad = 3 if kernel_size == 7 else 1
    N, C, H, W = x.shape
    assert w.shape == (1, 2, kernel_size, kernel_size), w.shape

    Wp = W + 2 * pad
    Hp = H + 2 * pad
    HW = H * W
    Lout = H * Wp
    Lf = (Hp + 1) * Wp    # +1 zero row of slack so every flat tap window stays in bounds

    # ---- pick images-per-grid-step: big enough to amortize per-step overhead and feed
    #      HBM, small enough to double-buffer in scoped VMEM; prefer grid length >= 2 so
    #      "parallel" batch sharding can use both TensorCores on megacore parts (v7x).
    per_image_bytes = C * HW * x.dtype.itemsize
    nb_cap = max(1, target_block_bytes // max(per_image_bytes, 1))
    NB = 1
    for nb in range(1, N + 1):
        if N % nb == 0 and nb <= nb_cap and (N // nb >= 2 or N == 1):
            NB = nb
    grid = (N // NB,)

    xf = x.reshape(N, C, HW)      # contiguous reshape (free) -> lane-dense DMA & reduction
    wf = w.reshape(-1)            # (2*ks*ks,) scalar taps, kept in SMEM

    kernel = functools.partial(
        _spatial_attention_kernel,
        ks=kernel_size, pad=pad, H=H, W=W, C=C, NB=NB)

    out_flat = pl.pallas_call(
        kernel,
        out_shape=jax.ShapeDtypeStruct((N, 1, Lout), x.dtype),
        grid=grid,
        in_specs=[
            pl.BlockSpec((NB, C, HW), lambda n: (n, 0, 0)),
            pl.BlockSpec(memory_space=pltpu.MemorySpace.SMEM),
        ],
        out_specs=pl.BlockSpec((NB, 1, Lout), lambda n: (n, 0, 0)),
        scratch_shapes=[pltpu.VMEM((2, NB, Lf), jnp.float32)],
        compiler_params=pltpu.CompilerParams(
            dimension_semantics=("parallel",),
            vmem_limit_bytes=32 * 1024 * 1024),
    )(xf, wf)

    # Un-flatten and drop the Wp-W junk columns produced by the flat-shift conv.
    return out_flat.reshape(N, 1, H, Wp)[:, :, :, :W]


def reference_forward(x, w, *, kernel_size=7):
    """Pure-JAX reference matching PyTorch SpatialAttention.forward."""
    pad = 3 if kernel_size == 7 else 1
    avg = jnp.mean(x, axis=1, keepdims=True)
    mx = jnp.max(x, axis=1, keepdims=True)
    feat = jnp.concatenate([avg, mx], axis=1)              # (N, 2, H, W)
    y = jax.lax.conv_general_dilated(
        feat, w, window_strides=(1, 1), padding=((pad, pad), (pad, pad)),
        dimension_numbers=("NCHW", "OIHW", "NCHW"),
        precision=jax.lax.Precision.HIGHEST)
    return jax.nn.sigmoid(y)


if __name__ == "__main__":
    key = jax.random.PRNGKey(0)
    kx, kw_key = jax.random.split(key)

    N, C, H, W = 2, 4, 16, 16
    ks = 7

    x = jax.random.normal(kx, (N, C, H, W), jnp.float32)
    w = jax.random.normal(kw_key, (1, 2, ks, ks), jnp.float32) * 0.1

    out = jax.block_until_ready(spatial_attention_forward(x, w, kernel_size=ks))
    ref = jax.block_until_ready(reference_forward(x, w, kernel_size=ks))

    assert out.shape == (N, 1, H, W), out.shape
    err = float(jnp.max(jnp.abs(out - ref)))
    assert jnp.allclose(out, ref, atol=1e-4, rtol=1e-4), err

    print("KERNEL_OK")
</pallas_src>

<mosaic_0001>
module attributes {stable_mosaic.version = 11 : i64} {
  func.func @_spatial_attention_kernel(%arg0: i32, %arg1: memref<1x4x256xf32, #tpu.memory_space<vmem>>, %arg2: memref<98xf32, #tpu.memory_space<smem>>, %arg3: memref<1x1x352xf32, #tpu.memory_space<vmem>>, %arg4: memref<2x1x506xf32, #tpu.memory_space<vmem>>) attributes {dimension_semantics = [#tpu.dimension_semantics<parallel>], iteration_bounds = array<i64: 2>, scalar_prefetch = 0 : i64, scratch_operands = 1 : i64, tpu.core_type = #tpu.core_type<tc>, window_params = [{transform_indices = @transform_0, window_bounds = array<i64: 1, 4, 256>}, {transform_indices = @transform_1, window_bounds = array<i64: 98>}, {transform_indices = @transform_2, window_bounds = array<i64: 1, 1, 352>}]} {
    %c0 = arith.constant 0 : index
    %c0_0 = arith.constant 0 : index
    %c0_1 = arith.constant 0 : index
    %0 = vector.load %arg1[%c0, %c0_0, %c0_1] : memref<1x4x256xf32, #tpu.memory_space<vmem>>, vector<1x1x256xf32>
    %1 = vector.shape_cast %0 : vector<1x1x256xf32> to vector<1x256xf32>
    %c1_i32 = arith.constant 1 : i32
    %c3_i32 = arith.constant 3 : i32
    %2 = arith.addi %c1_i32, %c3_i32 : i32
    %c1_i32_2 = arith.constant 1 : i32
    %3:2 = scf.for %arg5 = %c1_i32 to %2 step %c1_i32_2 iter_args(%arg6 = %1, %arg7 = %1) -> (vector<1x256xf32>, vector<1x256xf32>)  : i32 {
      %c0_378 = arith.constant 0 : index
      %733 = arith.index_cast %arg5 : i32 to index
      %c0_379 = arith.constant 0 : index
      %734 = vector.load %arg1[%c0_378, %733, %c0_379] : memref<1x4x256xf32, #tpu.memory_space<vmem>>, vector<1x1x256xf32>
      %735 = vector.shape_cast %734 : vector<1x1x256xf32> to vector<1x256xf32>
      %736 = arith.addf %arg6, %735 : vector<1x256xf32>
      %737 = arith.maximumf %arg7, %735 : vector<1x256xf32>
      scf.yield %736, %737 : vector<1x256xf32>, vector<1x256xf32>
    }
    %c3_i32_3 = arith.constant 3 : i32
    %cst = arith.constant 2.500000e-01 : f32
    %4 = vector.broadcast %cst : f32 to vector<1x256xf32>
    %5 = arith.mulf %3#0, %4 : vector<1x256xf32>
    %cst_4 = arith.constant 0.000000e+00 : f32
    %6 = vector.broadcast %cst_4 : f32 to vector<2x1x506xf32>
    %c0_5 = arith.constant 0 : index
    %c0_6 = arith.constant 0 : index
    %c0_7 = arith.constant 0 : index
    %7 = vector.load %arg4[%c0_5, %c0_6, %c0_7] : memref<2x1x506xf32, #tpu.memory_space<vmem>>, vector<2x1x506xf32>
    tpu.vector_store %arg4[%c0_5, %c0_6, %c0_7], %6 {strides = array<i32>} : memref<2x1x506xf32, #tpu.memory_space<vmem>>, vector<2x1x506xf32>,
    %8 = vector.extract_strided_slice %5 {offsets = [0, 0], sizes = [1, 16], strides = [1, 1]} : vector<1x256xf32> to vector<1x16xf32>
    %c0_8 = arith.constant 0 : index
    %c0_9 = arith.constant 0 : index
    %c69 = arith.constant 69 : index
    %9 = vector.load %arg4[%c0_8, %c0_9, %c69] : memref<2x1x506xf32, #tpu.memory_space<vmem>>, vector<1x1x16xf32>
    %10 = vector.shape_cast %9 : vector<1x1x16xf32> to vector<1x16xf32>
    %11 = vector.shape_cast %8 : vector<1x16xf32> to vector<1x1x16xf32>
    tpu.vector_store %arg4[%c0_8, %c0_9, %c69], %11 {strides = array<i32>} : memref<2x1x506xf32, #tpu.memory_space<vmem>>, vector<1x1x16xf32>,
    %12 = vector.extract_strided_slice %5 {offsets = [0, 16], sizes = [1, 16], strides = [1, 1]} : vector<1x256xf32> to vector<1x16xf32>
    %c0_10 = arith.constant 0 : index
    %c0_11 = arith.constant 0 : index
    %c91 = arith.constant 91 : index
    %13 = vector.load %arg4[%c0_10, %c0_11, %c91] : memref<2x1x506xf32, #tpu.memory_space<vmem>>, vector<1x1x16xf32>
    %14 = vector.shape_cast %13 : vector<1x1x16xf32> to vector<1x16xf32>
    %15 = vector.shape_cast %12 : vector<1x16xf32> to vector<1x1x16xf32>
    tpu.vector_store %arg4[%c0_10, %c0_11, %c91], %15 {strides = array<i32>} : memref<2x1x506xf32, #tpu.memory_space<vmem>>, vector<1x1x16xf32>,
    %16 = vector.extract_strided_slice %5 {offsets = [0, 32], sizes = [1, 16], strides = [1, 1]} : vector<1x256xf32> to vector<1x16xf32>
    %c0_12 = arith.constant 0 : index
    %c0_13 = arith.constant 0 : index
    %c113 = arith.constant 113 : index
    %17 = vector.load %arg4[%c0_12, %c0_13, %c113] : memref<2x1x506xf32, #tpu.memory_space<vmem>>, vector<1x1x16xf32>
    %18 = vector.shape_cast %17 : vector<1x1x16xf32> to vector<1x16xf32>
    %19 = vector.shape_cast %16 : vector<1x16xf32> to vector<1x1x16xf32>
    tpu.vector_store %arg4[%c0_12, %c0_13, %c113], %19 {strides = array<i32>} : memref<2x1x506xf32, #tpu.memory_space<vmem>>, vector<1x1x16xf32>,
    %20 = vector.extract_strided_slice %5 {offsets = [0, 48], sizes = [1, 16], strides = [1, 1]} : vector<1x256xf32> to vector<1x16xf32>
    %c0_14 = arith.constant 0 : index
    %c0_15 = arith.constant 0 : index
    %c135 = arith.constant 135 : index
    %21 = vector.load %arg4[%c0_14, %c0_15, %c135] : memref<2x1x506xf32, #tpu.memory_space<vmem>>, vector<1x1x16xf32>
    %22 = vector.shape_cast %21 : vector<1x1x16xf32> to vector<1x16xf32>
    %23 = vector.shape_cast %20 : vector<1x16xf32> to vector<1x1x16xf32>
    tpu.vector_store %arg4[%c0_14, %c0_15, %c135], %23 {strides = array<i32>} : memref<2x1x506xf32, #tpu.memory_space<vmem>>, vector<1x1x16xf32>,
    %24 = vector.extract_strided_slice %5 {offsets = [0, 64], sizes = [1, 16], strides = [1, 1]} : vector<1x256xf32> to vector<1x16xf32>
    %c0_16 = arith.constant 0 : index
    %c0_17 = arith.constant 0 : index
    %c157 = arith.constant 157 : index
    %25 = vector.load %arg4[%c0_16, %c0_17, %c157] : memref<2x1x506xf32, #tpu.memory_space<vmem>>, vector<1x1x16xf32>
    %26 = vector.shape_cast %25 : vector<1x1x16xf32> to vector<1x16xf32>
    %27 = vector.shape_cast %24 : vector<1x16xf32> to vector<1x1x16xf32>
    tpu.vector_store %arg4[%c0_16, %c0_17, %c157], %27 {strides = array<i32>} : memref<2x1x506xf32, #tpu.memory_space<vmem>>, vector<1x1x16xf32>,
    %28 = vector.extract_strided_slice %5 {offsets = [0, 80], sizes = [1, 16], strides = [1, 1]} : vector<1x256xf32> to vector<1x16xf32>
    %c0_18 = arith.constant 0 : index
    %c0_19 = arith.constant 0 : index
    %c179 = arith.constant 179 : index
    %29 = vector.load %arg4[%c0_18, %c0_19, %c179] : memref<2x1x506xf32, #tpu.memory_space<vmem>>, vector<1x1x16xf32>
    %30 = vector.shape_cast %29 : vector<1x1x16xf32> to vector<1x16xf32>
    %31 = vector.shape_cast %28 : vector<1x16xf32> to vector<1x1x16xf32>
    tpu.vector_store %arg4[%c0_18, %c0_19, %c179], %31 {strides = array<i32>} : memref<2x1x506xf32, #tpu.memory_space<vmem>>, vector<1x1x16xf32>,
    %32 = vector.extract_strided_slice %5 {offsets = [0, 96], sizes = [1, 16], strides = [1, 1]} : vector<1x256xf32> to vector<1x16xf32>
    %c0_20 = arith.constant 0 : index
    %c0_21 = arith.constant 0 : index
    %c201 = arith.constant 201 : index
    %33 = vector.load %arg4[%c0_20, %c0_21, %c201] : memref<2x1x506xf32, #tpu.memory_space<vmem>>, vector<1x1x16xf32>
    %34 = vector.shape_cast %33 : vector<1x1x16xf32> to vector<1x16xf32>
    %35 = vector.shape_cast %32 : vector<1x16xf32> to vector<1x1x16xf32>
    tpu.vector_store %arg4[%c0_20, %c0_21, %c201], %35 {strides = array<i32>} : memref<2x1x506xf32, #tpu.memory_space<vmem>>, vector<1x1x16xf32>,
    %36 = vector.extract_strided_slice %5 {offsets = [0, 112], sizes = [1, 16], strides = [1, 1]} : vector<1x256xf32> to vector<1x16xf32>
    %c0_22 = arith.constant 0 : index
    %c0_23 = arith.constant 0 : index
    %c223 = arith.constant 223 : index
    %37 = vector.load %arg4[%c0_22, %c0_23, %c223] : memref<2x1x506xf32, #tpu.memory_space<vmem>>, vector<1x1x16xf32>
    %38 = vector.shape_cast %37 : vector<1x1x16xf32> to vector<1x16xf32>
    %39 = vector.shape_cast %36 : vector<1x16xf32> to vector<1x1x16xf32>
    tpu.vector_store %arg4[%c0_22, %c0_23, %c223], %39 {strides = array<i32>} : memref<2x1x506xf32, #tpu.memory_space<vmem>>, vector<1x1x16xf32>,
    %40 = vector.extract_strided_slice %5 {offsets = [0, 128], sizes = [1, 16], strides = [1, 1]} : vector<1x256xf32> to vector<1x16xf32>
    %c0_24 = arith.constant 0 : index
    %c0_25 = arith.constant 0 : index
    %c245 = arith.constant 245 : index
    %41 = vector.load %arg4[%c0_24, %c0_25, %c245] : memref<2x1x506xf32, #tpu.memory_space<vmem>>, vector<1x1x16xf32>
    %42 = vector.shape_cast %41 : vector<1x1x16xf32> to vector<1x16xf32>
    %43 = vector.shape_cast %40 : vector<1x16xf32> to vector<1x1x16xf32>
    tpu.vector_store %arg4[%c0_24, %c0_25, %c245], %43 {strides = array<i32>} : memref<2x1x506xf32, #tpu.memory_space<vmem>>, vector<1x1x16xf32>,
    %44 = vector.extract_strided_slice %5 {offsets = [0, 144], sizes = [1, 16], strides = [1, 1]} : vector<1x256xf32> to vector<1x16xf32>
    %c0_26 = arith.constant 0 : index
    %c0_27 = arith.constant 0 : index
    %c267 = arith.constant 267 : index
    %45 = vector.load %arg4[%c0_26, %c0_27, %c267] : memref<2x1x506xf32, #tpu.memory_space<vmem>>, vector<1x1x16xf32>
    %46 = vector.shape_cast %45 : vector<1x1x16xf32> to vector<1x16xf32>
    %47 = vector.shape_cast %44 : vector<1x16xf32> to vector<1x1x16xf32>
    tpu.vector_store %arg4[%c0_26, %c0_27, %c267], %47 {strides = array<i32>} : memref<2x1x506xf32, #tpu.memory_space<vmem>>, vector<1x1x16xf32>,
    %48 = vector.extract_strided_slice %5 {offsets = [0, 160], sizes = [1, 16], strides = [1, 1]} : vector<1x256xf32> to vector<1x16xf32>
    %c0_28 = arith.constant 0 : index
    %c0_29 = arith.constant 0 : index
    %c289 = arith.constant 289 : index
    %49 = vector.load %arg4[%c0_28, %c0_29, %c289] : memref<2x1x506xf32, #tpu.memory_space<vmem>>, vector<1x1x16xf32>
    %50 = vector.shape_cast %49 : vector<1x1x16xf32> to vector<1x16xf32>
    %51 = vector.shape_cast %48 : vector<1x16xf32> to vector<1x1x16xf32>
    tpu.vector_store %arg4[%c0_28, %c0_29, %c289], %51 {strides = array<i32>} : memref<2x1x506xf32, #tpu.memory_space<vmem>>, vector<1x1x16xf32>,
    %52 = vector.extract_strided_slice %5 {offsets = [0, 176], sizes = [1, 16], strides = [1, 1]} : vector<1x256xf32> to vector<1x16xf32>
    %c0_30 = arith.constant 0 : index
    %c0_31 = arith.constant 0 : index
    %c311 = arith.constant 311 : index
    %53 = vector.load %arg4[%c0_30, %c0_31, %c311] : memref<2x1x506xf32, #tpu.memory_space<vmem>>, vector<1x1x16xf32>
    %54 = vector.shape_cast %53 : vector<1x1x16xf32> to vector<1x16xf32>
    %55 = vector.shape_cast %52 : vector<1x16xf32> to vector<1x1x16xf32>
    tpu.vector_store %arg4[%c0_30, %c0_31, %c311], %55 {strides = array<i32>} : memref<2x1x506xf32, #tpu.memory_space<vmem>>, vector<1x1x16xf32>,
    %56 = vector.extract_strided_slice %5 {offsets = [0, 192], sizes = [1, 16], strides = [1, 1]} : vector<1x256xf32> to vector<1x16xf32>
    %c0_32 = arith.constant 0 : index
    %c0_33 = arith.constant 0 : index
    %c333 = arith.constant 333 : index
    %57 = vector.load %arg4[%c0_32, %c0_33, %c333] : memref<2x1x506xf32, #tpu.memory_space<vmem>>, vector<1x1x16xf32>
    %58 = vector.shape_cast %57 : vector<1x1x16xf32> to vector<1x16xf32>
    %59 = vector.shape_cast %56 : vector<1x16xf32> to vector<1x1x16xf32>
    tpu.vector_store %arg4[%c0_32, %c0_33, %c333], %59 {strides = array<i32>} : memref<2x1x506xf32, #tpu.memory_space<vmem>>, vector<1x1x16xf32>,
    %60 = vector.extract_strided_slice %5 {offsets = [0, 208], sizes = [1, 16], strides = [1, 1]} : vector<1x256xf32> to vector<1x16xf32>
    %c0_34 = arith.constant 0 : index
    %c0_35 = arith.constant 0 : index
    %c355 = arith.constant 355 : index
    %61 = vector.load %arg4[%c0_34, %c0_35, %c355] : memref<2x1x506xf32, #tpu.memory_space<vmem>>, vector<1x1x16xf32>
    %62 = vector.shape_cast %61 : vector<1x1x16xf32> to vector<1x16xf32>
    %63 = vector.shape_cast %60 : vector<1x16xf32> to vector<1x1x16xf32>
    tpu.vector_store %arg4[%c0_34, %c0_35, %c355], %63 {strides = array<i32>} : memref<2x1x506xf32, #tpu.memory_space<vmem>>, vector<1x1x16xf32>,
    %64 = vector.extract_strided_slice %5 {offsets = [0, 224], sizes = [1, 16], strides = [1, 1]} : vector<1x256xf32> to vector<1x16xf32>
    %c0_36 = arith.constant 0 : index
    %c0_37 = arith.constant 0 : index
    %c377 = arith.constant 377 : index
    %65 = vector.load %arg4[%c0_36, %c0_37, %c377] : memref<2x1x506xf32, #tpu.memory_space<vmem>>, vector<1x1x16xf32>
    %66 = vector.shape_cast %65 : vector<1x1x16xf32> to vector<1x16xf32>
    %67 = vector.shape_cast %64 : vector<1x16xf32> to vector<1x1x16xf32>
    tpu.vector_store %arg4[%c0_36, %c0_37, %c377], %67 {strides = array<i32>} : memref<2x1x506xf32, #tpu.memory_space<vmem>>, vector<1x1x16xf32>,
    %68 = vector.extract_strided_slice %5 {offsets = [0, 240], sizes = [1, 16], strides = [1, 1]} : vector<1x256xf32> to vector<1x16xf32>
    %c0_38 = arith.constant 0 : index
    %c0_39 = arith.constant 0 : index
    %c399 = arith.constant 399 : index
    %69 = vector.load %arg4[%c0_38, %c0_39, %c399] : memref<2x1x506xf32, #tpu.memory_space<vmem>>, vector<1x1x16xf32>
    %70 = vector.shape_cast %69 : vector<1x1x16xf32> to vector<1x16xf32>
    %71 = vector.shape_cast %68 : vector<1x16xf32> to vector<1x1x16xf32>
    tpu.vector_store %arg4[%c0_38, %c0_39, %c399], %71 {strides = array<i32>} : memref<2x1x506xf32, #tpu.memory_space<vmem>>, vector<1x1x16xf32>,
    %72 = vector.extract_strided_slice %3#1 {offsets = [0, 0], sizes = [1, 16], strides = [1, 1]} : vector<1x256xf32> to vector<1x16xf32>
    %c1 = arith.constant 1 : index
    %c0_40 = arith.constant 0 : index
    %c69_41 = arith.constant 69 : index
    %73 = vector.load %arg4[%c1, %c0_40, %c69_41] : memref<2x1x506xf32, #tpu.memory_space<vmem>>, vector<1x1x16xf32>
    %74 = vector.shape_cast %73 : vector<1x1x16xf32> to vector<1x16xf32>
    %75 = vector.shape_cast %72 : vector<1x16xf32> to vector<1x1x16xf32>
    tpu.vector_store %arg4[%c1, %c0_40, %c69_41], %75 {strides = array<i32>} : memref<2x1x506xf32, #tpu.memory_space<vmem>>, vector<1x1x16xf32>,
    %76 = vector.extract_strided_slice %3#1 {offsets = [0, 16], sizes = [1, 16], strides = [1, 1]} : vector<1x256xf32> to vector<1x16xf32>
    %c1_42 = arith.constant 1 : index
    %c0_43 = arith.constant 0 : index
    %c91_44 = arith.constant 91 : index
    %77 = vector.load %arg4[%c1_42, %c0_43, %c91_44] : memref<2x1x506xf32, #tpu.memory_space<vmem>>, vector<1x1x16xf32>
    %78 = vector.shape_cast %77 : vector<1x1x16xf32> to vector<1x16xf32>
    %79 = vector.shape_cast %76 : vector<1x16xf32> to vector<1x1x16xf32>
    tpu.vector_store %arg4[%c1_42, %c0_43, %c91_44], %79 {strides = array<i32>} : memref<2x1x506xf32, #tpu.memory_space<vmem>>, vector<1x1x16xf32>,
    %80 = vector.extract_strided_slice %3#1 {offsets = [0, 32], sizes = [1, 16], strides = [1, 1]} : vector<1x256xf32> to vector<1x16xf32>
    %c1_45 = arith.constant 1 : index
    %c0_46 = arith.constant 0 : index
    %c113_47 = arith.constant 113 : index
    %81 = vector.load %arg4[%c1_45, %c0_46, %c113_47] : memref<2x1x506xf32, #tpu.memory_space<vmem>>, vector<1x1x16xf32>
    %82 = vector.shape_cast %81 : vector<1x1x16xf32> to vector<1x16xf32>
    %83 = vector.shape_cast %80 : vector<1x16xf32> to vector<1x1x16xf32>
    tpu.vector_store %arg4[%c1_45, %c0_46, %c113_47], %83 {strides = array<i32>} : memref<2x1x506xf32, #tpu.memory_space<vmem>>, vector<1x1x16xf32>,
    %84 = vector.extract_strided_slice %3#1 {offsets = [0, 48], sizes = [1, 16], strides = [1, 1]} : vector<1x256xf32> to vector<1x16xf32>
    %c1_48 = arith.constant 1 : index
    %c0_49 = arith.constant 0 : index
    %c135_50 = arith.constant 135 : index
    %85 = vector.load %arg4[%c1_48, %c0_49, %c135_50] : memref<2x1x506xf32, #tpu.memory_space<vmem>>, vector<1x1x16xf32>
    %86 = vector.shape_cast %85 : vector<1x1x16xf32> to vector<1x16xf32>
    %87 = vector.shape_cast %84 : vector<1x16xf32> to vector<1x1x16xf32>
    tpu.vector_store %arg4[%c1_48, %c0_49, %c135_50], %87 {strides = array<i32>} : memref<2x1x506xf32, #tpu.memory_space<vmem>>, vector<1x1x16xf32>,
    %88 = vector.extract_strided_slice %3#1 {offsets = [0, 64], sizes = [1, 16], strides = [1, 1]} : vector<1x256xf32> to vector<1x16xf32>
    %c1_51 = arith.constant 1 : index
    %c0_52 = arith.constant 0 : index
    %c157_53 = arith.constant 157 : index
    %89 = vector.load %arg4[%c1_51, %c0_52, %c157_53] : memref<2x1x506xf32, #tpu.memory_space<vmem>>, vector<1x1x16xf32>
    %90 = vector.shape_cast %89 : vector<1x1x16xf32> to vector<1x16xf32>
    %91 = vector.shape_cast %88 : vector<1x16xf32> to vector<1x1x16xf32>
    tpu.vector_store %arg4[%c1_51, %c0_52, %c157_53], %91 {strides = array<i32>} : memref<2x1x506xf32, #tpu.memory_space<vmem>>, vector<1x1x16xf32>,
    %92 = vector.extract_strided_slice %3#1 {offsets = [0, 80], sizes = [1, 16], strides = [1, 1]} : vector<1x256xf32> to vector<1x16xf32>
    %c1_54 = arith.constant 1 : index
    %c0_55 = arith.constant 0 : index
    %c179_56 = arith.constant 179 : index
    %93 = vector.load %arg4[%c1_54, %c0_55, %c179_56] : memref<2x1x506xf32, #tpu.memory_space<vmem>>, vector<1x1x16xf32>
    %94 = vector.shape_cast %93 : vector<1x1x16xf32> to vector<1x16xf32>
    %95 = vector.shape_cast %92 : vector<1x16xf32> to vector<1x1x16xf32>
    tpu.vector_store %arg4[%c1_54, %c0_55, %c179_56], %95 {strides = array<i32>} : memref<2x1x506xf32, #tpu.memory_space<vmem>>, vector<1x1x16xf32>,
    %96 = vector.extract_strided_slice %3#1 {offsets = [0, 96], sizes = [1, 16], strides = [1, 1]} : vector<1x256xf32> to vector<1x16xf32>
    %c1_57 = arith.constant 1 : index
    %c0_58 = arith.constant 0 : index
    %c201_59 = arith.constant 201 : index
    %97 = vector.load %arg4[%c1_57, %c0_58, %c201_59] : memref<2x1x506xf32, #tpu.memory_space<vmem>>, vector<1x1x16xf32>
    %98 = vector.shape_cast %97 : vector<1x1x16xf32> to vector<1x16xf32>
    %99 = vector.shape_cast %96 : vector<1x16xf32> to vector<1x1x16xf32>
    tpu.vector_store %arg4[%c1_57, %c0_58, %c201_59], %99 {strides = array<i32>} : memref<2x1x506xf32, #tpu.memory_space<vmem>>, vector<1x1x16xf32>,
    %100 = vector.extract_strided_slice %3#1 {offsets = [0, 112], sizes = [1, 16], strides = [1, 1]} : vector<1x256xf32> to vector<1x16xf32>
    %c1_60 = arith.constant 1 : index
    %c0_61 = arith.constant 0 : index
    %c223_62 = arith.constant 223 : index
    %101 = vector.load %arg4[%c1_60, %c0_61, %c223_62] : memref<2x1x506xf32, #tpu.memory_space<vmem>>, vector<1x1x16xf32>
    %102 = vector.shape_cast %101 : vector<1x1x16xf32> to vector<1x16xf32>
    %103 = vector.shape_cast %100 : vector<1x16xf32> to vector<1x1x16xf32>
    tpu.vector_store %arg4[%c1_60, %c0_61, %c223_62], %103 {strides = array<i32>} : memref<2x1x506xf32, #tpu.memory_space<vmem>>, vector<1x1x16xf32>,
    %104 = vector.extract_strided_slice %3#1 {offsets = [0, 128], sizes = [1, 16], strides = [1, 1]} : vector<1x256xf32> to vector<1x16xf32>
    %c1_63 = arith.constant 1 : index
    %c0_64 = arith.constant 0 : index
    %c245_65 = arith.constant 245 : index
    %105 = vector.load %arg4[%c1_63, %c0_64, %c245_65] : memref<2x1x506xf32, #tpu.memory_space<vmem>>, vector<1x1x16xf32>
    %106 = vector.shape_cast %105 : vector<1x1x16xf32> to vector<1x16xf32>
    %107 = vector.shape_cast %104 : vector<1x16xf32> to vector<1x1x16xf32>
    tpu.vector_store %arg4[%c1_63, %c0_64, %c245_65], %107 {strides = array<i32>} : memref<2x1x506xf32, #tpu.memory_space<vmem>>, vector<1x1x16xf32>,
    %108 = vector.extract_strided_slice %3#1 {offsets = [0, 144], sizes = [1, 16], strides = [1, 1]} : vector<1x256xf32> to vector<1x16xf32>
    %c1_66 = arith.constant 1 : index
    %c0_67 = arith.constant 0 : index
    %c267_68 = arith.constant 267 : index
    %109 = vector.load %arg4[%c1_66, %c0_67, %c267_68] : memref<2x1x506xf32, #tpu.memory_space<vmem>>, vector<1x1x16xf32>
    %110 = vector.shape_cast %109 : vector<1x1x16xf32> to vector<1x16xf32>
    %111 = vector.shape_cast %108 : vector<1x16xf32> to vector<1x1x16xf32>
    tpu.vector_store %arg4[%c1_66, %c0_67, %c267_68], %111 {strides = array<i32>} : memref<2x1x506xf32, #tpu.memory_space<vmem>>, vector<1x1x16xf32>,
    %112 = vector.extract_strided_slice %3#1 {offsets = [0, 160], sizes = [1, 16], strides = [1, 1]} : vector<1x256xf32> to vector<1x16xf32>
    %c1_69 = arith.constant 1 : index
    %c0_70 = arith.constant 0 : index
    %c289_71 = arith.constant 289 : index
    %113 = vector.load %arg4[%c1_69, %c0_70, %c289_71] : memref<2x1x506xf32, #tpu.memory_space<vmem>>, vector<1x1x16xf32>
    %114 = vector.shape_cast %113 : vector<1x1x16xf32> to vector<1x16xf32>
    %115 = vector.shape_cast %112 : vector<1x16xf32> to vector<1x1x16xf32>
    tpu.vector_store %arg4[%c1_69, %c0_70, %c289_71], %115 {strides = array<i32>} : memref<2x1x506xf32, #tpu.memory_space<vmem>>, vector<1x1x16xf32>,
    %116 = vector.extract_strided_slice %3#1 {offsets = [0, 176], sizes = [1, 16], strides = [1, 1]} : vector<1x256xf32> to vector<1x16xf32>
    %c1_72 = arith.constant 1 : index
    %c0_73 = arith.constant 0 : index
    %c311_74 = arith.constant 311 : index
    %117 = vector.load %arg4[%c1_72, %c0_73, %c311_74] : memref<2x1x506xf32, #tpu.memory_space<vmem>>, vector<1x1x16xf32>
    %118 = vector.shape_cast %117 : vector<1x1x16xf32> to vector<1x16xf32>
    %119 = vector.shape_cast %116 : vector<1x16xf32> to vector<1x1x16xf32>
    tpu.vector_store %arg4[%c1_72, %c0_73, %c311_74], %119 {strides = array<i32>} : memref<2x1x506xf32, #tpu.memory_space<vmem>>, vector<1x1x16xf32>,
    %120 = vector.extract_strided_slice %3#1 {offsets = [0, 192], sizes = [1, 16], strides = [1, 1]} : vector<1x256xf32> to vector<1x16xf32>
    %c1_75 = arith.constant 1 : index
    %c0_76 = arith.constant 0 : index
    %c333_77 = arith.constant 333 : index
    %121 = vector.load %arg4[%c1_75, %c0_76, %c333_77] : memref<2x1x506xf32, #tpu.memory_space<vmem>>, vector<1x1x16xf32>
    %122 = vector.shape_cast %121 : vector<1x1x16xf32> to vector<1x16xf32>
    %123 = vector.shape_cast %120 : vector<1x16xf32> to vector<1x1x16xf32>
    tpu.vector_store %arg4[%c1_75, %c0_76, %c333_77], %123 {strides = array<i32>} : memref<2x1x506xf32, #tpu.memory_space<vmem>>, vector<1x1x16xf32>,
    %124 = vector.extract_strided_slice %3#1 {offsets = [0, 208], sizes = [1, 16], strides = [1, 1]} : vector<1x256xf32> to vector<1x16xf32>
    %c1_78 = arith.constant 1 : index
    %c0_79 = arith.constant 0 : index
    %c355_80 = arith.constant 355 : index
    %125 = vector.load %arg4[%c1_78, %c0_79, %c355_80] : memref<2x1x506xf32, #tpu.memory_space<vmem>>, vector<1x1x16xf32>
    %126 = vector.shape_cast %125 : vector<1x1x16xf32> to vector<1x16xf32>
    %127 = vector.shape_cast %124 : vector<1x16xf32> to vector<1x1x16xf32>
    tpu.vector_store %arg4[%c1_78, %c0_79, %c355_80], %127 {strides = array<i32>} : memref<2x1x506xf32, #tpu.memory_space<vmem>>, vector<1x1x16xf32>,
    %128 = vector.extract_strided_slice %3#1 {offsets = [0, 224], sizes = [1, 16], strides = [1, 1]} : vector<1x256xf32> to vector<1x16xf32>
    %c1_81 = arith.constant 1 : index
    %c0_82 = arith.constant 0 : index
    %c377_83 = arith.constant 377 : index
    %129 = vector.load %arg4[%c1_81, %c0_82, %c377_83] : memref<2x1x506xf32, #tpu.memory_space<vmem>>, vector<1x1x16xf32>
    %130 = vector.shape_cast %129 : vector<1x1x16xf32> to vector<1x16xf32>
    %131 = vector.shape_cast %128 : vector<1x16xf32> to vector<1x1x16xf32>
    tpu.vector_store %arg4[%c1_81, %c0_82, %c377_83], %131 {strides = array<i32>} : memref<2x1x506xf32, #tpu.memory_space<vmem>>, vector<1x1x16xf32>,
    %132 = vector.extract_strided_slice %3#1 {offsets = [0, 240], sizes = [1, 16], strides = [1, 1]} : vector<1x256xf32> to vector<1x16xf32>
    %c1_84 = arith.constant 1 : index
    %c0_85 = arith.constant 0 : index
    %c399_86 = arith.constant 399 : index
    %133 = vector.load %arg4[%c1_84, %c0_85, %c399_86] : memref<2x1x506xf32, #tpu.memory_space<vmem>>, vector<1x1x16xf32>
    %134 = vector.shape_cast %133 : vector<1x1x16xf32> to vector<1x16xf32>
    %135 = vector.shape_cast %132 : vector<1x16xf32> to vector<1x1x16xf32>
    tpu.vector_store %arg4[%c1_84, %c0_85, %c399_86], %135 {strides = array<i32>} : memref<2x1x506xf32, #tpu.memory_space<vmem>>, vector<1x1x16xf32>,
    %cst_87 = arith.constant 0.000000e+00 : f32
    %136 = vector.broadcast %cst_87 : f32 to vector<1x352xf32>
    %c0_88 = arith.constant 0 : index
    %137 = memref.load %arg2[%c0_88] : memref<98xf32, #tpu.memory_space<smem>>
    %c0_89 = arith.constant 0 : index
    %c0_90 = arith.constant 0 : index
    %c0_91 = arith.constant 0 : index
    %138 = vector.load %arg4[%c0_89, %c0_90, %c0_91] : memref<2x1x506xf32, #tpu.memory_space<vmem>>, vector<1x1x352xf32>
    %139 = vector.shape_cast %138 : vector<1x1x352xf32> to vector<1x352xf32>
    %140 = vector.broadcast %137 : f32 to vector<1x352xf32>
    %141 = arith.mulf %140, %139 : vector<1x352xf32>
    %142 = arith.addf %136, %141 : vector<1x352xf32>
    %c1_92 = arith.constant 1 : index
    %143 = memref.load %arg2[%c1_92] : memref<98xf32, #tpu.memory_space<smem>>
    %c0_93 = arith.constant 0 : index
    %c0_94 = arith.constant 0 : index
    %c1_95 = arith.constant 1 : index
    %144 = vector.load %arg4[%c0_93, %c0_94, %c1_95] : memref<2x1x506xf32, #tpu.memory_space<vmem>>, vector<1x1x352xf32>
    %145 = vector.shape_cast %144 : vector<1x1x352xf32> to vector<1x352xf32>
    %146 = vector.broadcast %143 : f32 to vector<1x352xf32>
    %147 = arith.mulf %146, %145 : vector<1x352xf32>
    %148 = arith.addf %142, %147 : vector<1x352xf32>
    %c2 = arith.constant 2 : index
    %149 = memref.load %arg2[%c2] : memref<98xf32, #tpu.memory_space<smem>>
    %c0_96 = arith.constant 0 : index
    %c0_97 = arith.constant 0 : index
    %c2_98 = arith.constant 2 : index
    %150 = vector.load %arg4[%c0_96, %c0_97, %c2_98] : memref<2x1x506xf32, #tpu.memory_space<vmem>>, vector<1x1x352xf32>
    %151 = vector.shape_cast %150 : vector<1x1x352xf32> to vector<1x352xf32>
    %152 = vector.broadcast %149 : f32 to vector<1x352xf32>
    %153 = arith.mulf %152, %151 : vector<1x352xf32>
    %154 = arith.addf %148, %153 : vector<1x352xf32>
    %c3 = arith.constant 3 : index
    %155 = memref.load %arg2[%c3] : memref<98xf32, #tpu.memory_space<smem>>
    %c0_99 = arith.constant 0 : index
    %c0_100 = arith.constant 0 : index
    %c3_101 = arith.constant 3 : index
    %156 = vector.load %arg4[%c0_99, %c0_100, %c3_101] : memref<2x1x506xf32, #tpu.memory_space<vmem>>, vector<1x1x352xf32>
    %157 = vector.shape_cast %156 : vector<1x1x352xf32> to vector<1x352xf32>
    %158 = vector.broadcast %155 : f32 to vector<1x352xf32>
    %159 = arith.mulf %158, %157 : vector<1x352xf32>
    %160 = arith.addf %154, %159 : vector<1x352xf32>
    %c4 = arith.constant 4 : index
    %161 = memref.load %arg2[%c4] : memref<98xf32, #tpu.memory_space<smem>>
    %c0_102 = arith.constant 0 : index
    %c0_103 = arith.constant 0 : index
    %c4_104 = arith.constant 4 : index
    %162 = vector.load %arg4[%c0_102, %c0_103, %c4_104] : memref<2x1x506xf32, #tpu.memory_space<vmem>>, vector<1x1x352xf32>
    %163 = vector.shape_cast %162 : vector<1x1x352xf32> to vector<1x352xf32>
    %164 = vector.broadcast %161 : f32 to vector<1x352xf32>
    %165 = arith.mulf %164, %163 : vector<1x352xf32>
    %166 = arith.addf %160, %165 : vector<1x352xf32>
    %c5 = arith.constant 5 : index
    %167 = memref.load %arg2[%c5] : memref<98xf32, #tpu.memory_space<smem>>
    %c0_105 = arith.constant 0 : index
    %c0_106 = arith.constant 0 : index
    %c5_107 = arith.constant 5 : index
    %168 = vector.load %arg4[%c0_105, %c0_106, %c5_107] : memref<2x1x506xf32, #tpu.memory_space<vmem>>, vector<1x1x352xf32>
    %169 = vector.shape_cast %168 : vector<1x1x352xf32> to vector<1x352xf32>
    %170 = vector.broadcast %167 : f32 to vector<1x352xf32>
    %171 = arith.mulf %170, %169 : vector<1x352xf32>
    %172 = arith.addf %166, %171 : vector<1x352xf32>
    %c6 = arith.constant 6 : index
    %173 = memref.load %arg2[%c6] : memref<98xf32, #tpu.memory_space<smem>>
    %c0_108 = arith.constant 0 : index
    %c0_109 = arith.constant 0 : index
    %c6_110 = arith.constant 6 : index
    %174 = vector.load %arg4[%c0_108, %c0_109, %c6_110] : memref<2x1x506xf32, #tpu.memory_space<vmem>>, vector<1x1x352xf32>
    %175 = vector.shape_cast %174 : vector<1x1x352xf32> to vector<1x352xf32>
    %176 = vector.broadcast %173 : f32 to vector<1x352xf32>
    %177 = arith.mulf %176, %175 : vector<1x352xf32>
    %178 = arith.addf %172, %177 : vector<1x352xf32>
    %c7 = arith.constant 7 : index
    %179 = memref.load %arg2[%c7] : memref<98xf32, #tpu.memory_space<smem>>
    %c0_111 = arith.constant 0 : index
    %c0_112 = arith.constant 0 : index
    %c22 = arith.constant 22 : index
    %180 = vector.load %arg4[%c0_111, %c0_112, %c22] : memref<2x1x506xf32, #tpu.memory_space<vmem>>, vector<1x1x352xf32>
    %181 = vector.shape_cast %180 : vector<1x1x352xf32> to vector<1x352xf32>
    %182 = vector.broadcast %179 : f32 to vector<1x352xf32>
    %183 = arith.mulf %182, %181 : vector<1x352xf32>
    %184 = arith.addf %178, %183 : vector<1x352xf32>
    %c8 = arith.constant 8 : index
    %185 = memref.load %arg2[%c8] : memref<98xf32, #tpu.memory_space<smem>>
    %c0_113 = arith.constant 0 : index
    %c0_114 = arith.constant 0 : index
    %c23 = arith.constant 23 : index
    %186 = vector.load %arg4[%c0_113, %c0_114, %c23] : memref<2x1x506xf32, #tpu.memory_space<vmem>>, vector<1x1x352xf32>
    %187 = vector.shape_cast %186 : vector<1x1x352xf32> to vector<1x352xf32>
    %188 = vector.broadcast %185 : f32 to vector<1x352xf32>
    %189 = arith.mulf %188, %187 : vector<1x352xf32>
    %190 = arith.addf %184, %189 : vector<1x352xf32>
    %c9 = arith.constant 9 : index
    %191 = memref.load %arg2[%c9] : memref<98xf32, #tpu.memory_space<smem>>
    %c0_115 = arith.constant 0 : index
    %c0_116 = arith.constant 0 : index
    %c24 = arith.constant 24 : index
    %192 = vector.load %arg4[%c0_115, %c0_116, %c24] : memref<2x1x506xf32, #tpu.memory_space<vmem>>, vector<1x1x352xf32>
    %193 = vector.shape_cast %192 : vector<1x1x352xf32> to vector<1x352xf32>
    %194 = vector.broadcast %191 : f32 to vector<1x352xf32>
    %195 = arith.mulf %194, %193 : vector<1x352xf32>
    %196 = arith.addf %190, %195 : vector<1x352xf32>
    %c10 = arith.constant 10 : index
    %197 = memref.load %arg2[%c10] : memref<98xf32, #tpu.memory_space<smem>>
    %c0_117 = arith.constant 0 : index
    %c0_118 = arith.constant 0 : index
    %c25 = arith.constant 25 : index
    %198 = vector.load %arg4[%c0_117, %c0_118, %c25] : memref<2x1x506xf32, #tpu.memory_space<vmem>>, vector<1x1x352xf32>
    %199 = vector.shape_cast %198 : vector<1x1x352xf32> to vector<1x352xf32>
    %200 = vector.broadcast %197 : f32 to vector<1x352xf32>
    %201 = arith.mulf %200, %199 : vector<1x352xf32>
    %202 = arith.addf %196, %201 : vector<1x352xf32>
    %c11 = arith.constant 11 : index
    %203 = memref.load %arg2[%c11] : memref<98xf32, #tpu.memory_space<smem>>
    %c0_119 = arith.constant 0 : index
    %c0_120 = arith.constant 0 : index
    %c26 = arith.constant 26 : index
    %204 = vector.load %arg4[%c0_119, %c0_120, %c26] : memref<2x1x506xf32, #tpu.memory_space<vmem>>, vector<1x1x352xf32>
    %205 = vector.shape_cast %204 : vector<1x1x352xf32> to vector<1x352xf32>
    %206 = vector.broadcast %203 : f32 to vector<1x352xf32>
    %207 = arith.mulf %206, %205 : vector<1x352xf32>
    %208 = arith.addf %202, %207 : vector<1x352xf32>
    %c12 = arith.constant 12 : index
    %209 = memref.load %arg2[%c12] : memref<98xf32, #tpu.memory_space<smem>>
    %c0_121 = arith.constant 0 : index
    %c0_122 = arith.constant 0 : index
    %c27 = arith.constant 27 : index
    %210 = vector.load %arg4[%c0_121, %c0_122, %c27] : memref<2x1x506xf32, #tpu.memory_space<vmem>>, vector<1x1x352xf32>
    %211 = vector.shape_cast %210 : vector<1x1x352xf32> to vector<1x352xf32>
    %212 = vector.broadcast %209 : f32 to vector<1x352xf32>
    %213 = arith.mulf %212, %211 : vector<1x352xf32>
    %214 = arith.addf %208, %213 : vector<1x352xf32>
    %c13 = arith.constant 13 : index
    %215 = memref.load %arg2[%c13] : memref<98xf32, #tpu.memory_space<smem>>
    %c0_123 = arith.constant 0 : index
    %c0_124 = arith.constant 0 : index
    %c28 = arith.constant 28 : index
    %216 = vector.load %arg4[%c0_123, %c0_124, %c28] : memref<2x1x506xf32, #tpu.memory_space<vmem>>, vector<1x1x352xf32>
    %217 = vector.shape_cast %216 : vector<1x1x352xf32> to vector<1x352xf32>
    %218 = vector.broadcast %215 : f32 to vector<1x352xf32>
    %219 = arith.mulf %218, %217 : vector<1x352xf32>
    %220 = arith.addf %214, %219 : vector<1x352xf32>
    %c14 = arith.constant 14 : index
    %221 = memref.load %arg2[%c14] : memref<98xf32, #tpu.memory_space<smem>>
    %c0_125 = arith.constant 0 : index
    %c0_126 = arith.constant 0 : index
    %c44 = arith.constant 44 : index
    %222 = vector.load %arg4[%c0_125, %c0_126, %c44] : memref<2x1x506xf32, #tpu.memory_space<vmem>>, vector<1x1x352xf32>
    %223 = vector.shape_cast %222 : vector<1x1x352xf32> to vector<1x352xf32>
    %224 = vector.broadcast %221 : f32 to vector<1x352xf32>
    %225 = arith.mulf %224, %223 : vector<1x352xf32>
    %226 = arith.addf %220, %225 : vector<1x352xf32>
    %c15 = arith.constant 15 : index
    %227 = memref.load %arg2[%c15] : memref<98xf32, #tpu.memory_space<smem>>
    %c0_127 = arith.constant 0 : index
    %c0_128 = arith.constant 0 : index
    %c45 = arith.constant 45 : index
    %228 = vector.load %arg4[%c0_127, %c0_128, %c45] : memref<2x1x506xf32, #tpu.memory_space<vmem>>, vector<1x1x352xf32>
    %229 = vector.shape_cast %228 : vector<1x1x352xf32> to vector<1x352xf32>
    %230 = vector.broadcast %227 : f32 to vector<1x352xf32>
    %231 = arith.mulf %230, %229 : vector<1x352xf32>
    %232 = arith.addf %226, %231 : vector<1x352xf32>
    %c16 = arith.constant 16 : index
    %233 = memref.load %arg2[%c16] : memref<98xf32, #tpu.memory_space<smem>>
    %c0_129 = arith.constant 0 : index
    %c0_130 = arith.constant 0 : index
    %c46 = arith.constant 46 : index
    %234 = vector.load %arg4[%c0_129, %c0_130, %c46] : memref<2x1x506xf32, #tpu.memory_space<vmem>>, vector<1x1x352xf32>
    %235 = vector.shape_cast %234 : vector<1x1x352xf32> to vector<1x352xf32>
    %236 = vector.broadcast %233 : f32 to vector<1x352xf32>
    %237 = arith.mulf %236, %235 : vector<1x352xf32>
    %238 = arith.addf %232, %237 : vector<1x352xf32>
    %c17 = arith.constant 17 : index
    %239 = memref.load %arg2[%c17] : memref<98xf32, #tpu.memory_space<smem>>
    %c0_131 = arith.constant 0 : index
    %c0_132 = arith.constant 0 : index
    %c47 = arith.constant 47 : index
    %240 = vector.load %arg4[%c0_131, %c0_132, %c47] : memref<2x1x506xf32, #tpu.memory_space<vmem>>, vector<1x1x352xf32>
    %241 = vector.shape_cast %240 : vector<1x1x352xf32> to vector<1x352xf32>
    %242 = vector.broadcast %239 : f32 to vector<1x352xf32>
    %243 = arith.mulf %242, %241 : vector<1x352xf32>
    %244 = arith.addf %238, %243 : vector<1x352xf32>
    %c18 = arith.constant 18 : index
    %245 = memref.load %arg2[%c18] : memref<98xf32, #tpu.memory_space<smem>>
    %c0_133 = arith.constant 0 : index
    %c0_134 = arith.constant 0 : index
    %c48 = arith.constant 48 : index
    %246 = vector.load %arg4[%c0_133, %c0_134, %c48] : memref<2x1x506xf32, #tpu.memory_space<vmem>>, vector<1x1x352xf32>
    %247 = vector.shape_cast %246 : vector<1x1x352xf32> to vector<1x352xf32>
    %248 = vector.broadcast %245 : f32 to vector<1x352xf32>
    %249 = arith.mulf %248, %247 : vector<1x352xf32>
    %250 = arith.addf %244, %249 : vector<1x352xf32>
    %c19 = arith.constant 19 : index
    %251 = memref.load %arg2[%c19] : memref<98xf32, #tpu.memory_space<smem>>
    %c0_135 = arith.constant 0 : index
    %c0_136 = arith.constant 0 : index
    %c49 = arith.constant 49 : index
    %252 = vector.load %arg4[%c0_135, %c0_136, %c49] : memref<2x1x506xf32, #tpu.memory_space<vmem>>, vector<1x1x352xf32>
    %253 = vector.shape_cast %252 : vector<1x1x352xf32> to vector<1x352xf32>
    %254 = vector.broadcast %251 : f32 to vector<1x352xf32>
    %255 = arith.mulf %254, %253 : vector<1x352xf32>
    %256 = arith.addf %250, %255 : vector<1x352xf32>
    %c20 = arith.constant 20 : index
    %257 = memref.load %arg2[%c20] : memref<98xf32, #tpu.memory_space<smem>>
    %c0_137 = arith.constant 0 : index
    %c0_138 = arith.constant 0 : index
    %c50 = arith.constant 50 : index
    %258 = vector.load %arg4[%c0_137, %c0_138, %c50] : memref<2x1x506xf32, #tpu.memory_space<vmem>>, vector<1x1x352xf32>
    %259 = vector.shape_cast %258 : vector<1x1x352xf32> to vector<1x352xf32>
    %260 = vector.broadcast %257 : f32 to vector<1x352xf32>
    %261 = arith.mulf %260, %259 : vector<1x352xf32>
    %262 = arith.addf %256, %261 : vector<1x352xf32>
    %c21 = arith.constant 21 : index
    %263 = memref.load %arg2[%c21] : memref<98xf32, #tpu.memory_space<smem>>
    %c0_139 = arith.constant 0 : index
    %c0_140 = arith.constant 0 : index
    %c66 = arith.constant 66 : index
    %264 = vector.load %arg4[%c0_139, %c0_140, %c66] : memref<2x1x506xf32, #tpu.memory_space<vmem>>, vector<1x1x352xf32>
    %265 = vector.shape_cast %264 : vector<1x1x352xf32> to vector<1x352xf32>
    %266 = vector.broadcast %263 : f32 to vector<1x352xf32>
    %267 = arith.mulf %266, %265 : vector<1x352xf32>
    %268 = arith.addf %262, %267 : vector<1x352xf32>
    %c22_141 = arith.constant 22 : index
    %269 = memref.load %arg2[%c22_141] : memref<98xf32, #tpu.memory_space<smem>>
    %c0_142 = arith.constant 0 : index
    %c0_143 = arith.constant 0 : index
    %c67 = arith.constant 67 : index
    %270 = vector.load %arg4[%c0_142, %c0_143, %c67] : memref<2x1x506xf32, #tpu.memory_space<vmem>>, vector<1x1x352xf32>
    %271 = vector.shape_cast %270 : vector<1x1x352xf32> to vector<1x352xf32>
    %272 = vector.broadcast %269 : f32 to vector<1x352xf32>
    %273 = arith.mulf %272, %271 : vector<1x352xf32>
    %274 = arith.addf %268, %273 : vector<1x352xf32>
    %c23_144 = arith.constant 23 : index
    %275 = memref.load %arg2[%c23_144] : memref<98xf32, #tpu.memory_space<smem>>
    %c0_145 = arith.constant 0 : index
    %c0_146 = arith.constant 0 : index
    %c68 = arith.constant 68 : index
    %276 = vector.load %arg4[%c0_145, %c0_146, %c68] : memref<2x1x506xf32, #tpu.memory_space<vmem>>, vector<1x1x352xf32>
    %277 = vector.shape_cast %276 : vector<1x1x352xf32> to vector<1x352xf32>
    %278 = vector.broadcast %275 : f32 to vector<1x352xf32>
    %279 = arith.mulf %278, %277 : vector<1x352xf32>
    %280 = arith.addf %274, %279 : vector<1x352xf32>
    %c24_147 = arith.constant 24 : index
    %281 = memref.load %arg2[%c24_147] : memref<98xf32, #tpu.memory_space<smem>>
    %c0_148 = arith.constant 0 : index
    %c0_149 = arith.constant 0 : index
    %c69_150 = arith.constant 69 : index
    %282 = vector.load %arg4[%c0_148, %c0_149, %c69_150] : memref<2x1x506xf32, #tpu.memory_space<vmem>>, vector<1x1x352xf32>
    %283 = vector.shape_cast %282 : vector<1x1x352xf32> to vector<1x352xf32>
    %284 = vector.broadcast %281 : f32 to vector<1x352xf32>
    %285 = arith.mulf %284, %283 : vector<1x352xf32>
    %286 = arith.addf %280, %285 : vector<1x352xf32>
    %c25_151 = arith.constant 25 : index
    %287 = memref.load %arg2[%c25_151] : memref<98xf32, #tpu.memory_space<smem>>
    %c0_152 = arith.constant 0 : index
    %c0_153 = arith.constant 0 : index
    %c70 = arith.constant 70 : index
    %288 = vector.load %arg4[%c0_152, %c0_153, %c70] : memref<2x1x506xf32, #tpu.memory_space<vmem>>, vector<1x1x352xf32>
    %289 = vector.shape_cast %288 : vector<1x1x352xf32> to vector<1x352xf32>
    %290 = vector.broadcast %287 : f32 to vector<1x352xf32>
    %291 = arith.mulf %290, %289 : vector<1x352xf32>
    %292 = arith.addf %286, %291 : vector<1x352xf32>
    %c26_154 = arith.constant 26 : index
    %293 = memref.load %arg2[%c26_154] : memref<98xf32, #tpu.memory_space<smem>>
    %c0_155 = arith.constant 0 : index
    %c0_156 = arith.constant 0 : index
    %c71 = arith.constant 71 : index
    %294 = vector.load %arg4[%c0_155, %c0_156, %c71] : memref<2x1x506xf32, #tpu.memory_space<vmem>>, vector<1x1x352xf32>
    %295 = vector.shape_cast %294 : vector<1x1x352xf32> to vector<1x352xf32>
    %296 = vector.broadcast %293 : f32 to vector<1x352xf32>
    %297 = arith.mulf %296, %295 : vector<1x352xf32>
    %298 = arith.addf %292, %297 : vector<1x352xf32>
    %c27_157 = arith.constant 27 : index
    %299 = memref.load %arg2[%c27_157] : memref<98xf32, #tpu.memory_space<smem>>
    %c0_158 = arith.constant 0 : index
    %c0_159 = arith.constant 0 : index
    %c72 = arith.constant 72 : index
    %300 = vector.load %arg4[%c0_158, %c0_159, %c72] : memref<2x1x506xf32, #tpu.memory_space<vmem>>, vector<1x1x352xf32>
    %301 = vector.shape_cast %300 : vector<1x1x352xf32> to vector<1x352xf32>
    %302 = vector.broadcast %299 : f32 to vector<1x352xf32>
    %303 = arith.mulf %302, %301 : vector<1x352xf32>
    %304 = arith.addf %298, %303 : vector<1x352xf32>
    %c28_160 = arith.constant 28 : index
    %305 = memref.load %arg2[%c28_160] : memref<98xf32, #tpu.memory_space<smem>>
    %c0_161 = arith.constant 0 : index
    %c0_162 = arith.constant 0 : index
    %c88 = arith.constant 88 : index
    %306 = vector.load %arg4[%c0_161, %c0_162, %c88] : memref<2x1x506xf32, #tpu.memory_space<vmem>>, vector<1x1x352xf32>
    %307 = vector.shape_cast %306 : vector<1x1x352xf32> to vector<1x352xf32>
    %308 = vector.broadcast %305 : f32 to vector<1x352xf32>
    %309 = arith.mulf %308, %307 : vector<1x352xf32>
    %310 = arith.addf %304, %309 : vector<1x352xf32>
    %c29 = arith.constant 29 : index
    %311 = memref.load %arg2[%c29] : memref<98xf32, #tpu.memory_space<smem>>
    %c0_163 = arith.constant 0 : index
    %c0_164 = arith.constant 0 : index
    %c89 = arith.constant 89 : index
    %312 = vector.load %arg4[%c0_163, %c0_164, %c89] : memref<2x1x506xf32, #tpu.memory_space<vmem>>, vector<1x1x352xf32>
    %313 = vector.shape_cast %312 : vector<1x1x352xf32> to vector<1x352xf32>
    %314 = vector.broadcast %311 : f32 to vector<1x352xf32>
    %315 = arith.mulf %314, %313 : vector<1x352xf32>
    %316 = arith.addf %310, %315 : vector<1x352xf32>
    %c30 = arith.constant 30 : index
    %317 = memref.load %arg2[%c30] : memref<98xf32, #tpu.memory_space<smem>>
    %c0_165 = arith.constant 0 : index
    %c0_166 = arith.constant 0 : index
    %c90 = arith.constant 90 : index
    %318 = vector.load %arg4[%c0_165, %c0_166, %c90] : memref<2x1x506xf32, #tpu.memory_space<vmem>>, vector<1x1x352xf32>
    %319 = vector.shape_cast %318 : vector<1x1x352xf32> to vector<1x352xf32>
    %320 = vector.broadcast %317 : f32 to vector<1x352xf32>
    %321 = arith.mulf %320, %319 : vector<1x352xf32>
    %322 = arith.addf %316, %321 : vector<1x352xf32>
    %c31 = arith.constant 31 : index
    %323 = memref.load %arg2[%c31] : memref<98xf32, #tpu.memory_space<smem>>
    %c0_167 = arith.constant 0 : index
    %c0_168 = arith.constant 0 : index
    %c91_169 = arith.constant 91 : index
    %324 = vector.load %arg4[%c0_167, %c0_168, %c91_169] : memref<2x1x506xf32, #tpu.memory_space<vmem>>, vector<1x1x352xf32>
    %325 = vector.shape_cast %324 : vector<1x1x352xf32> to vector<1x352xf32>
    %326 = vector.broadcast %323 : f32 to vector<1x352xf32>
    %327 = arith.mulf %326, %325 : vector<1x352xf32>
    %328 = arith.addf %322, %327 : vector<1x352xf32>
    %c32 = arith.constant 32 : index
    %329 = memref.load %arg2[%c32] : memref<98xf32, #tpu.memory_space<smem>>
    %c0_170 = arith.constant 0 : index
    %c0_171 = arith.constant 0 : index
    %c92 = arith.constant 92 : index
    %330 = vector.load %arg4[%c0_170, %c0_171, %c92] : memref<2x1x506xf32, #tpu.memory_space<vmem>>, vector<1x1x352xf32>
    %331 = vector.shape_cast %330 : vector<1x1x352xf32> to vector<1x352xf32>
    %332 = vector.broadcast %329 : f32 to vector<1x352xf32>
    %333 = arith.mulf %332, %331 : vector<1x352xf32>
    %334 = arith.addf %328, %333 : vector<1x352xf32>
    %c33 = arith.constant 33 : index
    %335 = memref.load %arg2[%c33] : memref<98xf32, #tpu.memory_space<smem>>
    %c0_172 = arith.constant 0 : index
    %c0_173 = arith.constant 0 : index
    %c93 = arith.constant 93 : index
    %336 = vector.load %arg4[%c0_172, %c0_173, %c93] : memref<2x1x506xf32, #tpu.memory_space<vmem>>, vector<1x1x352xf32>
    %337 = vector.shape_cast %336 : vector<1x1x352xf32> to vector<1x352xf32>
    %338 = vector.broadcast %335 : f32 to vector<1x352xf32>
    %339 = arith.mulf %338, %337 : vector<1x352xf32>
    %340 = arith.addf %334, %339 : vector<1x352xf32>
    %c34 = arith.constant 34 : index
    %341 = memref.load %arg2[%c34] : memref<98xf32, #tpu.memory_space<smem>>
    %c0_174 = arith.constant 0 : index
    %c0_175 = arith.constant 0 : index
    %c94 = arith.constant 94 : index
    %342 = vector.load %arg4[%c0_174, %c0_175, %c94] : memref<2x1x506xf32, #tpu.memory_space<vmem>>, vector<1x1x352xf32>
    %343 = vector.shape_cast %342 : vector<1x1x352xf32> to vector<1x352xf32>
    %344 = vector.broadcast %341 : f32 to vector<1x352xf32>
    %345 = arith.mulf %344, %343 : vector<1x352xf32>
    %346 = arith.addf %340, %345 : vector<1x352xf32>
    %c35 = arith.constant 35 : index
    %347 = memref.load %arg2[%c35] : memref<98xf32, #tpu.memory_space<smem>>
    %c0_176 = arith.constant 0 : index
    %c0_177 = arith.constant 0 : index
    %c110 = arith.constant 110 : index
    %348 = vector.load %arg4[%c0_176, %c0_177, %c110] : memref<2x1x506xf32, #tpu.memory_space<vmem>>, vector<1x1x352xf32>
    %349 = vector.shape_cast %348 : vector<1x1x352xf32> to vector<1x352xf32>
    %350 = vector.broadcast %347 : f32 to vector<1x352xf32>
    %351 = arith.mulf %350, %349 : vector<1x352xf32>
    %352 = arith.addf %346, %351 : vector<1x352xf32>
    %c36 = arith.constant 36 : index
    %353 = memref.load %arg2[%c36] : memref<98xf32, #tpu.memory_space<smem>>
    %c0_178 = arith.constant 0 : index
    %c0_179 = arith.constant 0 : index
    %c111 = arith.constant 111 : index
    %354 = vector.load %arg4[%c0_178, %c0_179, %c111] : memref<2x1x506xf32, #tpu.memory_space<vmem>>, vector<1x1x352xf32>
    %355 = vector.shape_cast %354 : vector<1x1x352xf32> to vector<1x352xf32>
    %356 = vector.broadcast %353 : f32 to vector<1x352xf32>
    %357 = arith.mulf %356, %355 : vector<1x352xf32>
    %358 = arith.addf %352, %357 : vector<1x352xf32>
    %c37 = arith.constant 37 : index
    %359 = memref.load %arg2[%c37] : memref<98xf32, #tpu.memory_space<smem>>
    %c0_180 = arith.constant 0 : index
    %c0_181 = arith.constant 0 : index
    %c112 = arith.constant 112 : index
    %360 = vector.load %arg4[%c0_180, %c0_181, %c112] : memref<2x1x506xf32, #tpu.memory_space<vmem>>, vector<1x1x352xf32>
    %361 = vector.shape_cast %360 : vector<1x1x352xf32> to vector<1x352xf32>
    %362 = vector.broadcast %359 : f32 to vector<1x352xf32>
    %363 = arith.mulf %362, %361 : vector<1x352xf32>
    %364 = arith.addf %358, %363 : vector<1x352xf32>
    %c38 = arith.constant 38 : index
    %365 = memref.load %arg2[%c38] : memref<98xf32, #tpu.memory_space<smem>>
    %c0_182 = arith.constant 0 : index
    %c0_183 = arith.constant 0 : index
    %c113_184 = arith.constant 113 : index
    %366 = vector.load %arg4[%c0_182, %c0_183, %c113_184] : memref<2x1x506xf32, #tpu.memory_space<vmem>>, vector<1x1x352xf32>
    %367 = vector.shape_cast %366 : vector<1x1x352xf32> to vector<1x352xf32>
    %368 = vector.broadcast %365 : f32 to vector<1x352xf32>
    %369 = arith.mulf %368, %367 : vector<1x352xf32>
    %370 = arith.addf %364, %369 : vector<1x352xf32>
    %c39 = arith.constant 39 : index
    %371 = memref.load %arg2[%c39] : memref<98xf32, #tpu.memory_space<smem>>
    %c0_185 = arith.constant 0 : index
    %c0_186 = arith.constant 0 : index
    %c114 = arith.constant 114 : index
    %372 = vector.load %arg4[%c0_185, %c0_186, %c114] : memref<2x1x506xf32, #tpu.memory_space<vmem>>, vector<1x1x352xf32>
    %373 = vector.shape_cast %372 : vector<1x1x352xf32> to vector<1x352xf32>
    %374 = vector.broadcast %371 : f32 to vector<1x352xf32>
    %375 = arith.mulf %374, %373 : vector<1x352xf32>
    %376 = arith.addf %370, %375 : vector<1x352xf32>
    %c40 = arith.constant 40 : index
    %377 = memref.load %arg2[%c40] : memref<98xf32, #tpu.memory_space<smem>>
    %c0_187 = arith.constant 0 : index
    %c0_188 = arith.constant 0 : index
    %c115 = arith.constant 115 : index
    %378 = vector.load %arg4[%c0_187, %c0_188, %c115] : memref<2x1x506xf32, #tpu.memory_space<vmem>>, vector<1x1x352xf32>
    %379 = vector.shape_cast %378 : vector<1x1x352xf32> to vector<1x352xf32>
    %380 = vector.broadcast %377 : f32 to vector<1x352xf32>
    %381 = arith.mulf %380, %379 : vector<1x352xf32>
    %382 = arith.addf %376, %381 : vector<1x352xf32>
    %c41 = arith.constant 41 : index
    %383 = memref.load %arg2[%c41] : memref<98xf32, #tpu.memory_space<smem>>
    %c0_189 = arith.constant 0 : index
    %c0_190 = arith.constant 0 : index
    %c116 = arith.constant 116 : index
    %384 = vector.load %arg4[%c0_189, %c0_190, %c116] : memref<2x1x506xf32, #tpu.memory_space<vmem>>, vector<1x1x352xf32>
    %385 = vector.shape_cast %384 : vector<1x1x352xf32> to vector<1x352xf32>
    %386 = vector.broadcast %383 : f32 to vector<1x352xf32>
    %387 = arith.mulf %386, %385 : vector<1x352xf32>
    %388 = arith.addf %382, %387 : vector<1x352xf32>
    %c42 = arith.constant 42 : index
    %389 = memref.load %arg2[%c42] : memref<98xf32, #tpu.memory_space<smem>>
    %c0_191 = arith.constant 0 : index
    %c0_192 = arith.constant 0 : index
    %c132 = arith.constant 132 : index
    %390 = vector.load %arg4[%c0_191, %c0_192, %c132] : memref<2x1x506xf32, #tpu.memory_space<vmem>>, vector<1x1x352xf32>
    %391 = vector.shape_cast %390 : vector<1x1x352xf32> to vector<1x352xf32>
    %392 = vector.broadcast %389 : f32 to vector<1x352xf32>
    %393 = arith.mulf %392, %391 : vector<1x352xf32>
    %394 = arith.addf %388, %393 : vector<1x352xf32>
    %c43 = arith.constant 43 : index
    %395 = memref.load %arg2[%c43] : memref<98xf32, #tpu.memory_space<smem>>
    %c0_193 = arith.constant 0 : index
    %c0_194 = arith.constant 0 : index
    %c133 = arith.constant 133 : index
    %396 = vector.load %arg4[%c0_193, %c0_194, %c133] : memref<2x1x506xf32, #tpu.memory_space<vmem>>, vector<1x1x352xf32>
    %397 = vector.shape_cast %396 : vector<1x1x352xf32> to vector<1x352xf32>
    %398 = vector.broadcast %395 : f32 to vector<1x352xf32>
    %399 = arith.mulf %398, %397 : vector<1x352xf32>
    %400 = arith.addf %394, %399 : vector<1x352xf32>
    %c44_195 = arith.constant 44 : index
    %401 = memref.load %arg2[%c44_195] : memref<98xf32, #tpu.memory_space<smem>>
    %c0_196 = arith.constant 0 : index
    %c0_197 = arith.constant 0 : index
    %c134 = arith.constant 134 : index
    %402 = vector.load %arg4[%c0_196, %c0_197, %c134] : memref<2x1x506xf32, #tpu.memory_space<vmem>>, vector<1x1x352xf32>
    %403 = vector.shape_cast %402 : vector<1x1x352xf32> to vector<1x352xf32>
    %404 = vector.broadcast %401 : f32 to vector<1x352xf32>
    %405 = arith.mulf %404, %403 : vector<1x352xf32>
    %406 = arith.addf %400, %405 : vector<1x352xf32>
    %c45_198 = arith.constant 45 : index
    %407 = memref.load %arg2[%c45_198] : memref<98xf32, #tpu.memory_space<smem>>
    %c0_199 = arith.constant 0 : index
    %c0_200 = arith.constant 0 : index
    %c135_201 = arith.constant 135 : index
    %408 = vector.load %arg4[%c0_199, %c0_200, %c135_201] : memref<2x1x506xf32, #tpu.memory_space<vmem>>, vector<1x1x352xf32>
    %409 = vector.shape_cast %408 : vector<1x1x352xf32> to vector<1x352xf32>
    %410 = vector.broadcast %407 : f32 to vector<1x352xf32>
    %411 = arith.mulf %410, %409 : vector<1x352xf32>
    %412 = arith.addf %406, %411 : vector<1x352xf32>
    %c46_202 = arith.constant 46 : index
    %413 = memref.load %arg2[%c46_202] : memref<98xf32, #tpu.memory_space<smem>>
    %c0_203 = arith.constant 0 : index
    %c0_204 = arith.constant 0 : index
    %c136 = arith.constant 136 : index
    %414 = vector.load %arg4[%c0_203, %c0_204, %c136] : memref<2x1x506xf32, #tpu.memory_space<vmem>>, vector<1x1x352xf32>
    %415 = vector.shape_cast %414 : vector<1x1x352xf32> to vector<1x352xf32>
    %416 = vector.broadcast %413 : f32 to vector<1x352xf32>
    %417 = arith.mulf %416, %415 : vector<1x352xf32>
    %418 = arith.addf %412, %417 : vector<1x352xf32>
    %c47_205 = arith.constant 47 : index
    %419 = memref.load %arg2[%c47_205] : memref<98xf32, #tpu.memory_space<smem>>
    %c0_206 = arith.constant 0 : index
    %c0_207 = arith.constant 0 : index
    %c137 = arith.constant 137 : index
    %420 = vector.load %arg4[%c0_206, %c0_207, %c137] : memref<2x1x506xf32, #tpu.memory_space<vmem>>, vector<1x1x352xf32>
    %421 = vector.shape_cast %420 : vector<1x1x352xf32> to vector<1x352xf32>
    %422 = vector.broadcast %419 : f32 to vector<1x352xf32>
    %423 = arith.mulf %422, %421 : vector<1x352xf32>
    %424 = arith.addf %418, %423 : vector<1x352xf32>
    %c48_208 = arith.constant 48 : index
    %425 = memref.load %arg2[%c48_208] : memref<98xf32, #tpu.memory_space<smem>>
    %c0_209 = arith.constant 0 : index
    %c0_210 = arith.constant 0 : index
    %c138 = arith.constant 138 : index
    %426 = vector.load %arg4[%c0_209, %c0_210, %c138] : memref<2x1x506xf32, #tpu.memory_space<vmem>>, vector<1x1x352xf32>
    %427 = vector.shape_cast %426 : vector<1x1x352xf32> to vector<1x352xf32>
    %428 = vector.broadcast %425 : f32 to vector<1x352xf32>
    %429 = arith.mulf %428, %427 : vector<1x352xf32>
    %430 = arith.addf %424, %429 : vector<1x352xf32>
    %c49_211 = arith.constant 49 : index
    %431 = memref.load %arg2[%c49_211] : memref<98xf32, #tpu.memory_space<smem>>
    %c1_212 = arith.constant 1 : index
    %c0_213 = arith.constant 0 : index
    %c0_214 = arith.constant 0 : index
    %432 = vector.load %arg4[%c1_212, %c0_213, %c0_214] : memref<2x1x506xf32, #tpu.memory_space<vmem>>, vector<1x1x352xf32>
    %433 = vector.shape_cast %432 : vector<1x1x352xf32> to vector<1x352xf32>
    %434 = vector.broadcast %431 : f32 to vector<1x352xf32>
    %435 = arith.mulf %434, %433 : vector<1x352xf32>
    %436 = arith.addf %430, %435 : vector<1x352xf32>
    %c50_215 = arith.constant 50 : index
    %437 = memref.load %arg2[%c50_215] : memref<98xf32, #tpu.memory_space<smem>>
    %c1_216 = arith.constant 1 : index
    %c0_217 = arith.constant 0 : index
    %c1_218 = arith.constant 1 : index
    %438 = vector.load %arg4[%c1_216, %c0_217, %c1_218] : memref<2x1x506xf32, #tpu.memory_space<vmem>>, vector<1x1x352xf32>
    %439 = vector.shape_cast %438 : vector<1x1x352xf32> to vector<1x352xf32>
    %440 = vector.broadcast %437 : f32 to vector<1x352xf32>
    %441 = arith.mulf %440, %439 : vector<1x352xf32>
    %442 = arith.addf %436, %441 : vector<1x352xf32>
    %c51 = arith.constant 51 : index
    %443 = memref.load %arg2[%c51] : memref<98xf32, #tpu.memory_space<smem>>
    %c1_219 = arith.constant 1 : index
    %c0_220 = arith.constant 0 : index
    %c2_221 = arith.constant 2 : index
    %444 = vector.load %arg4[%c1_219, %c0_220, %c2_221] : memref<2x1x506xf32, #tpu.memory_space<vmem>>, vector<1x1x352xf32>
    %445 = vector.shape_cast %444 : vector<1x1x352xf32> to vector<1x352xf32>
    %446 = vector.broadcast %443 : f32 to vector<1x352xf32>
    %447 = arith.mulf %446, %445 : vector<1x352xf32>
    %448 = arith.addf %442, %447 : vector<1x352xf32>
    %c52 = arith.constant 52 : index
    %449 = memref.load %arg2[%c52] : memref<98xf32, #tpu.memory_space<smem>>
    %c1_222 = arith.constant 1 : index
    %c0_223 = arith.constant 0 : index
    %c3_224 = arith.constant 3 : index
    %450 = vector.load %arg4[%c1_222, %c0_223, %c3_224] : memref<2x1x506xf32, #tpu.memory_space<vmem>>, vector<1x1x352xf32>
    %451 = vector.shape_cast %450 : vector<1x1x352xf32> to vector<1x352xf32>
    %452 = vector.broadcast %449 : f32 to vector<1x352xf32>
    %453 = arith.mulf %452, %451 : vector<1x352xf32>
    %454 = arith.addf %448, %453 : vector<1x352xf32>
    %c53 = arith.constant 53 : index
    %455 = memref.load %arg2[%c53] : memref<98xf32, #tpu.memory_space<smem>>
    %c1_225 = arith.constant 1 : index
    %c0_226 = arith.constant 0 : index
    %c4_227 = arith.constant 4 : index
    %456 = vector.load %arg4[%c1_225, %c0_226, %c4_227] : memref<2x1x506xf32, #tpu.memory_space<vmem>>, vector<1x1x352xf32>
    %457 = vector.shape_cast %456 : vector<1x1x352xf32> to vector<1x352xf32>
    %458 = vector.broadcast %455 : f32 to vector<1x352xf32>
    %459 = arith.mulf %458, %457 : vector<1x352xf32>
    %460 = arith.addf %454, %459 : vector<1x352xf32>
    %c54 = arith.constant 54 : index
    %461 = memref.load %arg2[%c54] : memref<98xf32, #tpu.memory_space<smem>>
    %c1_228 = arith.constant 1 : index
    %c0_229 = arith.constant 0 : index
    %c5_230 = arith.constant 5 : index
    %462 = vector.load %arg4[%c1_228, %c0_229, %c5_230] : memref<2x1x506xf32, #tpu.memory_space<vmem>>, vector<1x1x352xf32>
    %463 = vector.shape_cast %462 : vector<1x1x352xf32> to vector<1x352xf32>
    %464 = vector.broadcast %461 : f32 to vector<1x352xf32>
    %465 = arith.mulf %464, %463 : vector<1x352xf32>
    %466 = arith.addf %460, %465 : vector<1x352xf32>
    %c55 = arith.constant 55 : index
    %467 = memref.load %arg2[%c55] : memref<98xf32, #tpu.memory_space<smem>>
    %c1_231 = arith.constant 1 : index
    %c0_232 = arith.constant 0 : index
    %c6_233 = arith.constant 6 : index
    %468 = vector.load %arg4[%c1_231, %c0_232, %c6_233] : memref<2x1x506xf32, #tpu.memory_space<vmem>>, vector<1x1x352xf32>
    %469 = vector.shape_cast %468 : vector<1x1x352xf32> to vector<1x352xf32>
    %470 = vector.broadcast %467 : f32 to vector<1x352xf32>
    %471 = arith.mulf %470, %469 : vector<1x352xf32>
    %472 = arith.addf %466, %471 : vector<1x352xf32>
    %c56 = arith.constant 56 : index
    %473 = memref.load %arg2[%c56] : memref<98xf32, #tpu.memory_space<smem>>
    %c1_234 = arith.constant 1 : index
    %c0_235 = arith.constant 0 : index
    %c22_236 = arith.constant 22 : index
    %474 = vector.load %arg4[%c1_234, %c0_235, %c22_236] : memref<2x1x506xf32, #tpu.memory_space<vmem>>, vector<1x1x352xf32>
    %475 = vector.shape_cast %474 : vector<1x1x352xf32> to vector<1x352xf32>
    %476 = vector.broadcast %473 : f32 to vector<1x352xf32>
    %477 = arith.mulf %476, %475 : vector<1x352xf32>
    %478 = arith.addf %472, %477 : vector<1x352xf32>
    %c57 = arith.constant 57 : index
    %479 = memref.load %arg2[%c57] : memref<98xf32, #tpu.memory_space<smem>>
    %c1_237 = arith.constant 1 : index
    %c0_238 = arith.constant 0 : index
    %c23_239 = arith.constant 23 : index
    %480 = vector.load %arg4[%c1_237, %c0_238, %c23_239] : memref<2x1x506xf32, #tpu.memory_space<vmem>>, vector<1x1x352xf32>
    %481 = vector.shape_cast %480 : vector<1x1x352xf32> to vector<1x352xf32>
    %482 = vector.broadcast %479 : f32 to vector<1x352xf32>
    %483 = arith.mulf %482, %481 : vector<1x352xf32>
    %484 = arith.addf %478, %483 : vector<1x352xf32>
    %c58 = arith.constant 58 : index
    %485 = memref.load %arg2[%c58] : memref<98xf32, #tpu.memory_space<smem>>
    %c1_240 = arith.constant 1 : index
    %c0_241 = arith.constant 0 : index
    %c24_242 = arith.constant 24 : index
    %486 = vector.load %arg4[%c1_240, %c0_241, %c24_242] : memref<2x1x506xf32, #tpu.memory_space<vmem>>, vector<1x1x352xf32>
    %487 = vector.shape_cast %486 : vector<1x1x352xf32> to vector<1x352xf32>
    %488 = vector.broadcast %485 : f32 to vector<1x352xf32>
    %489 = arith.mulf %488, %487 : vector<1x352xf32>
    %490 = arith.addf %484, %489 : vector<1x352xf32>
    %c59 = arith.constant 59 : index
    %491 = memref.load %arg2[%c59] : memref<98xf32, #tpu.memory_space<smem>>
    %c1_243 = arith.constant 1 : index
    %c0_244 = arith.constant 0 : index
    %c25_245 = arith.constant 25 : index
    %492 = vector.load %arg4[%c1_243, %c0_244, %c25_245] : memref<2x1x506xf32, #tpu.memory_space<vmem>>, vector<1x1x352xf32>
    %493 = vector.shape_cast %492 : vector<1x1x352xf32> to vector<1x352xf32>
    %494 = vector.broadcast %491 : f32 to vector<1x352xf32>
    %495 = arith.mulf %494, %493 : vector<1x352xf32>
    %496 = arith.addf %490, %495 : vector<1x352xf32>
    %c60 = arith.constant 60 : index
    %497 = memref.load %arg2[%c60] : memref<98xf32, #tpu.memory_space<smem>>
    %c1_246 = arith.constant 1 : index
    %c0_247 = arith.constant 0 : index
    %c26_248 = arith.constant 26 : index
    %498 = vector.load %arg4[%c1_246, %c0_247, %c26_248] : memref<2x1x506xf32, #tpu.memory_space<vmem>>, vector<1x1x352xf32>
    %499 = vector.shape_cast %498 : vector<1x1x352xf32> to vector<1x352xf32>
    %500 = vector.broadcast %497 : f32 to vector<1x352xf32>
    %501 = arith.mulf %500, %499 : vector<1x352xf32>
    %502 = arith.addf %496, %501 : vector<1x352xf32>
    %c61 = arith.constant 61 : index
    %503 = memref.load %arg2[%c61] : memref<98xf32, #tpu.memory_space<smem>>
    %c1_249 = arith.constant 1 : index
    %c0_250 = arith.constant 0 : index
    %c27_251 = arith.constant 27 : index
    %504 = vector.load %arg4[%c1_249, %c0_250, %c27_251] : memref<2x1x506xf32, #tpu.memory_space<vmem>>, vector<1x1x352xf32>
    %505 = vector.shape_cast %504 : vector<1x1x352xf32> to vector<1x352xf32>
    %506 = vector.broadcast %503 : f32 to vector<1x352xf32>
    %507 = arith.mulf %506, %505 : vector<1x352xf32>
    %508 = arith.addf %502, %507 : vector<1x352xf32>
    %c62 = arith.constant 62 : index
    %509 = memref.load %arg2[%c62] : memref<98xf32, #tpu.memory_space<smem>>
    %c1_252 = arith.constant 1 : index
    %c0_253 = arith.constant 0 : index
    %c28_254 = arith.constant 28 : index
    %510 = vector.load %arg4[%c1_252, %c0_253, %c28_254] : memref<2x1x506xf32, #tpu.memory_space<vmem>>, vector<1x1x352xf32>
    %511 = vector.shape_cast %510 : vector<1x1x352xf32> to vector<1x352xf32>
    %512 = vector.broadcast %509 : f32 to vector<1x352xf32>
    %513 = arith.mulf %512, %511 : vector<1x352xf32>
    %514 = arith.addf %508, %513 : vector<1x352xf32>
    %c63 = arith.constant 63 : index
    %515 = memref.load %arg2[%c63] : memref<98xf32, #tpu.memory_space<smem>>
    %c1_255 = arith.constant 1 : index
    %c0_256 = arith.constant 0 : index
    %c44_257 = arith.constant 44 : index
    %516 = vector.load %arg4[%c1_255, %c0_256, %c44_257] : memref<2x1x506xf32, #tpu.memory_space<vmem>>, vector<1x1x352xf32>
    %517 = vector.shape_cast %516 : vector<1x1x352xf32> to vector<1x352xf32>
    %518 = vector.broadcast %515 : f32 to vector<1x352xf32>
    %519 = arith.mulf %518, %517 : vector<1x352xf32>
    %520 = arith.addf %514, %519 : vector<1x352xf32>
    %c64 = arith.constant 64 : index
    %521 = memref.load %arg2[%c64] : memref<98xf32, #tpu.memory_space<smem>>
    %c1_258 = arith.constant 1 : index
    %c0_259 = arith.constant 0 : index
    %c45_260 = arith.constant 45 : index
    %522 = vector.load %arg4[%c1_258, %c0_259, %c45_260] : memref<2x1x506xf32, #tpu.memory_space<vmem>>, vector<1x1x352xf32>
    %523 = vector.shape_cast %522 : vector<1x1x352xf32> to vector<1x352xf32>
    %524 = vector.broadcast %521 : f32 to vector<1x352xf32>
    %525 = arith.mulf %524, %523 : vector<1x352xf32>
    %526 = arith.addf %520, %525 : vector<1x352xf32>
    %c65 = arith.constant 65 : index
    %527 = memref.load %arg2[%c65] : memref<98xf32, #tpu.memory_space<smem>>
    %c1_261 = arith.constant 1 : index
    %c0_262 = arith.constant 0 : index
    %c46_263 = arith.constant 46 : index
    %528 = vector.load %arg4[%c1_261, %c0_262, %c46_263] : memref<2x1x506xf32, #tpu.memory_space<vmem>>, vector<1x1x352xf32>
    %529 = vector.shape_cast %528 : vector<1x1x352xf32> to vector<1x352xf32>
    %530 = vector.broadcast %527 : f32 to vector<1x352xf32>
    %531 = arith.mulf %530, %529 : vector<1x352xf32>
    %532 = arith.addf %526, %531 : vector<1x352xf32>
    %c66_264 = arith.constant 66 : index
    %533 = memref.load %arg2[%c66_264] : memref<98xf32, #tpu.memory_space<smem>>
    %c1_265 = arith.constant 1 : index
    %c0_266 = arith.constant 0 : index
    %c47_267 = arith.constant 47 : index
    %534 = vector.load %arg4[%c1_265, %c0_266, %c47_267] : memref<2x1x506xf32, #tpu.memory_space<vmem>>, vector<1x1x352xf32>
    %535 = vector.shape_cast %534 : vector<1x1x352xf32> to vector<1x352xf32>
    %536 = vector.broadcast %533 : f32 to vector<1x352xf32>
    %537 = arith.mulf %536, %535 : vector<1x352xf32>
    %538 = arith.addf %532, %537 : vector<1x352xf32>
    %c67_268 = arith.constant 67 : index
    %539 = memref.load %arg2[%c67_268] : memref<98xf32, #tpu.memory_space<smem>>
    %c1_269 = arith.constant 1 : index
    %c0_270 = arith.constant 0 : index
    %c48_271 = arith.constant 48 : index
    %540 = vector.load %arg4[%c1_269, %c0_270, %c48_271] : memref<2x1x506xf32, #tpu.memory_space<vmem>>, vector<1x1x352xf32>
    %541 = vector.shape_cast %540 : vector<1x1x352xf32> to vector<1x352xf32>
    %542 = vector.broadcast %539 : f32 to vector<1x352xf32>
    %543 = arith.mulf %542, %541 : vector<1x352xf32>
    %544 = arith.addf %538, %543 : vector<1x352xf32>
    %c68_272 = arith.constant 68 : index
    %545 = memref.load %arg2[%c68_272] : memref<98xf32, #tpu.memory_space<smem>>
    %c1_273 = arith.constant 1 : index
    %c0_274 = arith.constant 0 : index
    %c49_275 = arith.constant 49 : index
    %546 = vector.load %arg4[%c1_273, %c0_274, %c49_275] : memref<2x1x506xf32, #tpu.memory_space<vmem>>, vector<1x1x352xf32>
    %547 = vector.shape_cast %546 : vector<1x1x352xf32> to vector<1x352xf32>
    %548 = vector.broadcast %545 : f32 to vector<1x352xf32>
    %549 = arith.mulf %548, %547 : vector<1x352xf32>
    %550 = arith.addf %544, %549 : vector<1x352xf32>
    %c69_276 = arith.constant 69 : index
    %551 = memref.load %arg2[%c69_276] : memref<98xf32, #tpu.memory_space<smem>>
    %c1_277 = arith.constant 1 : index
    %c0_278 = arith.constant 0 : index
    %c50_279 = arith.constant 50 : index
    %552 = vector.load %arg4[%c1_277, %c0_278, %c50_279] : memref<2x1x506xf32, #tpu.memory_space<vmem>>, vector<1x1x352xf32>
    %553 = vector.shape_cast %552 : vector<1x1x352xf32> to vector<1x352xf32>
    %554 = vector.broadcast %551 : f32 to vector<1x352xf32>
    %555 = arith.mulf %554, %553 : vector<1x352xf32>
    %556 = arith.addf %550, %555 : vector<1x352xf32>
    %c70_280 = arith.constant 70 : index
    %557 = memref.load %arg2[%c70_280] : memref<98xf32, #tpu.memory_space<smem>>
    %c1_281 = arith.constant 1 : index
    %c0_282 = arith.constant 0 : index
    %c66_283 = arith.constant 66 : index
    %558 = vector.load %arg4[%c1_281, %c0_282, %c66_283] : memref<2x1x506xf32, #tpu.memory_space<vmem>>, vector<1x1x352xf32>
    %559 = vector.shape_cast %558 : vector<1x1x352xf32> to vector<1x352xf32>
    %560 = vector.broadcast %557 : f32 to vector<1x352xf32>
    %561 = arith.mulf %560, %559 : vector<1x352xf32>
    %562 = arith.addf %556, %561 : vector<1x352xf32>
    %c71_284 = arith.constant 71 : index
    %563 = memref.load %arg2[%c71_284] : memref<98xf32, #tpu.memory_space<smem>>
    %c1_285 = arith.constant 1 : index
    %c0_286 = arith.constant 0 : index
    %c67_287 = arith.constant 67 : index
    %564 = vector.load %arg4[%c1_285, %c0_286, %c67_287] : memref<2x1x506xf32, #tpu.memory_space<vmem>>, vector<1x1x352xf32>
    %565 = vector.shape_cast %564 : vector<1x1x352xf32> to vector<1x352xf32>
    %566 = vector.broadcast %563 : f32 to vector<1x352xf32>
    %567 = arith.mulf %566, %565 : vector<1x352xf32>
    %568 = arith.addf %562, %567 : vector<1x352xf32>
    %c72_288 = arith.constant 72 : index
    %569 = memref.load %arg2[%c72_288] : memref<98xf32, #tpu.memory_space<smem>>
    %c1_289 = arith.constant 1 : index
    %c0_290 = arith.constant 0 : index
    %c68_291 = arith.constant 68 : index
    %570 = vector.load %arg4[%c1_289, %c0_290, %c68_291] : memref<2x1x506xf32, #tpu.memory_space<vmem>>, vector<1x1x352xf32>
    %571 = vector.shape_cast %570 : vector<1x1x352xf32> to vector<1x352xf32>
    %572 = vector.broadcast %569 : f32 to vector<1x352xf32>
    %573 = arith.mulf %572, %571 : vector<1x352xf32>
    %574 = arith.addf %568, %573 : vector<1x352xf32>
    %c73 = arith.constant 73 : index
    %575 = memref.load %arg2[%c73] : memref<98xf32, #tpu.memory_space<smem>>
    %c1_292 = arith.constant 1 : index
    %c0_293 = arith.constant 0 : index
    %c69_294 = arith.constant 69 : index
    %576 = vector.load %arg4[%c1_292, %c0_293, %c69_294] : memref<2x1x506xf32, #tpu.memory_space<vmem>>, vector<1x1x352xf32>
    %577 = vector.shape_cast %576 : vector<1x1x352xf32> to vector<1x352xf32>
    %578 = vector.broadcast %575 : f32 to vector<1x352xf32>
    %579 = arith.mulf %578, %577 : vector<1x352xf32>
    %580 = arith.addf %574, %579 : vector<1x352xf32>
    %c74 = arith.constant 74 : index
    %581 = memref.load %arg2[%c74] : memref<98xf32, #tpu.memory_space<smem>>
    %c1_295 = arith.constant 1 : index
    %c0_296 = arith.constant 0 : index
    %c70_297 = arith.constant 70 : index
    %582 = vector.load %arg4[%c1_295, %c0_296, %c70_297] : memref<2x1x506xf32, #tpu.memory_space<vmem>>, vector<1x1x352xf32>
    %583 = vector.shape_cast %582 : vector<1x1x352xf32> to vector<1x352xf32>
    %584 = vector.broadcast %581 : f32 to vector<1x352xf32>
    %585 = arith.mulf %584, %583 : vector<1x352xf32>
    %586 = arith.addf %580, %585 : vector<1x352xf32>
    %c75 = arith.constant 75 : index
    %587 = memref.load %arg2[%c75] : memref<98xf32, #tpu.memory_space<smem>>
    %c1_298 = arith.constant 1 : index
    %c0_299 = arith.constant 0 : index
    %c71_300 = arith.constant 71 : index
    %588 = vector.load %arg4[%c1_298, %c0_299, %c71_300] : memref<2x1x506xf32, #tpu.memory_space<vmem>>, vector<1x1x352xf32>
    %589 = vector.shape_cast %588 : vector<1x1x352xf32> to vector<1x352xf32>
    %590 = vector.broadcast %587 : f32 to vector<1x352xf32>
    %591 = arith.mulf %590, %589 : vector<1x352xf32>
    %592 = arith.addf %586, %591 : vector<1x352xf32>
    %c76 = arith.constant 76 : index
    %593 = memref.load %arg2[%c76] : memref<98xf32, #tpu.memory_space<smem>>
    %c1_301 = arith.constant 1 : index
    %c0_302 = arith.constant 0 : index
    %c72_303 = arith.constant 72 : index
    %594 = vector.load %arg4[%c1_301, %c0_302, %c72_303] : memref<2x1x506xf32, #tpu.memory_space<vmem>>, vector<1x1x352xf32>
    %595 = vector.shape_cast %594 : vector<1x1x352xf32> to vector<1x352xf32>
    %596 = vector.broadcast %593 : f32 to vector<1x352xf32>
    %597 = arith.mulf %596, %595 : vector<1x352xf32>
    %598 = arith.addf %592, %597 : vector<1x352xf32>
    %c77 = arith.constant 77 : index
    %599 = memref.load %arg2[%c77] : memref<98xf32, #tpu.memory_space<smem>>
    %c1_304 = arith.constant 1 : index
    %c0_305 = arith.constant 0 : index
    %c88_306 = arith.constant 88 : index
    %600 = vector.load %arg4[%c1_304, %c0_305, %c88_306] : memref<2x1x506xf32, #tpu.memory_space<vmem>>, vector<1x1x352xf32>
    %601 = vector.shape_cast %600 : vector<1x1x352xf32> to vector<1x352xf32>
    %602 = vector.broadcast %599 : f32 to vector<1x352xf32>
    %603 = arith.mulf %602, %601 : vector<1x352xf32>
    %604 = arith.addf %598, %603 : vector<1x352xf32>
    %c78 = arith.constant 78 : index
    %605 = memref.load %arg2[%c78] : memref<98xf32, #tpu.memory_space<smem>>
    %c1_307 = arith.constant 1 : index
    %c0_308 = arith.constant 0 : index
    %c89_309 = arith.constant 89 : index
    %606 = vector.load %arg4[%c1_307, %c0_308, %c89_309] : memref<2x1x506xf32, #tpu.memory_space<vmem>>, vector<1x1x352xf32>
    %607 = vector.shape_cast %606 : vector<1x1x352xf32> to vector<1x352xf32>
    %608 = vector.broadcast %605 : f32 to vector<1x352xf32>
    %609 = arith.mulf %608, %607 : vector<1x352xf32>
    %610 = arith.addf %604, %609 : vector<1x352xf32>
    %c79 = arith.constant 79 : index
    %611 = memref.load %arg2[%c79] : memref<98xf32, #tpu.memory_space<smem>>
    %c1_310 = arith.constant 1 : index
    %c0_311 = arith.constant 0 : index
    %c90_312 = arith.constant 90 : index
    %612 = vector.load %arg4[%c1_310, %c0_311, %c90_312] : memref<2x1x506xf32, #tpu.memory_space<vmem>>, vector<1x1x352xf32>
    %613 = vector.shape_cast %612 : vector<1x1x352xf32> to vector<1x352xf32>
    %614 = vector.broadcast %611 : f32 to vector<1x352xf32>
    %615 = arith.mulf %614, %613 : vector<1x352xf32>
    %616 = arith.addf %610, %615 : vector<1x352xf32>
    %c80 = arith.constant 80 : index
    %617 = memref.load %arg2[%c80] : memref<98xf32, #tpu.memory_space<smem>>
    %c1_313 = arith.constant 1 : index
    %c0_314 = arith.constant 0 : index
    %c91_315 = arith.constant 91 : index
    %618 = vector.load %arg4[%c1_313, %c0_314, %c91_315] : memref<2x1x506xf32, #tpu.memory_space<vmem>>, vector<1x1x352xf32>
    %619 = vector.shape_cast %618 : vector<1x1x352xf32> to vector<1x352xf32>
    %620 = vector.broadcast %617 : f32 to vector<1x352xf32>
    %621 = arith.mulf %620, %619 : vector<1x352xf32>
    %622 = arith.addf %616, %621 : vector<1x352xf32>
    %c81 = arith.constant 81 : index
    %623 = memref.load %arg2[%c81] : memref<98xf32, #tpu.memory_space<smem>>
    %c1_316 = arith.constant 1 : index
    %c0_317 = arith.constant 0 : index
    %c92_318 = arith.constant 92 : index
    %624 = vector.load %arg4[%c1_316, %c0_317, %c92_318] : memref<2x1x506xf32, #tpu.memory_space<vmem>>, vector<1x1x352xf32>
    %625 = vector.shape_cast %624 : vector<1x1x352xf32> to vector<1x352xf32>
    %626 = vector.broadcast %623 : f32 to vector<1x352xf32>
    %627 = arith.mulf %626, %625 : vector<1x352xf32>
    %628 = arith.addf %622, %627 : vector<1x352xf32>
    %c82 = arith.constant 82 : index
    %629 = memref.load %arg2[%c82] : memref<98xf32, #tpu.memory_space<smem>>
    %c1_319 = arith.constant 1 : index
    %c0_320 = arith.constant 0 : index
    %c93_321 = arith.constant 93 : index
    %630 = vector.load %arg4[%c1_319, %c0_320, %c93_321] : memref<2x1x506xf32, #tpu.memory_space<vmem>>, vector<1x1x352xf32>
    %631 = vector.shape_cast %630 : vector<1x1x352xf32> to vector<1x352xf32>
    %632 = vector.broadcast %629 : f32 to vector<1x352xf32>
    %633 = arith.mulf %632, %631 : vector<1x352xf32>
    %634 = arith.addf %628, %633 : vector<1x352xf32>
    %c83 = arith.constant 83 : index
    %635 = memref.load %arg2[%c83] : memref<98xf32, #tpu.memory_space<smem>>
    %c1_322 = arith.constant 1 : index
    %c0_323 = arith.constant 0 : index
    %c94_324 = arith.constant 94 : index
    %636 = vector.load %arg4[%c1_322, %c0_323, %c94_324] : memref<2x1x506xf32, #tpu.memory_space<vmem>>, vector<1x1x352xf32>
    %637 = vector.shape_cast %636 : vector<1x1x352xf32> to vector<1x352xf32>
    %638 = vector.broadcast %635 : f32 to vector<1x352xf32>
    %639 = arith.mulf %638, %637 : vector<1x352xf32>
    %640 = arith.addf %634, %639 : vector<1x352xf32>
    %c84 = arith.constant 84 : index
    %641 = memref.load %arg2[%c84] : memref<98xf32, #tpu.memory_space<smem>>
    %c1_325 = arith.constant 1 : index
    %c0_326 = arith.constant 0 : index
    %c110_327 = arith.constant 110 : index
    %642 = vector.load %arg4[%c1_325, %c0_326, %c110_327] : memref<2x1x506xf32, #tpu.memory_space<vmem>>, vector<1x1x352xf32>
    %643 = vector.shape_cast %642 : vector<1x1x352xf32> to vector<1x352xf32>
    %644 = vector.broadcast %641 : f32 to vector<1x352xf32>
    %645 = arith.mulf %644, %643 : vector<1x352xf32>
    %646 = arith.addf %640, %645 : vector<1x352xf32>
    %c85 = arith.constant 85 : index
    %647 = memref.load %arg2[%c85] : memref<98xf32, #tpu.memory_space<smem>>
    %c1_328 = arith.constant 1 : index
    %c0_329 = arith.constant 0 : index
    %c111_330 = arith.constant 111 : index
    %648 = vector.load %arg4[%c1_328, %c0_329, %c111_330] : memref<2x1x506xf32, #tpu.memory_space<vmem>>, vector<1x1x352xf32>
    %649 = vector.shape_cast %648 : vector<1x1x352xf32> to vector<1x352xf32>
    %650 = vector.broadcast %647 : f32 to vector<1x352xf32>
    %651 = arith.mulf %650, %649 : vector<1x352xf32>
    %652 = arith.addf %646, %651 : vector<1x352xf32>
    %c86 = arith.constant 86 : index
    %653 = memref.load %arg2[%c86] : memref<98xf32, #tpu.memory_space<smem>>
    %c1_331 = arith.constant 1 : index
    %c0_332 = arith.constant 0 : index
    %c112_333 = arith.constant 112 : index
    %654 = vector.load %arg4[%c1_331, %c0_332, %c112_333] : memref<2x1x506xf32, #tpu.memory_space<vmem>>, vector<1x1x352xf32>
    %655 = vector.shape_cast %654 : vector<1x1x352xf32> to vector<1x352xf32>
    %656 = vector.broadcast %653 : f32 to vector<1x352xf32>
    %657 = arith.mulf %656, %655 : vector<1x352xf32>
    %658 = arith.addf %652, %657 : vector<1x352xf32>
    %c87 = arith.constant 87 : index
    %659 = memref.load %arg2[%c87] : memref<98xf32, #tpu.memory_space<smem>>
    %c1_334 = arith.constant 1 : index
    %c0_335 = arith.constant 0 : index
    %c113_336 = arith.constant 113 : index
    %660 = vector.load %arg4[%c1_334, %c0_335, %c113_336] : memref<2x1x506xf32, #tpu.memory_space<vmem>>, vector<1x1x352xf32>
    %661 = vector.shape_cast %660 : vector<1x1x352xf32> to vector<1x352xf32>
    %662 = vector.broadcast %659 : f32 to vector<1x352xf32>
    %663 = arith.mulf %662, %661 : vector<1x352xf32>
    %664 = arith.addf %658, %663 : vector<1x352xf32>
    %c88_337 = arith.constant 88 : index
    %665 = memref.load %arg2[%c88_337] : memref<98xf32, #tpu.memory_space<smem>>
    %c1_338 = arith.constant 1 : index
    %c0_339 = arith.constant 0 : index
    %c114_340 = arith.constant 114 : index
    %666 = vector.load %arg4[%c1_338, %c0_339, %c114_340] : memref<2x1x506xf32, #tpu.memory_space<vmem>>, vector<1x1x352xf32>
    %667 = vector.shape_cast %666 : vector<1x1x352xf32> to vector<1x352xf32>
    %668 = vector.broadcast %665 : f32 to vector<1x352xf32>
    %669 = arith.mulf %668, %667 : vector<1x352xf32>
    %670 = arith.addf %664, %669 : vector<1x352xf32>
    %c89_341 = arith.constant 89 : index
    %671 = memref.load %arg2[%c89_341] : memref<98xf32, #tpu.memory_space<smem>>
    %c1_342 = arith.constant 1 : index
    %c0_343 = arith.constant 0 : index
    %c115_344 = arith.constant 115 : index
    %672 = vector.load %arg4[%c1_342, %c0_343, %c115_344] : memref<2x1x506xf32, #tpu.memory_space<vmem>>, vector<1x1x352xf32>
    %673 = vector.shape_cast %672 : vector<1x1x352xf32> to vector<1x352xf32>
    %674 = vector.broadcast %671 : f32 to vector<1x352xf32>
    %675 = arith.mulf %674, %673 : vector<1x352xf32>
    %676 = arith.addf %670, %675 : vector<1x352xf32>
    %c90_345 = arith.constant 90 : index
    %677 = memref.load %arg2[%c90_345] : memref<98xf32, #tpu.memory_space<smem>>
    %c1_346 = arith.constant 1 : index
    %c0_347 = arith.constant 0 : index
    %c116_348 = arith.constant 116 : index
    %678 = vector.load %arg4[%c1_346, %c0_347, %c116_348] : memref<2x1x506xf32, #tpu.memory_space<vmem>>, vector<1x1x352xf32>
    %679 = vector.shape_cast %678 : vector<1x1x352xf32> to vector<1x352xf32>
    %680 = vector.broadcast %677 : f32 to vector<1x352xf32>
    %681 = arith.mulf %680, %679 : vector<1x352xf32>
    %682 = arith.addf %676, %681 : vector<1x352xf32>
    %c91_349 = arith.constant 91 : index
    %683 = memref.load %arg2[%c91_349] : memref<98xf32, #tpu.memory_space<smem>>
    %c1_350 = arith.constant 1 : index
    %c0_351 = arith.constant 0 : index
    %c132_352 = arith.constant 132 : index
    %684 = vector.load %arg4[%c1_350, %c0_351, %c132_352] : memref<2x1x506xf32, #tpu.memory_space<vmem>>, vector<1x1x352xf32>
    %685 = vector.shape_cast %684 : vector<1x1x352xf32> to vector<1x352xf32>
    %686 = vector.broadcast %683 : f32 to vector<1x352xf32>
    %687 = arith.mulf %686, %685 : vector<1x352xf32>
    %688 = arith.addf %682, %687 : vector<1x352xf32>
    %c92_353 = arith.constant 92 : index
    %689 = memref.load %arg2[%c92_353] : memref<98xf32, #tpu.memory_space<smem>>
    %c1_354 = arith.constant 1 : index
    %c0_355 = arith.constant 0 : index
    %c133_356 = arith.constant 133 : index
    %690 = vector.load %arg4[%c1_354, %c0_355, %c133_356] : memref<2x1x506xf32, #tpu.memory_space<vmem>>, vector<1x1x352xf32>
    %691 = vector.shape_cast %690 : vector<1x1x352xf32> to vector<1x352xf32>
    %692 = vector.broadcast %689 : f32 to vector<1x352xf32>
    %693 = arith.mulf %692, %691 : vector<1x352xf32>
    %694 = arith.addf %688, %693 : vector<1x352xf32>
    %c93_357 = arith.constant 93 : index
    %695 = memref.load %arg2[%c93_357] : memref<98xf32, #tpu.memory_space<smem>>
    %c1_358 = arith.constant 1 : index
    %c0_359 = arith.constant 0 : index
    %c134_360 = arith.constant 134 : index
    %696 = vector.load %arg4[%c1_358, %c0_359, %c134_360] : memref<2x1x506xf32, #tpu.memory_space<vmem>>, vector<1x1x352xf32>
    %697 = vector.shape_cast %696 : vector<1x1x352xf32> to vector<1x352xf32>
    %698 = vector.broadcast %695 : f32 to vector<1x352xf32>
    %699 = arith.mulf %698, %697 : vector<1x352xf32>
    %700 = arith.addf %694, %699 : vector<1x352xf32>
    %c94_361 = arith.constant 94 : index
    %701 = memref.load %arg2[%c94_361] : memref<98xf32, #tpu.memory_space<smem>>
    %c1_362 = arith.constant 1 : index
    %c0_363 = arith.constant 0 : index
    %c135_364 = arith.constant 135 : index
    %702 = vector.load %arg4[%c1_362, %c0_363, %c135_364] : memref<2x1x506xf32, #tpu.memory_space<vmem>>, vector<1x1x352xf32>
    %703 = vector.shape_cast %702 : vector<1x1x352xf32> to vector<1x352xf32>
    %704 = vector.broadcast %701 : f32 to vector<1x352xf32>
    %705 = arith.mulf %704, %703 : vector<1x352xf32>
    %706 = arith.addf %700, %705 : vector<1x352xf32>
    %c95 = arith.constant 95 : index
    %707 = memref.load %arg2[%c95] : memref<98xf32, #tpu.memory_space<smem>>
    %c1_365 = arith.constant 1 : index
    %c0_366 = arith.constant 0 : index
    %c136_367 = arith.constant 136 : index
    %708 = vector.load %arg4[%c1_365, %c0_366, %c136_367] : memref<2x1x506xf32, #tpu.memory_space<vmem>>, vector<1x1x352xf32>
    %709 = vector.shape_cast %708 : vector<1x1x352xf32> to vector<1x352xf32>
    %710 = vector.broadcast %707 : f32 to vector<1x352xf32>
    %711 = arith.mulf %710, %709 : vector<1x352xf32>
    %712 = arith.addf %706, %711 : vector<1x352xf32>
    %c96 = arith.constant 96 : index
    %713 = memref.load %arg2[%c96] : memref<98xf32, #tpu.memory_space<smem>>
    %c1_368 = arith.constant 1 : index
    %c0_369 = arith.constant 0 : index
    %c137_370 = arith.constant 137 : index
    %714 = vector.load %arg4[%c1_368, %c0_369, %c137_370] : memref<2x1x506xf32, #tpu.memory_space<vmem>>, vector<1x1x352xf32>
    %715 = vector.shape_cast %714 : vector<1x1x352xf32> to vector<1x352xf32>
    %716 = vector.broadcast %713 : f32 to vector<1x352xf32>
    %717 = arith.mulf %716, %715 : vector<1x352xf32>
    %718 = arith.addf %712, %717 : vector<1x352xf32>
    %c97 = arith.constant 97 : index
    %719 = memref.load %arg2[%c97] : memref<98xf32, #tpu.memory_space<smem>>
    %c1_371 = arith.constant 1 : index
    %c0_372 = arith.constant 0 : index
    %c138_373 = arith.constant 138 : index
    %720 = vector.load %arg4[%c1_371, %c0_372, %c138_373] : memref<2x1x506xf32, #tpu.memory_space<vmem>>, vector<1x1x352xf32>
    %721 = vector.shape_cast %720 : vector<1x1x352xf32> to vector<1x352xf32>
    %722 = vector.broadcast %719 : f32 to vector<1x352xf32>
    %723 = arith.mulf %722, %721 : vector<1x352xf32>
    %724 = arith.addf %718, %723 : vector<1x352xf32>
    %725 = arith.negf %724 : vector<1x352xf32>
    %726 = math.exp %725 : vector<1x352xf32>
    %cst_374 = arith.constant 1.000000e+00 : f32
    %727 = vector.broadcast %cst_374 : f32 to vector<1x352xf32>
    %728 = arith.addf %727, %726 : vector<1x352xf32>
    %729 = arith.divf %727, %728 : vector<1x352xf32>
    %c0_375 = arith.constant 0 : index
    %c0_376 = arith.constant 0 : index
    %c0_377 = arith.constant 0 : index
    %730 = vector.load %arg3[%c0_375, %c0_376, %c0_377] : memref<1x1x352xf32, #tpu.memory_space<vmem>>, vector<1x1x352xf32>
    %731 = vector.shape_cast %730 : vector<1x1x352xf32> to vector<1x352xf32>
    %732 = vector.shape_cast %729 : vector<1x352xf32> to vector<1x1x352xf32>
    tpu.vector_store %arg3[%c0_375, %c0_376, %c0_377], %732 {strides = array<i32>} : memref<1x1x352xf32, #tpu.memory_space<vmem>>, vector<1x1x352xf32>,
    return
  }
  func.func @transform_0(%arg0: i32) -> (i32, i32, i32) {
    %c0_i32 = arith.constant 0 : i32
    %c0_i32_0 = arith.constant 0 : i32
    %c0_i32_1 = arith.constant 0 : i32
    return %arg0, %c0_i32, %c0_i32_0 : i32, i32, i32
  }
  func.func @transform_1(%arg0: i32) -> i32 {
    %c0_i32 = arith.constant 0 : i32
    %c0_i32_0 = arith.constant 0 : i32
    return %c0_i32 : i32
  }
  func.func @transform_2(%arg0: i32) -> (i32, i32, i32) {
    %c0_i32 = arith.constant 0 : i32
    %c0_i32_0 = arith.constant 0 : i32
    %c0_i32_1 = arith.constant 0 : i32
    return %arg0, %c0_i32, %c0_i32_0 : i32, i32, i32
  }
}

</mosaic_0001>

<bundles_post_ra>
// kernel: tpu_custom_call.1
= control target key start
LH: loop header
LB: loop body
LE: loop exit
PB: predicated region body
PF: predicated region fallthrough
CT: control target
= control target key end

     0   :  { %7 = vsyncpa [#allocation4], 0  ;;  %s3130_s0 = inlined_call_operand.hbm [shape: f32[2,4,256], index: 0, kind: input, shape index: {}]   ;;  %s3131_s1 = inlined_call_operand.vmem [shape: f32[98], index: 1, kind: input, shape index: {}]   ;;  %s3132_s2 = inlined_call_operand.hbm [shape: f32[2,1,352], index: 2, kind: output, shape index: {}]  }
   0x1   :  { %9 = vsyncpa [#allocation4 + $0x1], 0 }
   0x2   :  { %10 = vsyncpa [#allocation6], 0 }
   0x3   :  { %11 = vsyncpa [#allocation5], 0 }
   0x4   :  { %13 = vsyncpa [#allocation5 + $0x1], 0  ;;  %s2057_s9 = smov 0   ;;  %s2059_s10 = smov 0  }
   0x5   :  { %s2061_s11 = smov 0   ;;  %s2063_s12 = smov 0  }
   0x6 LB: > { %s2078_s13 = sadd.s32 4294967295, %s1963_s12   ;;  %s1576_s14 = sadd.s32 4294967294, %s1963_s12   ;;  %s1963_s12 = sphi %s2063_s12, %s3457_s12   ;;  %s1959_s11 = sphi %s2061_s11, %s3456_s11   ;;  %s1955_s10 = sphi %s2059_s10, %s3455_s10   ;;  %s1951_s9 = sphi %s2057_s9, %s3454_s9  }
   0x7   : > { %p39_p0 = scmp.ne.s32.totalorder %s1955_s10, %s1951_s9  ;;  %p3133_p1 = scmp.eq.s32.totalorder %s2078_s13, 0 }
   0x8   : > { %p90_p3 = scmp.eq.s32.totalorder %s1576_s14, 1  ;;  %p1577_p5 = scmp.ge.s32.totalorder %s1963_s12, 1 }
   0x9   : > { %p2087_p4 = por %p3133_p1, %p39_p0  ;;  %p97_p7 = scmp.lt.s32.totalorder %s1963_s12, 3 }
   0xa   : > { %p2092_p6 = por %p90_p3, %p39_p0  ;;  %s110_s19 = sshll.u32 %s3131_s1, 4  ;;  %s111_s19 = int_to_ptr.vmem [resolvable:$true] %s110_s19 }
   0xb   : > { %s3253_s15 = scalar_select %p2087_p4, 1, 0 }
   0xc   : > { %s3254_s16 = scalar_select %p2092_p6, 1, 0 }
   0xd   : > { %p2100_p8 = pnand %p1577_p5, %p97_p7  ;;  %s2108_s21 = sadd.s32 1, %s1963_s12  }
   0xe   : > { %s23_s23 = ssub.s32 %s1963_s12, %s2108_s21  ;;  %s26_s25 = sadd.s32 1, %s1959_s11 }
   0xf   : > { %s3255_s20 = scalar_select %p2100_p8, 1, 0 }
  0x10   : > { %p1701_p10 = pneg %p2100_p8  ;;  %p2118_p12 = scmp.eq.s32.totalorder %s23_s23, 0 }
  0x11   : > { %p33_p13 = scmp.ne.s32.totalorder %s1959_s11, %s1955_s10  ;;  %s1840_s26 = scalar_lea.vmem %s111_s19, 16 }
  0x12   : > { %p2112_p11 = pnand %p1701_p10, %p3133_p1  ;;  %p1841_p0 = scmp.ne.s32.totalorder %s111_s19, %s1840_s26 }
  0x13   : > { %p1848_p9 = scmp.lt.s32.totalorder %s111_s19, %s111_s19  ;;  %p1849_p2 = scmp.lt.s32.totalorder %s1840_s26, %s1840_s26 }
  0x14   : > { %p1842_p3 = pneg %p2112_p11 }
  0x15   : > { %p1850_p10 = por %p1849_p2, %p1848_p9 }
  0x16   : > { %p1843_p5 = pnand %p1842_p3, %p1841_p0 }
  0x18   : > { %p1844_p7 = pneg %p1843_p5 }
  0x1a   : > { %p1851_p1 = pnand %p1850_p10, %p1844_p7 }
  0x1c   : > { %1854 = shalt.err (!%p1851_p1)
}
  0x1d   : > { %s1977_s27 = smov [#allocation7]   ;;  %p34_p2 = scmp.eq.s32.totalorder %s1963_s12, 0 }
  0x1e   : > { %1704 = dma.vmem_to_smem (!%p2112_p11), %s111_s19, 16, %s1977_s27, [#allocation6]  }
  0x1f   : > { %s2132_s28 = scalar_select %p2118_p12, %s1959_s11, %s26_s25  }
  0x20   : > { %p3258_p1 = scmp.eq.s32.totalorder %s2078_s13, 1  ;;  %p1714_p0 = scmp.lt.s32.totalorder %s1963_s12, 2 }
  0x21   : > { %s121_s30 = sand.u32 1, %s1959_s11   ;;  %p35_p3 = por %p34_p2, %p33_p13 }
  0x22   : > { %p2140_p9 = por %p3258_p1, %p33_p13  ;;  %s1580_s3 = sshll.u32 %s121_s30, 3 }
  0x23   : > { %s1689_s4 = sshll.u32 %s1963_s12, 7  ;;  %s125_s8 = scalar_lea.vmem [#allocation3], %s1580_s3 }
  0x24   : > { %s3259_s29 = scalar_select %p2140_p9, 1, 0 }
  0x25   : > { %s2153_s7 = scalar_lea.hbm %s3130_s0, %s1689_s4  ;;  %s133_s14 = sshll.u32 %s125_s8, 4  ;;  %s134_s14 = int_to_ptr.vmem [resolvable:$true] %s133_s14 }
  0x26   : > { %p2155_p11 = pnand %p1714_p0, %p35_p3  ;;  %s122_s18 = scalar_lea.sflag [#allocation4], %s121_s30 }
  0x27   : > { %s1855_s19 = scalar_lea.hbm %s2153_s7, 128  ;;  %s1860_s24 = scalar_lea.hbm %s3130_s0, 256 }
  0x28   : > { %p1856_p12 = scmp.ne.s32.totalorder %s2153_s7, %s1855_s19  ;;  %p1857_p13 = pneg %p2155_p11 }
  0x29   : > { %p1861_p10 = scmp.lt.s32.totalorder %s2153_s7, %s3130_s0  ;;  %p1862_p2 = scmp.lt.s32.totalorder %s1860_s24, %s1855_s19 }
  0x2a   : > { %p1858_p5 = pnand %p1857_p13, %p1856_p12 }
  0x2b   : > { %p1863_p1 = por %p1862_p2, %p1861_p10 }
  0x2c   : > { %p1859_p7 = pneg %p1858_p5 }
  0x2e   : > { %p1864_p0 = pnand %p1863_p1, %p1859_p7 }
  0x30   : > { %1867 = shalt.err (!%p1864_p0)
}
  0x31   : > { %s1868_s27 = scalar_lea.vmem %s134_s14, 128  ;;  %s1978_s30 = smov [#allocation3]  }
  0x32   : > { %p1869_p3 = scmp.ne.s32.totalorder %s134_s14, %s1868_s27  ;;  %s1873_s3 = sshll.u32 %s1978_s30, 4  ;;  %s1874_s3 = int_to_ptr.vmem [resolvable:$false] %s1873_s3 }
  0x33   : > { %s1875_s4 = scalar_lea.vmem %s1874_s3, 256  ;;  %p1876_p12 = scmp.lt.s32.totalorder %s134_s14, %s1874_s3 }
  0x34   : > { %p1871_p6 = pnand %p1869_p3, %p1857_p13  ;;  %p1877_p5 = scmp.lt.s32.totalorder %s1875_s4, %s1868_s27 }
  0x36   : > { %p1872_p9 = pneg %p1871_p6  ;;  %p1878_p4 = por %p1877_p5, %p1876_p12 }
  0x38   : > { %p1879_p8 = pnand %p1878_p4, %p1872_p9 }
  0x3a   : > { %1882 = shalt.err (!%p1879_p8)
}
  0x3b   : > { %1708 = dma.hbm_to_vmem [thread:$0]  (!%p2155_p11), %s2153_s7, 128, %s134_s14, %s122_s18  }
  0x3c   : > { %p3261_p7 = scmp.ne.s32.totalorder %s3255_s20, 0 }
  0x3d   : > { %s2176_s5 = sand.u32 (!%p3261_p7), 1, %s1955_s10   ;;  %p3262_p6 = scmp.ne.s32.totalorder (!%p3261_p7), %s3253_s15, 0 }
  0x3e   : > { %142 = sbr.rel (%p3261_p7) target bundleno = 762 (0x2fa), region = 28  ;;  %s1584_s6 = sshll.u32 (!%p3261_p7), %s2176_s5, 3 }
  0x3f   : > { %s145_s8 = scalar_lea.sflag (!%p3261_p7), [#allocation4], %s2176_s5  ;;  %s2180_s19 = scalar_lea.vmem (!%p3261_p7), [#allocation3], %s1584_s6 }
  0x43   : > { %1938 = dma.done.wait (%p3262_p6), %s145_s8, 128  }
  0x44   : > { %1940 = vsyncadd (%p3262_p6), %s145_s8, 4294967168  ;;  %p3263_p4 = scmp.eq.s32.totalorder %s2078_s13, 0 }
  0x46   : > { %1942 = dma.done.wait (%p3263_p4), [#allocation6], 16   ;;  %p3264_p8 = pmov %p3263_p4 }
  0x48   : > { %1944 = vsyncadd (%p3264_p8), [#allocation6], 4294967280 }
  0x49   : > { %157 = sfence }
  0x4a   : > { %s1691_s20 = smul.u32 3, %s2176_s5  ;;  %v174_v0 = vld [vmem:[%s2180_s19] ss:$4 sm:$0x3]   ;;  %s1973_s14 = smov 1  }
  0x4b   : > { %v1965_v1 = vmov %v174_v0   ;;  %v1969_v2 = vmov %v174_v0  }
  0x4c   : > { %s2192_s7 = scalar_lea.vmem [#allocation8], %s1691_s20 }
  0x4d LB: >> { %s183_s15 = sshra.s32 %s1975_s14, 2  ;;  %s186_s17 = sand.u32 3, %s1975_s14  ;;  %s1975_s14 = sphi %s1973_s14, %s180_s14   ;;  %v1971_v2 = vphi %v1969_v2, %v1970_v2   ;;  %v1967_v1 = vphi %v1965_v1, %v1966_v1  }
  0x4e   : >> { %s1690_s18 = sshll.u32 %s183_s15, 3  ;;  %s180_s14 = sadd.s32 1, %s1975_s14  }
  0x4f   : >> { %s189_s22 = sadd.s32 %s1690_s18, %s186_s17  ;;  %p177_p9 = scmp.ge.s32.totalorder %s180_s14, 4  }
  0x50   : >> { %s190_s23 = scalar_lea.vmem %s2180_s19, %s189_s22 [#allocation3]  ;;  %s1979_s24 = smov (%p177_p9), 112   ;;  %v195_v7 = vlaneseq (%p177_p9)  ;;  %v1991_v9 = vmov (%p177_p9), 0.0   ;;  %vm3143_vm5 = vcmask (%p177_p9), 662528   ;;  %v3276_v30 = vmov (%p177_p9), 0 }
  0x51   : >> { %v191_v3 = vld [vmem:[%s190_s23] ss:$4 sm:$0x3]  ;;  %179 = sbr.rel (!%p177_p9) target bundleno = 77 (0x4d), region = 87  ;;  %s3196_s25 = smov (%p177_p9), 80   ;;  %v3278_v32 = vmov (%p177_p9), 0 }
  0x52   : >> { %v192_v4 = vadd.f32 %v1971_v2, %v191_v3   ;;  %v2195_v1 = vmax.f32 %v1967_v1, %v191_v3   ;;  %s1981_s26 = smov (%p177_p9), 96   ;;  %s1982_s27 = smov (%p177_p9), 32   ;;  %vm197_vm0 = vcmp.lt.s32.totalorder (%p177_p9), %v195_v7, 506  ;;  %vm2221_vm1 = vcmp.ge.s32.totalorder (%p177_p9), %v195_v7, 69 }
  0x53   : > { %s1983_s30 = smov (%p177_p9), 64   ;;  %s1984_s3 = smov (%p177_p9), 48   ;;  %199 = vst.msk [vmem:[#allocation2] sm:$0xf] (%p177_p9), %vm197_vm0, %v1991_v9  ;;  %200 = vst.msk [vmem:[#allocation2 + $0x4] sm:$0xf] (%p177_p9), %vm197_vm0, %v1991_v9 }
  0x54   : >> { %v3265_v5 = vmov %v2195_v1  ;;  %v1970_v2 = vmov %v192_v4   ;;  %v194_v6 = vmul.f32 (%p177_p9), 0.25, %v192_v4  ;;  %s3213_s4 = smov (%p177_p9), 16   ;;  %s1986_s6 = smov (%p177_p9), 81   ;;  %vm2226_vm2 = vcmp.lt.s32.totalorder (%p177_p9), %v195_v7, 85 }
  0x55   : >> { %v1966_v1 = vmov %v3265_v5   ;;  %s1987_s8 = smov (%p177_p9), 69   ;;  %s1988_s19 = smov (%p177_p9), 75   ;;  %vm2231_vm3 = vcmp.ge.s32.totalorder (%p177_p9), %v195_v7, 91  ;;  %vm2236_vm4 = vcmp.lt.s32.totalorder (%p177_p9), %v195_v7, 107  ;;  %vm2241_vm6 = vcmp.ge.s32.totalorder (%p177_p9), %v195_v7, 113  ;;  %vm3145_vm8 = vmand (%p177_p9), %vm2221_vm1, %vm2226_vm2 }
  0x56   : > { %272 = vrot.lane.b32.xlu0 %v194_v6, %s1979_s24  ;;  %292 = vrot.lane.b32.xlu1 %v194_v6, %s3196_s25  ;;  %s3137_s20 = smov 87   ;;  %s1990_s14 = smov 93   ;;  %v261_v8 = vrot.slane %v194_v6, 1  ;;  %vm2246_vm7 = vcmp.lt.s32.totalorder %v195_v7, 129  ;;  %vm3142_vm9 = vmand %vm2231_vm3, %vm2236_vm4  ;;  %vm2262_vm10 = vcmp.ge.s32.totalorder %v195_v7, 7  ;;  %vm2267_vm11 = vcmp.lt.s32.totalorder %v195_v7, 23 }
  0x57   : > { %s1992_s15 = smov 99   ;;  %s3138_s17 = smov 117   ;;  %v3277_v30 = vsel %vm2246_vm7, 4294967295, %v3276_v30  ;;  %v3279_v32 = vsel %vm2262_vm10, 4294967295, %v3278_v32  ;;  %v3280_v33 = vmov 0  ;;  %vm3144_vm12 = vmand %vm2241_vm6, %vm2246_vm7  ;;  %vm2277_vm13 = vcmp.ge.s32.totalorder %v195_v7, 29 }
  0x58   : > { %s3140_s18 = smov 105   ;;  %s3139_s22 = smov 111   ;;  %v3281_v33 = vsel %vm2267_vm11, 4294967295, %v3280_v33  ;;  %v3282_v37 = vmov 0  ;;  %vm2282_vm14 = vcmp.lt.s32.totalorder %v195_v7, 45  ;;  %v3284_v38 = vmov 0  ;;  %vm3146_vm15 = vmand %vm2262_vm10, %vm2267_vm11 }
  0x59   : > { %s1996_s23 = smov 11   ;;  %v3283_v37 = vsel %vm2277_vm13, 4294967295, %v3282_v37  ;;  %v3285_v38 = vsel %vm2282_vm14, 4294967295, %v3284_v38  ;;  %vm3147_vm0 = vmand %vm2277_vm13, %vm2282_vm14  ;;  %v3286_v39 = vmov 0  ;;  %v3288_v40 = vmov 0  ;;  %p3451_p13 = scmp.ne.s32.totalorder %s3259_s29, 0 }
  0x5a   : > { %282 = vrot.lane.b32.xlu0 %v194_v6, %s1981_s26  ;;  %322 = vrot.lane.b32.xlu1 %v194_v6, %s1982_s27  ;;  %v3290_v43 = vmov 0  ;;  %v3292_v44 = vmov 0  ;;  %v3294_v47 = vmov 0  ;;  %v3296_v48 = vmov 0 }
  0x5b   : > { %vm3155_vm13 = vcmask 957440   ;;  %vm2366_vm11 = vcmp.ge.s32.totalorder %v195_v7, 117  ;;  %v3299_v50 = vmov 0  ;;  %vm2371_vm10 = vcmp.lt.s32.totalorder %v195_v7, 133 }
  0x5c   : > { %v3300_v50 = vsel %vm2366_vm11, 4294967295, %v3299_v50  ;;  %v3301_v51 = vmov 0  ;;  %vm3154_vm7 = vmand %vm2366_vm11, %vm2371_vm10  ;;  %v381_v55 = vrot.slane %v3265_v5, 1  ;;  %v3308_v56 = vmov 0 }
  0x5d   : > { %v3302_v51 = vsel %vm2371_vm10, 4294967295, %v3301_v51  ;;  %v3310_v57 = vmov 0  ;;  %v3312_v58 = vmov 0  ;;  %vm2447_vm10 = vcmp.lt.s32.totalorder %v195_v7, 49 }
  0x5e   : > { %302 = vrot.lane.b32.xlu0 %v194_v6, %s1983_s30  ;;  %312 = vrot.lane.b32.xlu1 %v194_v6, %s1984_s3  ;;  %v3314_v59 = vmov 0  ;;  %vm2452_vm11 = vcmp.ge.s32.totalorder %v195_v7, 55  ;;  %v3316_v61 = vmov 0  ;;  %v3318_v62 = vmov 0 }
  0x5f   : > { %v3315_v59 = vsel %vm2447_vm10, 4294967295, %v3314_v59  ;;  %v3317_v61 = vsel %vm2452_vm11, 4294967295, %v3316_v61  ;;  %v3322_v0 = vmov 0 }
  0x62   : > { %335 = vrot.lane.b32.xlu0 %v194_v6, %s3213_s4  ;;  %216 = vrot.lane.b32.xlu1 %v194_v6, %s1986_s6 }
  0x66   : > { %202 = vrot.lane.b32.xlu0 %v194_v6, %s1987_s8  ;;  %209 = vrot.lane.b32.xlu1 %v194_v6, %s1988_s19 }
  0x6a   : > { %226 = vrot.lane.b32.xlu0 %v194_v6, %s3137_s20  ;;  %233 = vrot.lane.b32.xlu1 %v194_v6, %s1990_s14  ;;  %s1997_s20 = smov 55  }
  0x6e   : > { %240 = vrot.lane.b32.xlu0 %v194_v6, %s1992_s15  ;;  %262 = vrot.lane.b32.xlu1 %v261_v8, %s3138_s17  ;;  %s1998_s17 = smov 33  }
  0x72   : > { %247 = vrot.lane.b32.xlu0 %v194_v6, %s3140_s18  ;;  %254 = vrot.lane.b32.xlu1 %v194_v6, %s3139_s22  ;;  %s1999_s22 = smov 77   ;;  %s3187_s18 = smov 121  }
  0xc8   : > { %v273_v10 = vpop.permute.xlu0 %272  ;;  %v293_v11 = vpop.permute.xlu1 %292 }
  0xc9   : > { %v274_v12 = vrot.slane %v273_v10, 1  ;;  %v294_v13 = vrot.slane %v293_v11, 1 }
  0xcb   : > { %275 = vrot.lane.b32.xlu0 %v274_v12, %s1996_s23  ;;  %v3335_v12 = vmov 0 }
  0xcc   : > { %v283_v14 = vpop.permute.xlu0 %282  ;;  %v323_v15 = vpop.permute.xlu1 %322 }
  0xcd   : > { %v284_v16 = vrot.slane %v283_v14, 1  ;;  %v324_v17 = vrot.slane %v323_v15, 1 }
  0xcf   : > { %295 = vrot.lane.b32.xlu0 %v294_v13, %s1997_s20  ;;  %285 = vrot.lane.b32.xlu1 %v284_v16, %s1998_s17 }
  0xd0   : > { %v303_v18 = vpop.permute.xlu0 %302  ;;  %v313_v19 = vpop.permute.xlu1 %312 }
  0xd1   : > { %v304_v20 = vrot.slane %v303_v18, 1  ;;  %v314_v21 = vrot.slane %v313_v19, 1 }
  0xd3   : > { %305 = vrot.lane.b32.xlu0 %v304_v20, %s1999_s22  ;;  %325 = vrot.lane.b32.xlu1 %v324_v17, %s3187_s18 }
  0xd4   : > { %v336_v24 = vpop.permute.xlu0 %335  ;;  %v217_v25 = vpop.permute.xlu1 %216 }
  0xd5   : > { %v218_v28 = vrot.slane %v217_v25, 7  ;;  %v337_v31 = vrot.slane %v336_v24, 1 }
  0xd7   : > { %395 = vrot.lane.b32.xlu0 %v3265_v5, %s1981_s26  ;;  %315 = vrot.lane.b32.xlu1 %v314_v21, %s1992_s15  ;;  %v220_v34 = vsel %vm3143_vm5, %v218_v28, %v217_v25  ;;  %s3215_s26 = smov 15   ;;  %vm2318_vm5 = vcmp.lt.s32.totalorder %v195_v7, 67 }
  0xd8   : > { %v203_v35 = vpop.permute.xlu0 %202  ;;  %v210_v36 = vpop.permute.xlu1 %209  ;;  %v3289_v40 = vsel %vm2318_vm5, 4294967295, %v3288_v40 }
  0xd9   : > { %208 = vst.msk [vmem:[#allocation2] sm:$0x1] %vm3145_vm8, %v203_v35  ;;  %vm2341_vm8 = vcmp.ge.s32.totalorder %v195_v7, 73 }
  0xda   : > { %215 = vst.msk [vmem:[#allocation2] sm:$0x1] %vm3142_vm9, %v210_v36  ;;  %vm2313_vm9 = vcmp.ge.s32.totalorder %v195_v7, 51  ;;  %v3291_v43 = vsel %vm2341_vm8, 4294967295, %v3290_v43 }
  0xdb   : > { %338 = vrot.lane.b32.xlu0 %v337_v31, %s3215_s26  ;;  %388 = vrot.lane.b32.xlu1 %v3265_v5, %s1979_s24  ;;  %225 = vst.msk [vmem:[#allocation2] sm:$0x3] %vm3144_vm12, %v220_v34  ;;  %v3287_v39 = vsel %vm2313_vm9, 4294967295, %v3286_v39  ;;  %vm2356_vm12 = vcmp.lt.s32.totalorder %v195_v7, 111  ;;  %vm3298_vm14 = vmand %vm2313_vm9, %vm2318_vm5  ;;  %s3304_s24 = smov 87   ;;  %vm2480_vm9 = vcmp.lt.s32.totalorder %v195_v7, 93 }
  0xdc   : > { %v227_v41 = vpop.permute.xlu0 %226  ;;  %v234_v42 = vpop.permute.xlu1 %233  ;;  %v3297_v48 = vsel %vm2356_vm12, 4294967295, %v3296_v48  ;;  %v3323_v0 = vsel %vm2480_vm9, 4294967295, %v3322_v0 }
  0xdd   : > { %232 = vst.msk [vmem:[#allocation2 + $0x1] sm:$0x1] %vm3146_vm15, %v227_v41  ;;  %vm2346_vm15 = vcmp.lt.s32.totalorder %v195_v7, 89 }
  0xde   : > { %239 = vst.msk [vmem:[#allocation2 + $0x1] sm:$0x1] %vm3147_vm0, %v234_v42  ;;  %v3293_v44 = vsel %vm2346_vm15, 4294967295, %v3292_v44  ;;  %vm2351_vm0 = vcmp.ge.s32.totalorder %v195_v7, 95  ;;  %vm3303_vm5 = vmand %vm2341_vm8, %vm2346_vm15  ;;  %vm2475_vm8 = vcmp.ge.s32.totalorder %v195_v7, 77 }
  0xdf   : > { %423 = vrot.lane.b32.xlu0 %v3265_v5, %s1982_s27  ;;  %402 = vrot.lane.b32.xlu1 %v3265_v5, %s3196_s25  ;;  %v3295_v47 = vsel %vm2351_vm0, 4294967295, %v3294_v47  ;;  %s3305_s27 = smov 105  }
  0xe0   : > { %v241_v45 = vpop.permute.xlu0 %240  ;;  %v263_v46 = vpop.permute.xlu1 %262 }
  0xe1   : > { %246 = vst.msk [vmem:[#allocation2 + $0x1] sm:$0x1] %vm3298_vm14, %v241_v45  ;;  %v264_v49 = vrot.slane %v263_v46, 7  ;;  %vm3156_vm14 = vmand %vm2351_vm0, %vm2356_vm12  ;;  %vm2457_vm12 = vcmp.lt.s32.totalorder %v195_v7, 71 }
  0xe2   : > { %v3319_v62 = vsel %vm2457_vm12, 4294967295, %v3318_v62  ;;  %vm3168_vm15 = vmand %vm2452_vm11, %vm2457_vm12  ;;  %vm3181_vm12 = vcmask 990208  }
  0xe3   : > { %409 = vrot.lane.b32.xlu1 %v3265_v5, %s1983_s30  ;;  %416 = vrot.lane.b32.xlu0 %v3265_v5, %s1984_s3  ;;  %v266_v52 = vsel %vm3155_vm13, %v264_v49, %v263_v46  ;;  %s3306_s30 = smov 117   ;;  %s3307_s3 = smov 111  }
  0xe4   : > { %v248_v53 = vpop.permute.xlu0 %247  ;;  %v255_v54 = vpop.permute.xlu1 %254 }
  0xe5   : > { %253 = vst.msk [vmem:[#allocation2 + $0x1] sm:$0x1] %vm3303_vm5, %v248_v53  ;;  %vm2428_vm5 = vcmp.ge.s32.totalorder %v195_v7, 11 }
  0xe6   : > { %260 = vst.msk [vmem:[#allocation2 + $0x1] sm:$0x1] %vm3156_vm14, %v255_v54  ;;  %v3309_v56 = vsel %vm2428_vm5, 4294967295, %v3308_v56  ;;  %vm2442_vm14 = vcmp.ge.s32.totalorder %v195_v7, 33 }
  0xe7   : > { %432 = vrot.lane.b32.xlu1 %v3265_v5, %s3213_s4  ;;  %355 = vrot.lane.b32.xlu0 %v3265_v5, %s1986_s6  ;;  %271 = vst.msk [vmem:[#allocation2 + $0x1] sm:$0x3] %vm3154_vm7, %v266_v52  ;;  %vm2433_vm7 = vcmp.lt.s32.totalorder %v195_v7, 27  ;;  %v3313_v58 = vsel %vm2442_vm14, 4294967295, %v3312_v58  ;;  %vm3167_vm0 = vmand %vm2442_vm14, %vm2447_vm10  ;;  %vm2532_vm14 = vcmp.ge.s32.totalorder %v195_v7, 15 }
  0xe8   : > { %v3311_v57 = vsel %vm2433_vm7, 4294967295, %v3310_v57  ;;  %vm3164_vm13 = vmand %vm2428_vm5, %vm2433_vm7  ;;  %vm2499_vm7 = vcmp.ge.s32.totalorder %v195_v7, 99  ;;  %vm2504_vm5 = vcmp.lt.s32.totalorder %v195_v7, 115 }
  0xe9   : > { %vm3180_vm11 = vmand %vm2499_vm7, %vm2504_vm5 }
  0xeb   : > { %346 = vrot.lane.b32.xlu1 %v3265_v5, %s1987_s8  ;;  %365 = vrot.lane.b32.xlu0 %v3265_v5, %s1990_s14  ;;  %s1588_s8 = sld [smem:[#allocation7 + $0x1]] }
  0xec   : > { %s1589_s14 = sld [smem:[#allocation7 + $0x2]] }
  0xef   : > { %351 = vrot.lane.b32.xlu1 %v3265_v5, %s1988_s19  ;;  %369 = vrot.lane.b32.xlu0 %v3265_v5, %s1992_s15  ;;  %s1590_s19 = sld [smem:[#allocation7 + $0x3]] }
  0xf1   : > { %v445_v31 = vstv %s1588_s8  ;;  %s2585_s8 = sld [smem:[#allocation7 + $0x8]] }
  0xf2   : > { %v456_v45 = vstv %s1589_s14  ;;  %s3178_s14 = smov 126  }
  0xf3   : > { %361 = vrot.lane.b32.xlu1 %v3265_v5, %s3304_s24  ;;  %373 = vrot.lane.b32.xlu0 %v3265_v5, %s3305_s27  ;;  %s2563_s24 = sld [smem:[#allocation7 + $0x5]] }
  0xf5   : > { %v467_v42 = vstv %s1590_s19  ;;  %s3175_s19 = smov 125  }
  0xf7   : > { %382 = vrot.lane.b32.xlu1 %v381_v55, %s3306_s30  ;;  %377 = vrot.lane.b32.xlu0 %v3265_v5, %s3307_s3  ;;  %s2574_s30 = sld [smem:[#allocation7 + $0x6]]  ;;  %s3177_s3 = smov 127  }
  0xf9   : > { %v489_v54 = vstv %s2563_s24  ;;  %s2600_s24 = sld [smem:[#allocation7 + $0xb]] }
 0x13d   : > { %v276_v60 = vpop.permute.xlu0 %275 }
 0x13e   : > { %281 = vst.msk [vmem:[#allocation2 + $0x2] sm:$0x1] %vm3164_vm13, %v276_v60  ;;  %vm2514_vm13 = vcmp.lt.s32.totalorder %v195_v7, 137 }
 0x141   : > { %v296_v1 = vpop.permute.xlu0 %295  ;;  %v286_v2 = vpop.permute.xlu1 %285 }
 0x142   : > { %291 = vst.msk [vmem:[#allocation2 + $0x2] sm:$0x1] %vm3167_vm0, %v286_v2  ;;  %vm2509_vm0 = vcmp.ge.s32.totalorder %v195_v7, 121 }
 0x143   : > { %301 = vst.msk [vmem:[#allocation2 + $0x2] sm:$0x1] %vm3168_vm15, %v296_v1  ;;  %vm3332_vm15 = vmand %vm2475_vm8, %vm2480_vm9  ;;  %vm2537_vm9 = vcmp.lt.s32.totalorder %v195_v7, 31 }
 0x144   : > { %vm3176_vm10 = vmand %vm2509_vm0, %vm2514_vm13  ;;  %v3336_v12 = vsel %vm2537_vm9, 4294967295, %v3335_v12 }
 0x145   : > { %v306_v5 = vpop.permute.xlu0 %305  ;;  %v326_v6 = vpop.permute.xlu1 %325 }
 0x146   : > { %311 = vst.msk [vmem:[#allocation2 + $0x2] sm:$0x1] %vm3332_vm15, %v306_v5  ;;  %v327_v10 = vrot.slane %v326_v6, 7  ;;  %vm3174_vm15 = vmand %vm2532_vm14, %vm2537_vm9  ;;  %vm451_vm9 = vcmask 1039360  }
 0x148   : > { %v329_v15 = vsel %vm3181_vm12, %v327_v10, %v326_v6 }
 0x149   : > { %v396_v13 = vpop.permute.xlu0 %395  ;;  %v316_v14 = vpop.permute.xlu1 %315 }
 0x14a   : > { %v397_v16 = vrot.slane %v396_v13, 1  ;;  %321 = vst.msk [vmem:[#allocation2 + $0x2] sm:$0x1] %vm3180_vm11, %v316_v14  ;;  %v500_v13 = vstv %s2574_s30  ;;  %s3179_s30 = smov 106   ;;  %vm3352_vm11 = vnez %v3293_v44 }
 0x14b   : > { %334 = vst.msk [vmem:[#allocation2 + $0x2] sm:$0x3] %vm3176_vm10, %v329_v15  ;;  %vm3338_vm10 = vcmask 662528  }
 0x14c   : > { %398 = vrot.lane.b32.xlu1 %v397_v16, %s1998_s17  ;;  %s1591_s17 = sld [smem:[#allocation7 + $0x4]] }
 0x14d   : > { %v339_v17 = vpop.permute.xlu0 %338  ;;  %v389_v18 = vpop.permute.xlu1 %388 }
 0x14e   : > { %344 = vst.msk [vmem:[#allocation2 + $0x3] sm:$0x1] %vm3174_vm15, %v339_v17  ;;  %v390_v19 = vrot.slane %v389_v18, 1  ;;  %vm3337_vm15 = vmand %vm2221_vm1, %vm2226_vm2  ;;  %v522_v18 = vstv %s2585_s8  ;;  %vm3340_vm2 = vnez %v3277_v30  ;;  %v555_v30 = vstv %s2600_s24  ;;  %s2636_s8 = sld [smem:[#allocation7 + $0xd]]  ;;  %s3183_s24 = smov 103  }
 0x14f   : > { %vm3339_vm1 = vmand %vm2231_vm3, %vm2236_vm4  ;;  %vm3342_vm3 = vnez %v3279_v32  ;;  %vm3343_vm4 = vnez %v3281_v33 }
 0x150   : > { %391 = vrot.lane.b32.xlu0 %v390_v19, %s1996_s23  ;;  %s2572_s23 = sld [smem:[#allocation7 + $0x7]] }
 0x151   : > { %v424_v20 = vpop.permute.xlu0 %423  ;;  %v403_v21 = vpop.permute.xlu1 %402 }
 0x152   : > { %v425_v24 = vrot.slane %v424_v20, 1  ;;  %v404_v25 = vrot.slane %v403_v21, 1  ;;  %v2565_v28 = vld [vmem:[#allocation2] sm:$0x7]  ;;  %v478_v55 = vstv %s1591_s17  ;;  %s3191_s17 = smov 123  }
 0x153   : > { %v446_v41 = vmul.f32 %v445_v31, %v2565_v28  ;;  %v468_v52 = vmul.f32 %v467_v42, %v2565_v28  ;;  %v457_v53 = vmul.f32 %v456_v45, %v2565_v28  ;;  %v490_v5 = vmul.f32 %v489_v54, %v2565_v28 }
 0x154   : > { %426 = vrot.lane.b32.xlu0 %v425_v24, %s3187_s18  ;;  %405 = vrot.lane.b32.xlu1 %v404_v25, %s1997_s20  ;;  %s2582_s20 = sld [smem:[#allocation7 + $0x9]]  ;;  %v479_v6 = vmul.f32 %v478_v55, %v2565_v28  ;;  %v501_v16 = vmul.f32 %v500_v13, %v2565_v28  ;;  %v523_v20 = vmul.f32 %v522_v18, %v2565_v28  ;;  %v577_v25 = vstv %s2636_s8 }
 0x155   : > { %v410_v34 = vpop.permute.xlu1 %409  ;;  %v2569_v35 = vpop.permute.xlu0 %416  ;;  %s1606_s18 = sld [smem:[#allocation7 + $0x13]] }
 0x156   : > { %v411_v36 = vrot.slane %v410_v34, 1  ;;  %v511_v10 = vstv %s2572_s23  ;;  %s2616_s23 = sld [smem:[#allocation7 + $0xc]]  ;;  %v418_v34 = vrot.slane %v2569_v35, 1 }
 0x157   : > { %v512_v23 = vmul.f32 %v511_v10, %v2565_v28  ;;  %s1608_s8 = sld [smem:[#allocation7 + $0x15]] }
 0x158   : > { %448 = vrot.lane.b32.xlu0 %v446_v41, %s3177_s3  ;;  %412 = vrot.lane.b32.xlu1 %v411_v36, %s1999_s22  ;;  %s2591_s22 = sld [smem:[#allocation7 + $0xa]] }
 0x159   : > { %v2578_v46 = vpop.permute.xlu1 %432  ;;  %v356_v49 = vpop.permute.xlu0 %355  ;;  %s2607_s3 = sld [smem:[#allocation7 + $0xe]] }
 0x15a   : > { %v357_v60 = vrot.slane %v356_v49, 7  ;;  %v533_v17 = vstv %s2582_s20  ;;  %s2627_s20 = sld [smem:[#allocation7 + $0xf]] }
 0x15b   : > { %v534_v19 = vmul.f32 %v533_v17, %v2565_v28 }
 0x15c   : > { %470 = vrot.lane.b32.xlu0 %v468_v52, %s3175_s19  ;;  %459 = vrot.lane.b32.xlu1 %v457_v53, %s3178_s14  ;;  %s3189_s19 = smov 124   ;;  %v358_v14 = vsel %vm3338_vm10, %v357_v60, %v356_v49  ;;  %vm3341_vm10 = vmand %vm2241_vm6, %vm3340_vm2  ;;  %s3185_s14 = smov 122   ;;  %v643_v53 = vstv %s1606_s18 }
 0x15d   : > { %v347_v1 = vpop.permute.xlu1 %346  ;;  %v366_v2 = vpop.permute.xlu0 %365  ;;  %vm3344_vm6 = vmand %vm3342_vm3, %vm3343_vm4  ;;  %vm3349_vm3 = vnez %v3289_v40  ;;  %v665_v60 = vstv %s1608_s8  ;;  %s1615_s18 = sld [smem:[#allocation7 + $0x1c]] }
 0x15e   : > { %350 = vst.msk [vmem:[#allocation2 + $0x4] sm:$0x1] %vm3337_vm15, %v347_v1  ;;  %v544_v29 = vstv %s2591_s22  ;;  %vm3345_vm15 = vnez %v3283_v37  ;;  %s1603_s22 = sld [smem:[#allocation7 + $0x10]] }
 0x15f   : > { %v545_v37 = vmul.f32 %v544_v29, %v2565_v28  ;;  %v589_v40 = vstv %s2607_s3  ;;  %s1605_s3 = sld [smem:[#allocation7 + $0x12]] }
 0x160   : > { %492 = vrot.lane.b32.xlu0 %v490_v5, %s3191_s17  ;;  %481 = vrot.lane.b32.xlu1 %v479_v6, %s3189_s19  ;;  %v600_v24 = vstv %s2627_s20  ;;  %s3194_s19 = smov 83   ;;  %s2015_s17 = smov 100  }
 0x161   : > { %v352_v15 = vpop.permute.xlu1 %351  ;;  %v370_v22 = vpop.permute.xlu0 %369  ;;  %s1609_s20 = sld [smem:[#allocation7 + $0x16]] }
 0x162   : > { %354 = vst.msk [vmem:[#allocation2 + $0x4] sm:$0x1] %vm3339_vm1, %v352_v15  ;;  %vm3346_vm1 = vnez %v3285_v38  ;;  %v556_v38 = vmul.f32 %v555_v30, %v2565_v28  ;;  %s1616_s8 = sld [smem:[#allocation7 + $0x1d]] }
 0x163   : > { %360 = vst.msk [vmem:[#allocation2 + $0x4] sm:$0x3] %vm3341_vm10, %v358_v14  ;;  %vm3347_vm2 = vmand %vm3345_vm15, %vm3346_vm1  ;;  %vm3348_vm10 = vnez %v3287_v39  ;;  %vm3354_vm15 = vnez %v3295_v47  ;;  %vm3355_vm1 = vnez %v3297_v48  ;;  %v2662_v39 = vld [vmem:[#allocation2] sm:$0xf] }
 0x164   : > { %514 = vrot.lane.b32.xlu0 %v512_v23, %s3179_s30  ;;  %503 = vrot.lane.b32.xlu1 %v501_v16, %s3185_s14  ;;  %s3182_s30 = smov 104   ;;  %vm3350_vm4 = vmand %vm3348_vm10, %vm3349_vm3  ;;  %vm3359_vm10 = vnez %v3302_v51  ;;  %v590_v47 = vmul.f32 %v589_v40, %v2662_v39  ;;  %v578_v51 = vmul.f32 %v577_v25, %v2565_v28  ;;  %s1607_s14 = sld [smem:[#allocation7 + $0x14]]  ;;  %v611_v31 = vstv %s1603_s22 }
 0x165   : > { %v362_v26 = vpop.permute.xlu1 %361  ;;  %v374_v27 = vpop.permute.xlu0 %373  ;;  %v612_v36 = vmul.f32 %v611_v31, %v2662_v39  ;;  %v632_v41 = vstv %s1605_s3  ;;  %s1611_s22 = sld [smem:[#allocation7 + $0x18]]  ;;  %v644_v54 = vmul.f32 %v643_v53, %v2662_v39  ;;  %v742_v16 = vstv %s1615_s18 }
 0x166   : > { %364 = vst.msk [vmem:[#allocation2 + $0x5] sm:$0x1] %vm3344_vm6, %v362_v26  ;;  %vm3351_vm6 = vnez %v3291_v43  ;;  %v566_v43 = vstv %s2616_s23  ;;  %s1604_s23 = sld [smem:[#allocation7 + $0x11]]  ;;  %v633_v45 = vmul.f32 %v632_v41, %v2662_v39  ;;  %v743_v18 = vmul.f32 %v742_v16, %v2662_v39 }
 0x167   : > { %368 = vst.msk [vmem:[#allocation2 + $0x5] sm:$0x1] %vm3347_vm2, %v366_v2  ;;  %vm3353_vm12 = vmand %vm3351_vm6, %vm3352_vm11  ;;  %vm3357_vm11 = vcmask 957440   ;;  %v567_v48 = vmul.f32 %v566_v43, %v2565_v28  ;;  %s1613_s3 = sld [smem:[#allocation7 + $0x1a]]  ;;  %v676_v55 = vstv %s1609_s20  ;;  %v666_v2 = vmul.f32 %v665_v60, %v2662_v39  ;;  %s3202_s20 = smov 62  }
 0x168   : > { %536 = vrot.lane.b32.xlu0 %v534_v19, %s3182_s30  ;;  %525 = vrot.lane.b32.xlu1 %v523_v20, %s3305_s27  ;;  %372 = vst.msk [vmem:[#allocation2 + $0x5] sm:$0x1] %vm3350_vm4, %v370_v22  ;;  %vm3356_vm2 = vmand %vm3354_vm15, %vm3355_vm1  ;;  %s3184_s30 = smov 102   ;;  %v677_v1 = vmul.f32 %v676_v55, %v2662_v39  ;;  %v434_v19 = vrot.slane %v2578_v46, 1  ;;  %s1622_s18 = sld [smem:[#allocation7 + $0x23]]  ;;  %vm3365_vm4 = vnez %v3309_v56  ;;  %vm3366_vm6 = vnez %v3311_v57 }
 0x169   : > { %376 = vst.msk [vmem:[#allocation2 + $0x5] sm:$0x1] %vm3353_vm12, %v374_v27  ;;  %v383_v32 = vpop.permute.xlu1 %382  ;;  %v378_v33 = vpop.permute.xlu0 %377  ;;  %vm3358_vm12 = vnez %v3300_v50  ;;  %v601_v50 = vmul.f32 %v600_v24, %v2662_v39  ;;  %v753_v27 = vstv %s1616_s8  ;;  %s1624_s8 = sld [smem:[#allocation7 + $0x25]]  ;;  %vm3367_vm15 = vmand %vm3365_vm4, %vm3366_vm6  ;;  %vm3368_vm1 = vnez %v3313_v58 }
 0x16a   : > { %v384_v21 = vrot.slane %v383_v32, 7  ;;  %380 = vst.msk [vmem:[#allocation2 + $0x5] sm:$0x1] %vm3356_vm2, %v378_v33  ;;  %vm3360_vm3 = vmand %vm3358_vm12, %vm3359_vm10  ;;  %v654_v52 = vstv %s1607_s14  ;;  %s1614_s14 = sld [smem:[#allocation7 + $0x1b]]  ;;  %v754_v20 = vmul.f32 %v753_v27, %v2662_v39  ;;  %vm3369_vm2 = vnez %v3315_v59 }
 0x16b   : > { %v655_v35 = vmul.f32 %v654_v52, %v2662_v39  ;;  %v698_v5 = vstv %s1611_s22  ;;  %s1617_s22 = sld [smem:[#allocation7 + $0x1e]]  ;;  %v896_v52 = vld [vmem:[#allocation2 + $0x1] sm:$0x7]  ;;  %vm3371_vm12 = vnez %v3317_v61  ;;  %vm3372_vm10 = vnez %v3319_v62 }
 0x16c   : > { %547 = vrot.lane.b32.xlu0 %v545_v37, %s3183_s24  ;;  %558 = vrot.lane.b32.xlu1 %v556_v38, %s3184_s30  ;;  %v385_v44 = vsel %vm3357_vm11, %v384_v21, %v383_v32  ;;  %s3193_s24 = smov 84   ;;  %s2013_s30 = smov 101   ;;  %v622_v42 = vstv %s1604_s23  ;;  %v699_v10 = vmul.f32 %v698_v5, %v2662_v39  ;;  %vm3370_vm11 = vmand %vm3368_vm1, %vm3369_vm2  ;;  %vm3374_vm4 = vnez %v3323_v0 }
 0x16d   : > { %387 = vst.msk [vmem:[#allocation2 + $0x5] sm:$0x3] %vm3360_vm3, %v385_v44  ;;  %v623_v49 = vmul.f32 %v622_v42, %v2662_v39  ;;  %s3197_s23 = smov 78   ;;  %v720_v14 = vstv %s1613_s3  ;;  %s3206_s3 = smov 58   ;;  %vm3373_vm3 = vmand %vm3371_vm12, %vm3372_vm10  ;;  %vm3225_vm1 = vcmask 1022976   ;;  %vm484_vm2 = vcmask 1014784  }
 0x16e   : > { %v721_v22 = vmul.f32 %v720_v14, %v2662_v39  ;;  %v819_v40 = vstv %s1622_s18  ;;  %s2033_s18 = smov 34   ;;  %vm3375_vm6 = vmand %vm2475_vm8, %vm3374_vm4  ;;  %vm495_vm8 = vcmask 1006592   ;;  %vm3218_vm12 = vcmask 867328  }
 0x16f   : > { %v820_v44 = vmul.f32 %v819_v40, %v2662_v39  ;;  %vm3219_vm10 = vcmask 859136   ;;  %vm3223_vm4 = vcmask 842752  }
 0x170   : > { %592 = vrot.lane.b32.xlu0 %v590_v47, %s3193_s24  ;;  %569 = vrot.lane.b32.xlu1 %v567_v48, %s2013_s30  ;;  %s3195_s24 = smov 82   ;;  %v731_v17 = vstv %s1614_s14  ;;  %s1621_s14 = sld [smem:[#allocation7 + $0x22]]  ;;  %v841_v48 = vstv %s1624_s8 }
 0x171   : > { %v732_v26 = vmul.f32 %v731_v17, %v2662_v39  ;;  %v764_v30 = vstv %s1617_s22  ;;  %s1625_s22 = sld [smem:[#allocation7 + $0x26]]  ;;  %v842_v25 = vmul.f32 %v841_v48, %v2662_v39 }
 0x172   : > { %v765_v33 = vmul.f32 %v764_v30, %v2662_v39  ;;  %s1631_s8 = sld [smem:[#allocation7 + $0x2c]] }
 0x174   : > { %603 = vrot.lane.b32.xlu0 %v601_v50, %s3194_s19  ;;  %580 = vrot.lane.b32.xlu1 %v578_v51, %s2015_s17  ;;  %s1610_s19 = sld [smem:[#allocation7 + $0x17]] }
 0x176   : > { %v808_v43 = vstv %s1621_s14  ;;  %s1630_s14 = sld [smem:[#allocation7 + $0x2b]] }
 0x177   : > { %v809_v47 = vmul.f32 %v808_v43, %v2662_v39  ;;  %v852_v31 = vstv %s1625_s22  ;;  %s1633_s22 = sld [smem:[#allocation7 + $0x2e]] }
 0x178   : > { %614 = vrot.lane.b32.xlu0 %v612_v36, %s3195_s24  ;;  %419 = vrot.lane.b32.xlu1 %v418_v34, %s1992_s15  ;;  %s1612_s15 = sld [smem:[#allocation7 + $0x19]]  ;;  %s3198_s24 = smov 79   ;;  %v853_v36 = vmul.f32 %v852_v31, %v2662_v39 }
 0x17a   : > { %v687_v6 = vstv %s1610_s19  ;;  %s1618_s19 = sld [smem:[#allocation7 + $0x1f]] }
 0x17b   : > { %v688_v13 = vmul.f32 %v687_v6, %v2662_v39 }
 0x17c   : > { %635 = vrot.lane.b32.xlu0 %v633_v45, %s3196_s25  ;;  %625 = vrot.lane.b32.xlu1 %v623_v49, %s1986_s6  ;;  %s3199_s25 = smov 61   ;;  %v907_v53 = vstv %s1630_s14  ;;  %s3364_s14 = smov 122  }
 0x17d   : > { %v937_v6 = vstv %s1633_s22  ;;  %s2783_s22 = sld [smem:[#allocation7 + $0x33]] }
 0x17e   : > { %v709_v15 = vstv %s1612_s15  ;;  %s1620_s15 = sld [smem:[#allocation7 + $0x21]] }
 0x17f   : > { %v710_v23 = vmul.f32 %v709_v15, %v2662_v39 }
 0x180   : > { %657 = vrot.lane.b32.xlu0 %v655_v35, %s3197_s23  ;;  %646 = vrot.lane.b32.xlu1 %v644_v54, %s3198_s24  ;;  %s3200_s23 = smov 59   ;;  %s3201_s24 = smov 60   ;;  %v775_v29 = vstv %s1618_s19  ;;  %v908_v54 = vmul.f32 %v907_v53, %v896_v52 }
 0x181   : > { %v776_v32 = vmul.f32 %v775_v29, %v2662_v39  ;;  %s1626_s19 = sld [smem:[#allocation7 + $0x27]] }
 0x183   : > { %v985_v9 = vstv %s2783_s22  ;;  %s2819_s22 = sld [smem:[#allocation7 + $0x39]] }
 0x184   : > { %679 = vrot.lane.b32.xlu0 %v677_v1, %s3199_s25  ;;  %668 = vrot.lane.b32.xlu1 %v666_v2, %s3202_s20  ;;  %s3203_s25 = smov 57   ;;  %s3205_s20 = smov 56   ;;  %v797_v37 = vstv %s1620_s15  ;;  %v917_v1 = vstv %s1631_s8 }
 0x185   : > { %v798_v46 = vmul.f32 %v797_v37, %v2662_v39  ;;  %s3211_s15 = smov 36   ;;  %v918_v2 = vmul.f32 %v917_v1, %v896_v52  ;;  %s3226_s8 = smov 118  }
 0x187   : > { %v863_v51 = vstv %s1626_s19  ;;  %s1634_s19 = sld [smem:[#allocation7 + $0x2f]] }
 0x188   : > { %701 = vrot.lane.b32.xlu0 %v699_v10, %s3200_s23  ;;  %690 = vrot.lane.b32.xlu1 %v688_v13, %s3201_s24  ;;  %s1619_s23 = sld [smem:[#allocation7 + $0x20]]  ;;  %s3204_s24 = smov 40   ;;  %v864_v34 = vmul.f32 %v863_v51, %v2662_v39  ;;  %v938_v13 = vmul.f32 %v937_v6, %v896_v52 }
 0x18c   : > { %723 = vrot.lane.b32.xlu0 %v721_v22, %s3203_s25  ;;  %712 = vrot.lane.b32.xlu1 %v710_v23, %s3206_s3  ;;  %s3207_s25 = smov 39   ;;  %s3209_s3 = smov 38  }
 0x18d   : > { %v948_v5 = vstv %s1634_s19  ;;  %s439_s19 = sld [smem:[#allocation7]] }
 0x18e   : > { %v786_v38 = vstv %s1619_s23  ;;  %s1628_s23 = sld [smem:[#allocation7 + $0x29]]  ;;  %v949_v10 = vmul.f32 %v948_v5, %v896_v52 }
 0x18f   : > { %v787_v21 = vmul.f32 %v786_v38, %v2662_v39 }
 0x190   : > { %745 = vrot.lane.b32.xlu0 %v743_v18, %s3204_s24  ;;  %734 = vrot.lane.b32.xlu1 %v732_v26, %s3205_s20  ;;  %s1623_s24 = sld [smem:[#allocation7 + $0x24]]  ;;  %s3208_s20 = smov 37  }
 0x193   : > { %v441_v18 = vstv %s439_s19  ;;  %s2801_s19 = sld [smem:[#allocation7 + $0x35]] }
 0x194   : > { %756 = vrot.lane.b32.xlu0 %v754_v20, %s3207_s25  ;;  %435 = vrot.lane.b32.xlu1 %v434_v19, %s3215_s26  ;;  %s3210_s25 = smov 35   ;;  %v885_v41 = vstv %s1628_s23  ;;  %s3229_s23 = smov 13   ;;  %v442_v59 = vmul.f32 %v441_v18, %v2565_v28 }
 0x195   : > { %v886_v45 = vmul.f32 %v885_v41, %v2662_v39 }
 0x196   : > { %v830_v24 = vstv %s1623_s24  ;;  %s1632_s24 = sld [smem:[#allocation7 + $0x2d]] }
 0x197   : > { %v831_v50 = vmul.f32 %v830_v24, %v2662_v39 }
 0x198   : > { %778 = vrot.lane.b32.xlu0 %v776_v32, %s3208_s20  ;;  %767 = vrot.lane.b32.xlu1 %v765_v33, %s3209_s3  ;;  %s1627_s20 = sld [smem:[#allocation7 + $0x28]]  ;;  %s3212_s3 = smov 18  }
 0x19c   : > { %800 = vrot.lane.b32.xlu0 %v798_v46, %s3210_s25  ;;  %789 = vrot.lane.b32.xlu1 %v787_v21, %s3211_s15  ;;  %s1629_s25 = sld [smem:[#allocation7 + $0x2a]]  ;;  %s3230_s15 = smov 17   ;;  %v927_v60 = vstv %s1632_s24 }
 0x19d   : > { %s3228_s24 = smov 120  }
 0x19e   : > { %v874_v42 = vstv %s1627_s20  ;;  %s1635_s20 = sld [smem:[#allocation7 + $0x30]] }
 0x19f   : > { %v875_v49 = vmul.f32 %v874_v42, %v2662_v39  ;;  %v928_v39 = vmul.f32 %v927_v60, %v896_v52 }
 0x1a0   : > { %822 = vrot.lane.b32.xlu0 %v820_v44, %s3212_s3  ;;  %811 = vrot.lane.b32.xlu1 %v809_v47, %s2033_s18  ;;  %s3214_s3 = smov 14  }
 0x1a2   : > { %v897_v35 = vstv %s1629_s25  ;;  %s3363_s25 = smov 121  }
 0x1a3   : > { %v898_v55 = vmul.f32 %v897_v35, %v896_v52 }
 0x1a4   : > { %844 = vrot.lane.b32.xlu0 %v842_v25, %s3213_s4  ;;  %833 = vrot.lane.b32.xlu1 %v831_v50, %s3230_s15  ;;  %s3216_s4 = smov 12   ;;  %v959_v14 = vstv %s1635_s20  ;;  %s2786_s20 = sld [smem:[#allocation7 + $0x32]] }
 0x1a5   : > { %v960_v15 = vmul.f32 %v959_v14, %v896_v52  ;;  %s3381_s15 = smov 127  }
 0x1a8   : > { %866 = vrot.lane.b32.xlu0 %v864_v34, %s3214_s3  ;;  %855 = vrot.lane.b32.xlu1 %v853_v36, %s3215_s26  ;;  %s3361_s3 = smov 123   ;;  %s3362_s26 = smov 124  }
 0x1ac   : > { %888 = vrot.lane.b32.xlu0 %v886_v45, %s3216_s4  ;;  %877 = vrot.lane.b32.xlu1 %v875_v49, %s3229_s23  ;;  %s3227_s4 = smov 119   ;;  %s3380_s23 = smov 126  }
 0x1b0   : > { %910 = vrot.lane.b32.xlu0 %v908_v54, %s3361_s3  ;;  %900 = vrot.lane.b32.xlu1 %v898_v55, %s3362_s26 }
 0x1b4   : > { %930 = vrot.lane.b32.xlu0 %v928_v39, %s3363_s25  ;;  %920 = vrot.lane.b32.xlu1 %v918_v2, %s3364_s14 }
 0x1b8   : > { %951 = vrot.lane.b32.xlu0 %v949_v10, %s3227_s4  ;;  %940 = vrot.lane.b32.xlu1 %v938_v13, %s3228_s24  ;;  %s2807_s4 = sld [smem:[#allocation7 + $0x37]] }
 0x1b9   : > { %s2812_s24 = sld [smem:[#allocation7 + $0x36]] }
 0x1bc   : > { %962 = vrot.lane.b32.xlu1 %v960_v15, %s3226_s8  ;;  %s2804_s8 = sld [smem:[#allocation7 + $0x34]] }
 0x1be   : > { %v399_v22 = vpop.permute.xlu1 %398 }
 0x1c2   : > { %v392_v23 = vpop.permute.xlu0 %391 }
 0x1c3   : > { %394 = vst.msk [vmem:[#allocation2 + $0x6] sm:$0x1] %vm3367_vm15, %v392_v23  ;;  %vm462_vm15 = vcmask 1031168  }
 0x1c4   : > { %401 = vst.msk [vmem:[#allocation2 + $0x6] sm:$0x1] %vm3370_vm11, %v399_v22  ;;  %vm506_vm11 = vcmask 998400  }
 0x1c6   : > { %v2757_v16 = vpop.permute.xlu0 %426  ;;  %v406_v17 = vpop.permute.xlu1 %405 }
 0x1c7   : > { %408 = vst.msk [vmem:[#allocation2 + $0x6] sm:$0x1] %vm3373_vm3, %v406_v17  ;;  %vm3220_vm3 = vcmask 850944   ;;  %v428_v22 = vrot.slane %v2757_v16, 7 }
 0x1ca   : > { %v449_v56 = vpop.permute.xlu0 %448  ;;  %v413_v57 = vpop.permute.xlu1 %412 }
 0x1cb   : > { %v450_v26 = vrot.slane %v449_v56, 1  ;;  %415 = vst.msk [vmem:[#allocation2 + $0x6] sm:$0x1] %vm3375_vm6, %v413_v57  ;;  %vm3221_vm6 = vcmask 834560  }
 0x1cd   : > { %v452_v58 = vsel %vm451_vm9, %v449_v56, %v450_v26 }
 0x1ce   : > { %v471_v61 = vpop.permute.xlu0 %470  ;;  %v460_v62 = vpop.permute.xlu1 %459  ;;  %v454_v20 = vadd.f32 %v452_v58, %v442_v59 }
 0x1cf   : > { %v472_v27 = vrot.slane %v471_v61, 1  ;;  %v461_v19 = vrot.slane %v460_v62, 1 }
 0x1d1   : > { %v463_v29 = vsel %vm462_vm15, %v460_v62, %v461_v19  ;;  %v474_v0 = vsel %vm3225_vm1, %v471_v61, %v472_v27  ;;  %vm3378_vm1 = vmand %vm2509_vm0, %vm2514_vm13  ;;  %vm3379_vm13 = vcmask 662528   ;;  %vm649_vm0 = vcmask 646144  }
 0x1d2   : > { %v465_v30 = vadd.f32 %v463_v29, %v454_v20  ;;  %v493_v32 = vpop.permute.xlu0 %492  ;;  %v482_v63 = vpop.permute.xlu1 %481 }
 0x1d3   : > { %v494_v33 = vrot.slane %v493_v32, 1  ;;  %v483_v37 = vrot.slane %v482_v63, 1 }
 0x1d4   : > { %v476_v38 = vadd.f32 %v474_v0, %v465_v30  ;;  %v975_v0 = vstv %s2786_s20  ;;  %s2824_s20 = sld [smem:[#allocation7 + $0x38]] }
 0x1d5   : > { %v485_v28 = vsel %vm484_vm2, %v482_v63, %v483_v37  ;;  %v496_v43 = vsel %vm495_vm8, %v493_v32, %v494_v33 }
 0x1d6   : > { %v487_v46 = vadd.f32 %v485_v28, %v476_v38  ;;  %v515_v21 = vpop.permute.xlu0 %514  ;;  %v504_v40 = vpop.permute.xlu1 %503 }
 0x1d7   : > { %v516_v44 = vrot.slane %v515_v21, 1  ;;  %v505_v47 = vrot.slane %v504_v40, 1 }
 0x1d8   : > { %v498_v48 = vadd.f32 %v496_v43, %v487_v46 }
 0x1d9   : > { %v507_v24 = vsel %vm506_vm11, %v504_v40, %v505_v47  ;;  %v518_v31 = vsel %vm3218_vm12, %v515_v21, %v516_v44  ;;  %vm3222_vm12 = vcmask 826368  }
 0x1da   : > { %v509_v25 = vadd.f32 %v507_v24, %v498_v48  ;;  %v537_v50 = vpop.permute.xlu0 %536  ;;  %v526_v51 = vpop.permute.xlu1 %525  ;;  %v1005_v24 = vstv %s2801_s19  ;;  %s2858_s19 = sld [smem:[#allocation7 + $0x3e]] }
 0x1db   : > { %v538_v34 = vrot.slane %v537_v50, 1  ;;  %v527_v36 = vrot.slane %v526_v51, 1 }
 0x1dc   : > { %v520_v41 = vadd.f32 %v518_v31, %v509_v25  ;;  %v995_v25 = vstv %s2804_s8  ;;  %s2831_s8 = sld [smem:[#allocation7 + $0x3b]] }
 0x1dd   : > { %v529_v42 = vsel %vm3219_vm10, %v526_v51, %v527_v36  ;;  %v540_v53 = vsel %vm3220_vm3, %v537_v50, %v538_v34  ;;  %vm3224_vm10 = vcmask 818176   ;;  %vm595_vm3 = vcmask 687104  }
 0x1de   : > { %v531_v45 = vadd.f32 %v529_v42, %v520_v41  ;;  %v548_v49 = vpop.permute.xlu0 %547  ;;  %v559_v52 = vpop.permute.xlu1 %558 }
 0x1df   : > { %v549_v35 = vrot.slane %v548_v49, 1  ;;  %v560_v54 = vrot.slane %v559_v52, 1 }
 0x1e0   : > { %v542_v55 = vadd.f32 %v540_v53, %v531_v45  ;;  %v1025_v53 = vstv %s2807_s4  ;;  %s2843_s4 = sld [smem:[#allocation7 + $0x3d]] }
 0x1e1   : > { %v551_v60 = vsel %vm3223_vm4, %v548_v49, %v549_v35  ;;  %v562_v5 = vsel %vm3221_vm6, %v559_v52, %v560_v54  ;;  %vm606_vm6 = vcmask 678912   ;;  %vm3377_vm4 = vmand %vm2499_vm7, %vm2504_vm5  ;;  %vm638_vm7 = vcmask 654336  }
 0x1e2   : > { %v553_v1 = vadd.f32 %v551_v60, %v542_v55  ;;  %v593_v39 = vpop.permute.xlu0 %592  ;;  %v570_v2 = vpop.permute.xlu1 %569  ;;  %vm3237_vm5 = vcmask 637952   ;;  %v1015_v35 = vstv %s2812_s24  ;;  %s2848_s24 = sld [smem:[#allocation7 + $0x3c]] }
 0x1e3   : > { %v571_v6 = vrot.slane %v570_v2, 1  ;;  %v594_v23 = vrot.slane %v593_v39, 1 }
 0x1e4   : > { %v564_v10 = vadd.f32 %v562_v5, %v553_v1 }
 0x1e5   : > { %v573_v13 = vsel %vm3222_vm12, %v570_v2, %v571_v6  ;;  %vm3376_vm12 = vcmask 990208   ;;  %v596_v62 = vsel %vm595_vm3, %v593_v39, %v594_v23 }
 0x1e6   : > { %v604_v14 = vpop.permute.xlu0 %603  ;;  %v581_v15 = vpop.permute.xlu1 %580  ;;  %v575_v56 = vadd.f32 %v573_v13, %v564_v10  ;;  %v429_v61 = vsel %vm3376_vm12, %v428_v22, %v2757_v16  ;;  %vm3231_vm12 = vcmask 498688  }
 0x1e7   : > { %v582_v17 = vrot.slane %v581_v15, 1  ;;  %v605_v57 = vrot.slane %v604_v14, 1 }
 0x1e9   : > { %v584_v18 = vsel %vm3224_vm10, %v581_v15, %v582_v17  ;;  %vm617_vm10 = vcmask 670720   ;;  %v607_v16 = vsel %vm606_vm6, %v604_v14, %v605_v57  ;;  %v1045_v14 = vstv %s2819_s22  ;;  %s3383_s22 = smov 106  }
 0x1ea   : > { %v586_v26 = vadd.f32 %v584_v18, %v575_v56  ;;  %v615_v58 = vpop.permute.xlu0 %614  ;;  %v420_v59 = vpop.permute.xlu1 %419  ;;  %v1035_v15 = vstv %s2824_s20  ;;  %s2863_s20 = sld [smem:[#allocation7 + $0x3f]] }
 0x1eb   : > { %v616_v27 = vrot.slane %v615_v58, 1  ;;  %422 = vst.msk [vmem:[#allocation2 + $0x6] sm:$0x1] %vm3377_vm4, %v420_v59  ;;  %vm3232_vm4 = vcmask 490496  }
 0x1ec   : > { %v598_v19 = vadd.f32 %v596_v62, %v586_v26  ;;  %431 = vst.msk [vmem:[#allocation2 + $0x6] sm:$0x3] %vm3378_vm1, %v429_v61  ;;  %vm3235_vm1 = vcmask 506880   ;;  %v1065_v62 = vstv %s2831_s8  ;;  %s2867_s8 = sld [smem:[#allocation7 + $0x40]] }
 0x1ed   : > { %v618_v29 = vsel %vm617_vm10, %v615_v58, %v616_v27 }
 0x1ee   : > { %v609_v3 = vadd.f32 %v607_v16, %v598_v19  ;;  %v636_v4 = vpop.permute.xlu0 %635  ;;  %v626_v20 = vpop.permute.xlu1 %625 }
 0x1ef   : > { %v637_v30 = vrot.slane %v636_v4, 1  ;;  %v627_v32 = vrot.slane %v626_v20, 1 }
 0x1f0   : > { %v620_v63 = vadd.f32 %v618_v29, %v609_v3 }
 0x1f1   : > { %v628_v8 = vsel %vm3379_vm13, %v626_v20, %v627_v32  ;;  %v639_v46 = vsel %vm638_vm7, %v636_v4, %v637_v30  ;;  %vm3233_vm13 = vcmask 482304  }
 0x1f2   : > { %v630_v33 = vadd.f32 %v628_v8, %v620_v63  ;;  %v658_v37 = vpop.permute.xlu0 %657  ;;  %v647_v38 = vpop.permute.xlu1 %646 }
 0x1f3   : > { %v2814_v28 = vld [vmem:[#allocation2 + $0x4] sm:$0x7]  ;;  %v659_v21 = vrot.slane %v658_v37, 1  ;;  %v648_v40 = vrot.slane %v647_v38, 1 }
 0x1f4   : > { %v641_v43 = vadd.f32 %v639_v46, %v630_v33  ;;  %v986_v44 = vmul.f32 %v985_v9, %v2814_v28  ;;  %v976_v47 = vmul.f32 %v975_v0, %v2814_v28  ;;  %v1006_v45 = vmul.f32 %v1005_v24, %v2814_v28 }
 0x1f5   : > { %v650_v48 = vsel %vm649_vm0, %v647_v38, %v648_v40  ;;  %v661_v34 = vsel %vm3237_vm5, %v658_v37, %v659_v21  ;;  %v996_v49 = vmul.f32 %v995_v25, %v2814_v28  ;;  %v1026_v6 = vmul.f32 %v1025_v53, %v2814_v28 }
 0x1f6   : > { %v652_v50 = vadd.f32 %v650_v48, %v641_v43  ;;  %v680_v51 = vpop.permute.xlu0 %679  ;;  %988 = vrot.lane.b32.xlu1 %v986_v44, %s3380_s23  ;;  %978 = vrot.lane.b32.xlu0 %v976_v47, %s3381_s15  ;;  %v669_v31 = vpop.permute.xlu1 %668  ;;  %s2836_s23 = sld [smem:[#allocation7 + $0x3a]]  ;;  %s3382_s15 = smov 125   ;;  %v1016_v10 = vmul.f32 %v1015_v35, %v2814_v28  ;;  %v1046_v58 = vmul.f32 %v1045_v14, %v2814_v28  ;;  %v1085_v9 = vstv %s2843_s4 }
 0x1f7   : > { %v681_v36 = vrot.slane %v680_v51, 1  ;;  %v670_v41 = vrot.slane %v669_v31, 1  ;;  %v1036_v59 = vmul.f32 %v1035_v15, %v2814_v28  ;;  %v1066_v32 = vmul.f32 %v1065_v62, %v2814_v28  ;;  %s2886_s4 = sld [smem:[#allocation7 + $0x42]] }
 0x1f8   : > { %v663_v42 = vadd.f32 %v661_v34, %v652_v50  ;;  %v1075_v0 = vstv %s2848_s24  ;;  %v1086_v43 = vmul.f32 %v1085_v9, %v2814_v28  ;;  %v1095_v48 = vstv %s2858_s19  ;;  %s3388_s24 = smov 102   ;;  %s2896_s19 = sld [smem:[#allocation7 + $0x44]] }
 0x1f9   : > { %v672_v52 = vsel %vm3235_vm1, %v669_v31, %v670_v41  ;;  %v683_v1 = vsel %vm3231_vm12, %v680_v51, %v681_v36  ;;  %vm3234_vm12 = vcmask 474112   ;;  %vm759_vm1 = vcmask 318464  }
 0x1fa   : > { %v674_v54 = vadd.f32 %v672_v52, %v663_v42  ;;  %v702_v55 = vpop.permute.xlu0 %701  ;;  %1008 = vrot.lane.b32.xlu1 %v1006_v45, %s3362_s26  ;;  %998 = vrot.lane.b32.xlu0 %v996_v49, %s3382_s15  ;;  %v691_v60 = vpop.permute.xlu1 %690  ;;  %v1076_v44 = vmul.f32 %v1075_v0, %v2814_v28  ;;  %s2882_s15 = sld [smem:[#allocation7 + $0x41]]  ;;  %v1096_v51 = vmul.f32 %v1095_v48, %v2814_v28  ;;  %v1106_v31 = vstv %s2863_s20  ;;  %s3389_s20 = smov 84  }
 0x1fb   : > { %v703_v39 = vrot.slane %v702_v55, 1  ;;  %v692_v2 = vrot.slane %v691_v60, 1  ;;  %v1116_v34 = vstv %s2867_s8  ;;  %s3390_s8 = smov 83  }
 0x1fc   : > { %v685_v5 = vadd.f32 %v683_v1, %v674_v54  ;;  %v1055_v27 = vstv %s2836_s23  ;;  %s3385_s23 = smov 104  }
 0x1fd   : > { %v694_v13 = vsel %vm3232_vm4, %v691_v60, %v692_v2  ;;  %v705_v56 = vsel %vm3233_vm13, %v702_v55, %v703_v39  ;;  %vm3236_vm4 = vcmask 465920   ;;  %vm737_vm13 = vcmask 457728  }
 0x1fe   : > { %v696_v22 = vadd.f32 %v694_v13, %v685_v5  ;;  %v724_v23 = vpop.permute.xlu0 %723  ;;  %1028 = vrot.lane.b32.xlu1 %v1026_v6, %s3364_s14  ;;  %1018 = vrot.lane.b32.xlu0 %v1016_v10, %s3361_s3  ;;  %v713_v17 = vpop.permute.xlu1 %712  ;;  %v1056_v63 = vmul.f32 %v1055_v27, %v2814_v28  ;;  %v1136_v2 = vstv %s2886_s4  ;;  %s2929_s4 = sld [smem:[#allocation7 + $0x49]] }
 0x1ff   : > { %v725_v57 = vrot.slane %v724_v23, 1  ;;  %v714_v18 = vrot.slane %v713_v17, 1 }
 0x200   : > { %v707_v26 = vadd.f32 %v705_v56, %v696_v22  ;;  %v1126_v1 = vstv %s2882_s15  ;;  %s2922_s15 = sld [smem:[#allocation7 + $0x48]] }
 0x201   : > { %v716_v61 = vsel %vm3234_vm12, %v713_v17, %v714_v18  ;;  %v727_v4 = vsel %vm3236_vm4, %v724_v23, %v725_v57  ;;  %vm748_vm12 = vcmask 326656   ;;  %vm3386_vm4 = vnez %v3336_v12 }
 0x202   : > { %v718_v19 = vadd.f32 %v716_v61, %v707_v26  ;;  %v746_v16 = vpop.permute.xlu0 %745  ;;  %1048 = vrot.lane.b32.xlu1 %v1046_v58, %s3305_s27  ;;  %1038 = vrot.lane.b32.xlu0 %v1036_v59, %s3383_s22  ;;  %v735_v3 = vpop.permute.xlu1 %734  ;;  %s3384_s27 = smov 103   ;;  %vm3387_vm5 = vmand %vm2532_vm14, %vm3386_vm4  ;;  %vm3238_vm14 = vcmask 310272   ;;  %s2893_s22 = sld [smem:[#allocation7 + $0x43]]  ;;  %vm3240_vm4 = vcmask 293888   ;;  %v1156_v18 = vstv %s2896_s19 }
 0x203   : > { %v747_v20 = vrot.slane %v746_v16, 1  ;;  %v736_v29 = vrot.slane %v735_v3, 1  ;;  %s2941_s19 = sld [smem:[#allocation7 + $0x4b]] }
 0x204   : > { %v729_v30 = vadd.f32 %v727_v4, %v718_v19 }
 0x205   : > { %v738_v8 = vsel %vm737_vm13, %v735_v3, %v736_v29  ;;  %v749_v46 = vsel %vm748_vm12, %v746_v16, %v747_v20 }
 0x206   : > { %v740_v33 = vadd.f32 %v738_v8, %v729_v30  ;;  %v757_v37 = vpop.permute.xlu0 %756  ;;  %1068 = vrot.lane.b32.xlu1 %v1066_v32, %s3384_s27  ;;  %1058 = vrot.lane.b32.xlu0 %v1056_v63, %s3385_s23  ;;  %v436_v38 = vpop.permute.xlu1 %435  ;;  %s2917_s27 = sld [smem:[#allocation7 + $0x47]]  ;;  %s3391_s23 = smov 82  }
 0x207   : > { %v758_v21 = vrot.slane %v757_v37, 1  ;;  %438 = vst.msk [vmem:[#allocation2 + $0x7] sm:$0x1] %vm3387_vm5, %v436_v38  ;;  %vm3239_vm5 = vcmask 302080  }
 0x208   : > { %v751_v40 = vadd.f32 %v749_v46, %v740_v33  ;;  %v1146_v56 = vstv %s2893_s22  ;;  %s3393_s22 = smov 79  }
 0x209   : > { %v760_v47 = vsel %vm759_vm1, %v757_v37, %v758_v21 }
 0x20a   : > { %v779_v24 = vpop.permute.xlu0 %778  ;;  %1088 = vrot.lane.b32.xlu1 %v1086_v43, %s2013_s30  ;;  %1078 = vrot.lane.b32.xlu0 %v1076_v44, %s3388_s24  ;;  %v768_v11 = vpop.permute.xlu1 %767  ;;  %v762_v50 = vadd.f32 %v760_v47, %v751_v40  ;;  %s2905_s30 = sld [smem:[#allocation7 + $0x45]]  ;;  %s3392_s24 = smov 80   ;;  %v1196_v40 = vstv %s2922_s15 }
 0x20b   : > { %v780_v12 = vrot.slane %v779_v24, 1  ;;  %v769_v25 = vrot.slane %v768_v11, 1  ;;  %s3397_s15 = smov 60  }
 0x20c   : > { %v1186_v46 = vstv %s2917_s27  ;;  %s3396_s27 = smov 61  }
 0x20d   : > { %v771_v36 = vsel %vm3238_vm14, %v768_v11, %v769_v25  ;;  %v782_v42 = vsel %vm3239_vm5, %v779_v24, %v780_v12  ;;  %vm3241_vm14 = vcmask 285696   ;;  %vm3242_vm5 = vcmask 277504  }
 0x20e   : > { %v2898_v41 = vld [vmem:[#allocation2 + $0x4] sm:$0xf]  ;;  %v773_v45 = vadd.f32 %v771_v36, %v762_v50  ;;  %v801_v49 = vpop.permute.xlu0 %800  ;;  %1098 = vrot.lane.b32.xlu0 %v1096_v51, %s2015_s17  ;;  %v790_v52 = vpop.permute.xlu1 %789  ;;  %s2910_s17 = sld [smem:[#allocation7 + $0x46]]  ;;  %v1206_v51 = vstv %s2929_s4 }
 0x20f   : > { %v802_v53 = vrot.slane %v801_v49, 1  ;;  %v791_v35 = vrot.slane %v790_v52, 1  ;;  %v1107_v54 = vmul.f32 %v1106_v31, %v2898_v41  ;;  %v1117_v55 = vmul.f32 %v1116_v34, %v2898_v41  ;;  %s2965_s4 = sld [smem:[#allocation7 + $0x4f]] }
 0x210   : > { %v784_v60 = vadd.f32 %v782_v42, %v773_v45  ;;  %v1127_v22 = vmul.f32 %v1126_v1, %v2898_v41  ;;  %v1137_v17 = vmul.f32 %v1136_v2, %v2898_v41  ;;  %v1147_v19 = vmul.f32 %v1146_v56, %v2898_v41 }
 0x211   : > { %v793_v39 = vsel %vm3240_vm4, %v790_v52, %v791_v35  ;;  %1109 = vrot.lane.b32.xlu1 %v1107_v54, %s3389_s20  ;;  %v804_v13 = vsel %vm3241_vm14, %v801_v49, %v802_v53  ;;  %vm3243_vm4 = vcmask 146432   ;;  %vm3244_vm14 = vcmask 138240   ;;  %s2946_s20 = sld [smem:[#allocation7 + $0x4c]] }
 0x212   : > { %v795_v5 = vadd.f32 %v793_v39, %v784_v60  ;;  %v823_v6 = vpop.permute.xlu0 %822  ;;  %1119 = vrot.lane.b32.xlu0 %v1117_v55, %s3390_s8  ;;  %v812_v10 = vpop.permute.xlu1 %811  ;;  %v1157_v3 = vmul.f32 %v1156_v18, %v2898_v41  ;;  %v1166_v4 = vstv %s2905_s30  ;;  %s3394_s30 = smov 78   ;;  %v1187_v12 = vmul.f32 %v1186_v46, %v2898_v41  ;;  %s2953_s8 = sld [smem:[#allocation7 + $0x4d]] }
 0x213   : > { %v824_v14 = vrot.slane %v823_v6, 1  ;;  %v813_v15 = vrot.slane %v812_v10, 1  ;;  %v1167_v33 = vmul.f32 %v1166_v4, %v2898_v41  ;;  %v1197_v50 = vmul.f32 %v1196_v40, %v2898_v41 }
 0x214   : > { %v806_v23 = vadd.f32 %v804_v13, %v795_v5  ;;  %v1176_v29 = vstv %s2910_s17  ;;  %s3395_s17 = smov 62   ;;  %v1207_v35 = vmul.f32 %v1206_v51, %v2898_v41  ;;  %v1226_v60 = vstv %s2941_s19  ;;  %s2975_s19 = sld [smem:[#allocation7 + $0x31]] }
 0x215   : > { %v815_v57 = vsel %vm3242_vm5, %v812_v10, %v813_v15  ;;  %1129 = vrot.lane.b32.xlu1 %v1127_v22, %s3391_s23  ;;  %v826_v61 = vsel %vm3243_vm4, %v823_v6, %v824_v14  ;;  %vm3245_vm5 = vcmask 130048   ;;  %vm3246_vm4 = vcmask 121856   ;;  %s2958_s23 = sld [smem:[#allocation7 + $0x4e]] }
 0x216   : > { %v817_v26 = vadd.f32 %v815_v57, %v806_v23  ;;  %v845_v58 = vpop.permute.xlu0 %844  ;;  %1139 = vrot.lane.b32.xlu0 %v1137_v17, %s1986_s6  ;;  %v834_v59 = vpop.permute.xlu1 %833  ;;  %s2934_s6 = sld [smem:[#allocation7 + $0x4a]]  ;;  %v1177_v38 = vmul.f32 %v1176_v29, %v2898_v41  ;;  %v1227_v15 = vmul.f32 %v1226_v60, %v2898_v41 }
 0x217   : > { %v846_v62 = vrot.slane %v845_v58, 1  ;;  %v835_v27 = vrot.slane %v834_v59, 1  ;;  %v1236_v39 = vstv %s2946_s20  ;;  %s3400_s20 = smov 57  }
 0x218   : > { %v828_v16 = vadd.f32 %v826_v61, %v817_v26  ;;  %v1237_v23 = vmul.f32 %v1236_v39, %v2898_v41  ;;  %v1246_v17 = vstv %s2953_s8  ;;  %s2991_s8 = sld [smem:[#allocation7 + $0x53]] }
 0x219   : > { %v837_v20 = vsel %vm3244_vm14, %v834_v59, %v835_v27  ;;  %1149 = vrot.lane.b32.xlu1 %v1147_v19, %s3392_s24  ;;  %v848_v8 = vsel %vm3245_vm5, %v845_v58, %v846_v62  ;;  %vm3249_vm14 = vcmask 113664   ;;  %vm3248_vm5 = vcmask 105472   ;;  %s3398_s24 = smov 59  }
 0x21a   : > { %v839_v30 = vadd.f32 %v837_v20, %v828_v16  ;;  %v867_v32 = vpop.permute.xlu0 %866  ;;  %1159 = vrot.lane.b32.xlu0 %v1157_v3, %s3393_s22  ;;  %v856_v63 = vpop.permute.xlu1 %855  ;;  %s3399_s22 = smov 58   ;;  %v1247_v27 = vmul.f32 %v1246_v17, %v2898_v41  ;;  %v1266_v3 = vstv %s2965_s4  ;;  %s1672_s4 = sld [smem:[#allocation7 + $0x55]] }
 0x21b   : > { %v868_v9 = vrot.slane %v867_v32, 1  ;;  %v857_v0 = vrot.slane %v856_v63, 1  ;;  %v1256_v57 = vstv %s2958_s23  ;;  %s3403_s23 = smov 40  }
 0x21c   : > { %v850_v37 = vadd.f32 %v848_v8, %v839_v30  ;;  %v1216_v34 = vstv %s2934_s6  ;;  %s2970_s6 = sld [smem:[#allocation7 + $0x50]]  ;;  %v1257_v16 = vmul.f32 %v1256_v57, %v2898_v41 }
 0x21d   : > { %v859_v21 = vsel %vm3246_vm4, %v856_v63, %v857_v0  ;;  %1169 = vrot.lane.b32.xlu1 %v1167_v33, %s3394_s30  ;;  %v870_v48 = vsel %vm3249_vm14, %v867_v32, %v868_v9  ;;  %vm3247_vm4 = vcmask 97280   ;;  %v1217_v55 = vmul.f32 %v1216_v34, %v2898_v41  ;;  %s2979_s30 = sld [smem:[#allocation7 + $0x51]] }
 0x21e   : > { %v861_v43 = vadd.f32 %v859_v21, %v850_v37  ;;  %v889_v44 = vpop.permute.xlu0 %888  ;;  %1179 = vrot.lane.b32.xlu0 %v1177_v38, %s3395_s17  ;;  %v878_v47 = vpop.permute.xlu1 %877  ;;  %s2984_s17 = sld [smem:[#allocation7 + $0x52]]  ;;  %vm3251_vm14 = vcmask 973824   ;;  %v971_v63 = vstv %s2975_s19  ;;  %v1267_v9 = vmul.f32 %v1266_v3, %v2898_v41 }
 0x21f   : > { %v890_v24 = vrot.slane %v889_v44, 1  ;;  %v879_v11 = vrot.slane %v878_v47, 1  ;;  %v972_v21 = vmul.f32 %v971_v63, %v2814_v28  ;;  %s1674_s19 = sld [smem:[#allocation7 + $0x57]] }
 0x220   : > { %v872_v25 = vadd.f32 %v870_v48, %v861_v43  ;;  %v1306_v48 = vstv %s2991_s8  ;;  %s1678_s8 = sld [smem:[#allocation7 + $0x5b]] }
 0x221   : > { %v881_v31 = vsel %vm3248_vm5, %v878_v47, %v879_v11  ;;  %1189 = vrot.lane.b32.xlu1 %v1187_v12, %s3396_s27  ;;  %v892_v49 = vsel %vm3247_vm4, %v889_v44, %v890_v24  ;;  %s3401_s27 = smov 56   ;;  %vm3252_vm4 = vcmask 982016   ;;  %vm3402_vm5 = vcmask 990208  }
 0x222   : > { %v883_v36 = vadd.f32 %v881_v31, %v872_v25  ;;  %v911_v42 = vpop.permute.xlu0 %910  ;;  %1199 = vrot.lane.b32.xlu0 %v1197_v50, %s3397_s15  ;;  %v901_v45 = vpop.permute.xlu1 %900  ;;  %v1276_v20 = vstv %s2970_s6  ;;  %s1671_s15 = sld [smem:[#allocation7 + $0x54]]  ;;  %s3405_s6 = smov 38   ;;  %v1307_v11 = vmul.f32 %v1306_v48, %v2898_v41  ;;  %v1326_v12 = vstv %s1672_s4 }
 0x223   : > { %v912_v52 = vrot.slane %v911_v42, 1  ;;  %v902_v53 = vrot.slane %v901_v45, 1  ;;  %v1277_v33 = vmul.f32 %v1276_v20, %v2898_v41  ;;  %v1286_v37 = vstv %s2979_s30  ;;  %s3407_s30 = smov 36   ;;  %s3412_s4 = smov 15  }
 0x224   : > { %v894_v54 = vadd.f32 %v892_v49, %v883_v36  ;;  %v1296_v46 = vstv %s2984_s17  ;;  %v1287_v43 = vmul.f32 %v1286_v37, %v2898_v41  ;;  %s1676_s17 = sld [smem:[#allocation7 + $0x59]]  ;;  %v1327_v50 = vmul.f32 %v1326_v12, %v2898_v41 }
 0x225   : > { %v903_v1 = vsel %vm484_vm2, %v901_v45, %v902_v53  ;;  %1209 = vrot.lane.b32.xlu1 %v1207_v35, %s3398_s24  ;;  %v913_v10 = vsel %vm495_vm8, %v911_v42, %v912_v52  ;;  %s3404_s24 = smov 39   ;;  %v1297_v47 = vmul.f32 %v1296_v46, %v2898_v41  ;;  %v1346_v31 = vstv %s1674_s19  ;;  %v1386_v35 = vld [vmem:[#allocation2 + $0x5] sm:$0x7]  ;;  %s1682_s19 = sld [smem:[#allocation7 + $0x5f]] }
 0x226   : > { %v905_v2 = vadd.f32 %v903_v1, %v894_v54  ;;  %v931_v5 = vpop.permute.xlu0 %930  ;;  %1219 = vrot.lane.b32.xlu0 %v1217_v55, %s3399_s22  ;;  %v921_v6 = vpop.permute.xlu1 %920  ;;  %s1673_s22 = sld [smem:[#allocation7 + $0x56]]  ;;  %v1347_v36 = vmul.f32 %v1346_v31, %v2898_v41  ;;  %v1387_v54 = vstv %s1678_s8  ;;  %s3417_s8 = smov 119  }
 0x227   : > { %v932_v13 = vrot.slane %v931_v5, 1  ;;  %v922_v14 = vrot.slane %v921_v6, 1  ;;  %v1388_v60 = vmul.f32 %v1387_v54, %v1386_v35 }
 0x228   : > { %v915_v22 = vadd.f32 %v913_v10, %v905_v2  ;;  %v1316_v24 = vstv %s1671_s15  ;;  %s3410_s15 = smov 17  }
 0x229   : > { %v923_v56 = vsel %vm506_vm11, %v921_v6, %v922_v14  ;;  %1229 = vrot.lane.b32.xlu1 %v1227_v15, %s3400_s20  ;;  %v933_v59 = vsel %vm3402_vm5, %v931_v5, %v932_v13  ;;  %vm3250_vm5 = vcmask 965632   ;;  %s3406_s20 = smov 37   ;;  %v1317_v28 = vmul.f32 %v1316_v24, %v2898_v41 }
 0x22a   : > { %v925_v18 = vadd.f32 %v923_v56, %v915_v22  ;;  %v952_v26 = vpop.permute.xlu0 %951  ;;  %1239 = vrot.lane.b32.xlu0 %v1237_v23, %s3401_s27  ;;  %v941_v58 = vpop.permute.xlu1 %940  ;;  %s1675_s27 = sld [smem:[#allocation7 + $0x58]]  ;;  %v1366_v45 = vstv %s1676_s17 }
 0x22b   : > { %v953_v61 = vrot.slane %v952_v26, 1  ;;  %v942_v62 = vrot.slane %v941_v58, 1  ;;  %v1367_v52 = vmul.f32 %v1366_v45, %v2898_v41  ;;  %s1684_s17 = sld [smem:[#allocation7 + $0x61]]  ;;  %v1427_v6 = vstv %s1682_s19 }
 0x22c   : > { %v935_v19 = vadd.f32 %v933_v59, %v925_v18  ;;  %v1336_v25 = vstv %s1673_s22  ;;  %s1681_s22 = sld [smem:[#allocation7 + $0x5e]]  ;;  %v1428_v13 = vmul.f32 %v1427_v6, %v1386_v35 }
 0x22d   : > { %v944_v4 = vsel %vm3252_vm4, %v941_v58, %v942_v62  ;;  %1249 = vrot.lane.b32.xlu1 %v1247_v27, %s3403_s23  ;;  %v955_v32 = vsel %vm3251_vm14, %v952_v26, %v953_v61  ;;  %s3408_s23 = smov 35   ;;  %v1337_v51 = vmul.f32 %v1336_v25, %v2898_v41  ;;  %vm3423_vm14 = vcmask 842752  }
 0x22e   : > { %v946_v29 = vadd.f32 %v944_v4, %v935_v19  ;;  %1259 = vrot.lane.b32.xlu0 %v1257_v16, %s3404_s24  ;;  %v963_v30 = vpop.permute.xlu1 %962  ;;  %s1677_s24 = sld [smem:[#allocation7 + $0x5a]]  ;;  %vm3424_vm4 = vcmask 834560  }
 0x22f   : > { %v964_v8 = vrot.slane %v963_v30, 1 }
 0x230   : > { %v957_v0 = vadd.f32 %v955_v32, %v946_v29  ;;  %v1356_v34 = vstv %s1675_s27  ;;  %s3414_s27 = smov 13  }
 0x231   : > { %v966_v38 = vsel %vm3250_vm5, %v963_v30, %v964_v8  ;;  %1269 = vrot.lane.b32.xlu1 %v1267_v9, %s3405_s6  ;;  %s3409_s6 = smov 18   ;;  %v1357_v42 = vmul.f32 %v1356_v34, %v2898_v41  ;;  %v1447_v15 = vstv %s1684_s17  ;;  %vm3419_vm5 = vcmask 1022976  }
 0x232   : > { %v968_v40 = vadd.f32 %v966_v38, %v957_v0  ;;  %1279 = vrot.lane.b32.xlu0 %v1277_v33, %s3406_s20  ;;  %s1679_s20 = sld [smem:[#allocation7 + $0x5c]]  ;;  %v1417_v2 = vstv %s1681_s22  ;;  %v1448_v22 = vmul.f32 %v1447_v15, %v1386_v35  ;;  %s2041_s22 = smov [#allocation8]  }
 0x234   : > { %v3008_v44 = vadd.f32 %v972_v21, %v968_v40  ;;  %v1376_v49 = vstv %s1677_s24  ;;  %s3416_s24 = smov 120  }
 0x235   : > { %1289 = vrot.lane.b32.xlu1 %v1287_v43, %s3407_s30  ;;  %s3411_s30 = smov 16   ;;  %v1377_v53 = vmul.f32 %v1376_v49, %v2898_v41  ;;  %v1418_v41 = vmul.f32 %v1417_v2, %v1386_v35 }
 0x236   : > { %1299 = vrot.lane.b32.xlu0 %v1297_v47, %s3408_s23  ;;  %s3413_s23 = smov 14  }
 0x238   : > { %v1397_v55 = vstv %s1679_s20 }
 0x239   : > { %1309 = vrot.lane.b32.xlu1 %v1307_v11, %s2033_s18  ;;  %s1680_s18 = sld [smem:[#allocation7 + $0x5d]]  ;;  %v1398_v1 = vmul.f32 %v1397_v55, %v1386_v35 }
 0x23a   : > { %1319 = vrot.lane.b32.xlu0 %v1317_v28, %s3409_s6  ;;  %s1683_s6 = sld [smem:[#allocation7 + $0x60]] }
 0x23d   : > { %1329 = vrot.lane.b32.xlu1 %v1327_v50, %s3410_s15  ;;  %s3415_s15 = smov 12  }
 0x23e   : > { %1339 = vrot.lane.b32.xlu0 %v1337_v51, %s3411_s30 }
 0x23f   : > { %v1407_v39 = vstv %s1680_s18  ;;  %s1466_s18 = scalar_lea.sflag [#allocation5], %s2176_s5 }
 0x240   : > { %v1408_v5 = vmul.f32 %v1407_v39, %v1386_v35  ;;  %v1437_v10 = vstv %s1683_s6 }
 0x241   : > { %1349 = vrot.lane.b32.xlu1 %v1347_v36, %s3412_s4  ;;  %v1438_v14 = vmul.f32 %v1437_v10, %v1386_v35 }
 0x242   : > { %1359 = vrot.lane.b32.xlu0 %v1357_v42, %s3413_s23  ;;  %s1887_s23 = sshll.u32 %s2041_s22, 4  ;;  %s1888_s23 = int_to_ptr.vmem [resolvable:$false] %s1887_s23 }
 0x245   : > { %1369 = vrot.lane.b32.xlu1 %v1367_v52, %s3414_s27 }
 0x246   : > { %1379 = vrot.lane.b32.xlu0 %v1377_v53, %s3415_s15 }
 0x249   : > { %1390 = vrot.lane.b32.xlu1 %v1388_v60, %s3362_s26  ;;  %s3418_s26 = smov 118  }
 0x24a   : > { %1400 = vrot.lane.b32.xlu0 %v1398_v1, %s3361_s3  ;;  %s1692_s3 = smul.u32 48, %s2078_s13  ;;  %s1889_s13 = scalar_lea.vmem %s1888_s23, 96 }
 0x24c   : > { %s3092_s30 = scalar_lea.hbm %s3132_s2, %s1692_s3 }
 0x24d   : > { %1410 = vrot.lane.b32.xlu1 %v1408_v5, %s3364_s14 }
 0x24e   : > { %1420 = vrot.lane.b32.xlu0 %v1418_v41, %s3363_s25  ;;  %s1480_s25 = sshll.u32 %s2192_s7, 4  ;;  %s1481_s25 = int_to_ptr.vmem [resolvable:$true] %s1480_s25 }
 0x24f   : > { %s1883_s4 = scalar_lea.vmem %s1481_s25, 48  ;;  %p1890_p1 = scmp.lt.s32.totalorder %s1481_s25, %s1888_s23 }
 0x250   : > { %p1884_p11 = scmp.ne.s32.totalorder %s1481_s25, %s1883_s4  ;;  %p1891_p0 = scmp.lt.s32.totalorder %s1889_s13, %s1883_s4 }
 0x251   : > { %1430 = vrot.lane.b32.xlu1 %v1428_v13, %s3416_s24 }
 0x252   : > { %1440 = vrot.lane.b32.xlu0 %v1438_v14, %s3417_s8  ;;  %p1885_p10 = pnand %p1884_p11, %p3451_p13  ;;  %p1892_p3 = por %p1891_p0, %p1890_p1 }
 0x254   : > { %p1886_p2 = pneg %p1885_p10 }
 0x255   : > { %1450 = vrot.lane.b32.xlu1 %v1448_v22, %s3418_s26 }
 0x256   : > { %p1893_p12 = pnand %p1892_p3, %p1886_p2 }
 0x268   : > { %v979_v23 = vpop.permute.xlu0 %978  ;;  %v989_v17 = vpop.permute.xlu1 %988 }
 0x269   : > { %v980_v56 = vrot.slane %v979_v23, 1  ;;  %v990_v57 = vrot.slane %v989_v17, 1 }
 0x26b   : > { %v981_v18 = vsel %vm451_vm9, %v979_v23, %v980_v56  ;;  %v991_v61 = vsel %vm462_vm15, %v989_v17, %v990_v57  ;;  %vm3420_vm9 = vcmask 867328   ;;  %vm3421_vm15 = vcmask 859136  }
 0x26c   : > { %v983_v26 = vadd.f32 %v981_v18, %v3008_v44  ;;  %v999_v58 = vpop.permute.xlu0 %998  ;;  %v1009_v59 = vpop.permute.xlu1 %1008 }
 0x26d   : > { %v1000_v62 = vrot.slane %v999_v58, 1  ;;  %v1010_v27 = vrot.slane %v1009_v59, 1 }
 0x26e   : > { %v993_v19 = vadd.f32 %v991_v61, %v983_v26 }
 0x26f   : > { %v1001_v16 = vsel %vm3419_vm5, %v999_v58, %v1000_v62  ;;  %v1011_v29 = vsel %vm484_vm2, %v1009_v59, %v1010_v27  ;;  %vm3422_vm5 = vcmask 850944  }
 0x270   : > { %v1003_v3 = vadd.f32 %v1001_v16, %v993_v19  ;;  %v1019_v4 = vpop.permute.xlu0 %1018  ;;  %v1029_v20 = vpop.permute.xlu1 %1028 }
 0x271   : > { %v1020_v30 = vrot.slane %v1019_v4, 1  ;;  %v1030_v32 = vrot.slane %v1029_v20, 1 }
 0x272   : > { %v1013_v63 = vadd.f32 %v1011_v29, %v1003_v3 }
 0x273   : > { %v1021_v8 = vsel %vm495_vm8, %v1019_v4, %v1020_v30  ;;  %v1031_v37 = vsel %vm506_vm11, %v1029_v20, %v1030_v32 }
 0x274   : > { %v1023_v9 = vadd.f32 %v1021_v8, %v1013_v63  ;;  %v1039_v0 = vpop.permute.xlu0 %1038  ;;  %v1049_v33 = vpop.permute.xlu1 %1048 }
 0x275   : > { %v1040_v38 = vrot.slane %v1039_v0, 1  ;;  %v1050_v46 = vrot.slane %v1049_v33, 1 }
 0x276   : > { %v1033_v21 = vadd.f32 %v1031_v37, %v1023_v9 }
 0x277   : > { %v1041_v40 = vsel %vm3420_vm9, %v1039_v0, %v1040_v38  ;;  %v1051_v48 = vsel %vm3421_vm15, %v1049_v33, %v1050_v46  ;;  %vm3425_vm9 = vcmask 826368   ;;  %vm3426_vm15 = vcmask 818176  }
 0x278   : > { %v1043_v43 = vadd.f32 %v1041_v40, %v1033_v21  ;;  %v1059_v44 = vpop.permute.xlu0 %1058  ;;  %v1069_v47 = vpop.permute.xlu1 %1068 }
 0x279   : > { %v1060_v24 = vrot.slane %v1059_v44, 1  ;;  %v1070_v11 = vrot.slane %v1069_v47, 1 }
 0x27a   : > { %v1053_v28 = vadd.f32 %v1051_v48, %v1043_v43 }
 0x27b   : > { %v1061_v12 = vsel %vm3422_vm5, %v1059_v44, %v1060_v24  ;;  %v1071_v31 = vsel %vm3423_vm14, %v1069_v47, %v1070_v11  ;;  %vm3427_vm14 = vcmask 662528   ;;  %vm3434_vm5 = vcmask 465920  }
 0x27c   : > { %v1063_v25 = vadd.f32 %v1061_v12, %v1053_v28  ;;  %v1079_v50 = vpop.permute.xlu0 %1078  ;;  %v1089_v51 = vpop.permute.xlu1 %1088 }
 0x27d   : > { %v1080_v34 = vrot.slane %v1079_v50, 1  ;;  %v1090_v36 = vrot.slane %v1089_v51, 1 }
 0x27e   : > { %v1073_v42 = vadd.f32 %v1071_v31, %v1063_v25 }
 0x27f   : > { %v1081_v45 = vsel %vm3424_vm4, %v1079_v50, %v1080_v34  ;;  %v1091_v53 = vsel %vm3425_vm9, %v1089_v51, %v1090_v36  ;;  %vm3433_vm4 = vcmask 474112   ;;  %vm3435_vm9 = vcmask 310272  }
 0x280   : > { %v1083_v49 = vadd.f32 %v1081_v45, %v1073_v42  ;;  %v1099_v52 = vpop.permute.xlu0 %1098 }
 0x281   : > { %v1100_v35 = vrot.slane %v1099_v52, 1 }
 0x282   : > { %v1093_v54 = vadd.f32 %v1091_v53, %v1083_v49 }
 0x283   : > { %v1101_v55 = vsel %vm3426_vm15, %v1099_v52, %v1100_v35  ;;  %v1110_v60 = vpop.permute.xlu1 %1109  ;;  %vm3436_vm15 = vcmask 302080  }
 0x284   : > { %v1103_v1 = vadd.f32 %v1101_v55, %v1093_v54  ;;  %v1111_v39 = vrot.slane %v1110_v60, 1  ;;  %v1120_v2 = vpop.permute.xlu0 %1119 }
 0x285   : > { %v1121_v5 = vrot.slane %v1120_v2, 1 }
 0x286   : > { %v1112_v41 = vsel %vm595_vm3, %v1110_v60, %v1111_v39  ;;  %vm3428_vm3 = vcmask 637952  }
 0x287   : > { %v1114_v6 = vadd.f32 %v1112_v41, %v1103_v1  ;;  %v1122_v10 = vsel %vm606_vm6, %v1120_v2, %v1121_v5  ;;  %v1130_v13 = vpop.permute.xlu1 %1129  ;;  %vm3430_vm6 = vcmask 498688  }
 0x288   : > { %v1131_v14 = vrot.slane %v1130_v13, 1  ;;  %v1140_v15 = vpop.permute.xlu0 %1139 }
 0x289   : > { %v1124_v22 = vadd.f32 %v1122_v10, %v1114_v6  ;;  %v1141_v23 = vrot.slane %v1140_v15, 1 }
 0x28a   : > { %v1132_v17 = vsel %vm617_vm10, %v1130_v13, %v1131_v14  ;;  %vm3429_vm10 = vcmask 506880  }
 0x28b   : > { %v1134_v56 = vadd.f32 %v1132_v17, %v1124_v22  ;;  %v1142_v57 = vsel %vm3427_vm14, %v1140_v15, %v1141_v23  ;;  %v1150_v18 = vpop.permute.xlu1 %1149  ;;  %vm3440_vm14 = vcmask 146432  }
 0x28c   : > { %v1151_v26 = vrot.slane %v1150_v18, 1  ;;  %v1160_v58 = vpop.permute.xlu0 %1159 }
 0x28d   : > { %v1144_v59 = vadd.f32 %v1142_v57, %v1134_v56  ;;  %v1161_v61 = vrot.slane %v1160_v58, 1 }
 0x28e   : > { %v1152_v62 = vsel %vm638_vm7, %v1150_v18, %v1151_v26  ;;  %vm3431_vm7 = vcmask 490496  }
 0x28f   : > { %v1154_v27 = vadd.f32 %v1152_v62, %v1144_v59  ;;  %v1162_v19 = vsel %vm649_vm0, %v1160_v58, %v1161_v61  ;;  %v1170_v16 = vpop.permute.xlu1 %1169  ;;  %vm3432_vm0 = vcmask 482304  }
 0x290   : > { %v1171_v3 = vrot.slane %v1170_v16, 1  ;;  %v1180_v4 = vpop.permute.xlu0 %1179 }
 0x291   : > { %v1164_v20 = vadd.f32 %v1162_v19, %v1154_v27  ;;  %v1181_v29 = vrot.slane %v1180_v4, 1 }
 0x292   : > { %v1172_v30 = vsel %vm3428_vm3, %v1170_v16, %v1171_v3  ;;  %vm3441_vm3 = vcmask 138240  }
 0x293   : > { %v1174_v32 = vadd.f32 %v1172_v30, %v1164_v20  ;;  %v1182_v63 = vsel %vm3429_vm10, %v1180_v4, %v1181_v29  ;;  %v1190_v8 = vpop.permute.xlu1 %1189  ;;  %vm3442_vm10 = vcmask 130048  }
 0x294   : > { %v1191_v9 = vrot.slane %v1190_v8, 1  ;;  %v1200_v0 = vpop.permute.xlu0 %1199 }
 0x295   : > { %v1184_v33 = vadd.f32 %v1182_v63, %v1174_v32  ;;  %v1201_v37 = vrot.slane %v1200_v0, 1 }
 0x296   : > { %v1192_v38 = vsel %vm3430_vm6, %v1190_v8, %v1191_v9  ;;  %vm3443_vm6 = vcmask 121856  }
 0x297   : > { %v1194_v46 = vadd.f32 %v1192_v38, %v1184_v33  ;;  %v1202_v21 = vsel %vm3431_vm7, %v1200_v0, %v1201_v37  ;;  %v1210_v40 = vpop.permute.xlu1 %1209  ;;  %vm3444_vm7 = vcmask 113664  }
 0x298   : > { %v1211_v43 = vrot.slane %v1210_v40, 1  ;;  %v1220_v44 = vpop.permute.xlu0 %1219 }
 0x299   : > { %v1204_v47 = vadd.f32 %v1202_v21, %v1194_v46  ;;  %v1221_v48 = vrot.slane %v1220_v44, 1 }
 0x29a   : > { %v1212_v24 = vsel %vm3432_vm0, %v1210_v40, %v1211_v43  ;;  %vm3445_vm0 = vcmask 105472  }
 0x29b   : > { %v1214_v11 = vadd.f32 %v1212_v24, %v1204_v47  ;;  %v1222_v28 = vsel %vm3433_vm4, %v1220_v44, %v1221_v48  ;;  %v1230_v12 = vpop.permute.xlu1 %1229  ;;  %vm3446_vm4 = vcmask 97280  }
 0x29c   : > { %v1231_v25 = vrot.slane %v1230_v12, 1  ;;  %v1240_v50 = vpop.permute.xlu0 %1239 }
 0x29d   : > { %v1224_v51 = vadd.f32 %v1222_v28, %v1214_v11  ;;  %v1241_v31 = vrot.slane %v1240_v50, 1 }
 0x29e   : > { %v1232_v34 = vsel %vm3434_vm5, %v1230_v12, %v1231_v25  ;;  %vm3447_vm5 = vcmask 990208  }
 0x29f   : > { %v1234_v36 = vadd.f32 %v1232_v34, %v1224_v51  ;;  %v1242_v42 = vsel %vm737_vm13, %v1240_v50, %v1241_v31  ;;  %v1250_v45 = vpop.permute.xlu1 %1249  ;;  %vm3437_vm13 = vcmask 293888  }
 0x2a0   : > { %v1251_v49 = vrot.slane %v1250_v45, 1  ;;  %v1260_v52 = vpop.permute.xlu0 %1259 }
 0x2a1   : > { %v1244_v53 = vadd.f32 %v1242_v42, %v1234_v36  ;;  %v1261_v35 = vrot.slane %v1260_v52, 1 }
 0x2a2   : > { %v1252_v54 = vsel %vm748_vm12, %v1250_v45, %v1251_v49  ;;  %vm3438_vm12 = vcmask 285696  }
 0x2a3   : > { %v1254_v55 = vadd.f32 %v1252_v54, %v1244_v53  ;;  %v1262_v60 = vsel %vm759_vm1, %v1260_v52, %v1261_v35  ;;  %v1270_v1 = vpop.permute.xlu1 %1269  ;;  %vm3439_vm1 = vcmask 277504  }
 0x2a4   : > { %v1271_v39 = vrot.slane %v1270_v1, 1  ;;  %v1280_v2 = vpop.permute.xlu0 %1279 }
 0x2a5   : > { %v1264_v5 = vadd.f32 %v1262_v60, %v1254_v55  ;;  %v1281_v41 = vrot.slane %v1280_v2, 1 }
 0x2a6   : > { %v1272_v6 = vsel %vm3435_vm9, %v1270_v1, %v1271_v39  ;;  %vm1462_vm9 = vcmp.lt.s32.totalorder %v195_v7, 352 }
 0x2a7   : > { %v1274_v10 = vadd.f32 %v1272_v6, %v1264_v5  ;;  %v1282_v13 = vsel %vm3436_vm15, %v1280_v2, %v1281_v41  ;;  %v1290_v14 = vpop.permute.xlu1 %1289 }
 0x2a8   : > { %v1291_v15 = vrot.slane %v1290_v14, 1  ;;  %v1300_v22 = vpop.permute.xlu0 %1299 }
 0x2a9   : > { %v1284_v23 = vadd.f32 %v1282_v13, %v1274_v10  ;;  %v1301_v17 = vrot.slane %v1300_v22, 1 }
 0x2aa   : > { %v1292_v56 = vsel %vm3437_vm13, %v1290_v14, %v1291_v15 }
 0x2ab   : > { %v1294_v57 = vadd.f32 %v1292_v56, %v1284_v23  ;;  %v1302_v18 = vsel %vm3438_vm12, %v1300_v22, %v1301_v17  ;;  %v1310_v26 = vpop.permute.xlu1 %1309 }
 0x2ac   : > { %v1311_v58 = vrot.slane %v1310_v26, 1  ;;  %v1320_v59 = vpop.permute.xlu0 %1319 }
 0x2ad   : > { %v1304_v61 = vadd.f32 %v1302_v18, %v1294_v57  ;;  %v1321_v62 = vrot.slane %v1320_v59, 1 }
 0x2ae   : > { %v1312_v27 = vsel %vm3439_vm1, %v1310_v26, %v1311_v58 }
 0x2af   : > { %v1314_v19 = vadd.f32 %v1312_v27, %v1304_v61  ;;  %v1322_v16 = vsel %vm3440_vm14, %v1320_v59, %v1321_v62  ;;  %v1330_v3 = vpop.permute.xlu1 %1329 }
 0x2b0   : > { %v1331_v4 = vrot.slane %v1330_v3, 1  ;;  %v1340_v20 = vpop.permute.xlu0 %1339 }
 0x2b1   : > { %v1324_v29 = vadd.f32 %v1322_v16, %v1314_v19  ;;  %v1341_v30 = vrot.slane %v1340_v20, 1 }
 0x2b2   : > { %v1332_v32 = vsel %vm3441_vm3, %v1330_v3, %v1331_v4 }
 0x2b3   : > { %v1334_v63 = vadd.f32 %v1332_v32, %v1324_v29  ;;  %v1342_v8 = vsel %vm3442_vm10, %v1340_v20, %v1341_v30  ;;  %v1350_v9 = vpop.permute.xlu1 %1349 }
 0x2b4   : > { %v1351_v0 = vrot.slane %v1350_v9, 1  ;;  %v1360_v33 = vpop.permute.xlu0 %1359 }
 0x2b5   : > { %v1344_v37 = vadd.f32 %v1342_v8, %v1334_v63  ;;  %v1361_v38 = vrot.slane %v1360_v33, 1 }
 0x2b6   : > { %v1352_v46 = vsel %vm3443_vm6, %v1350_v9, %v1351_v0 }
 0x2b7   : > { %v1354_v21 = vadd.f32 %v1352_v46, %v1344_v37  ;;  %v1362_v40 = vsel %vm3444_vm7, %v1360_v33, %v1361_v38  ;;  %v1370_v43 = vpop.permute.xlu1 %1369 }
 0x2b8   : > { %v1371_v44 = vrot.slane %v1370_v43, 1  ;;  %v1380_v47 = vpop.permute.xlu0 %1379 }
 0x2b9   : > { %v1364_v48 = vadd.f32 %v1362_v40, %v1354_v21  ;;  %v1381_v24 = vrot.slane %v1380_v47, 1 }
 0x2ba   : > { %v1372_v11 = vsel %vm3445_vm0, %v1370_v43, %v1371_v44 }
 0x2bb   : > { %v1374_v28 = vadd.f32 %v1372_v11, %v1364_v48  ;;  %v1382_v12 = vsel %vm3446_vm4, %v1380_v47, %v1381_v24  ;;  %v1391_v25 = vpop.permute.xlu1 %1390 }
 0x2bc   : > { %v1392_v50 = vrot.slane %v1391_v25, 1  ;;  %v1401_v51 = vpop.permute.xlu0 %1400 }
 0x2bd   : > { %v1384_v31 = vadd.f32 %v1382_v12, %v1374_v28  ;;  %v1402_v34 = vrot.slane %v1401_v51, 1 }
 0x2be   : > { %v1393_v36 = vsel %vm484_vm2, %v1391_v25, %v1392_v50  ;;  %vm3448_vm2 = vcmask 982016  }
 0x2bf   : > { %v1395_v42 = vadd.f32 %v1393_v36, %v1384_v31  ;;  %v1403_v45 = vsel %vm495_vm8, %v1401_v51, %v1402_v34  ;;  %v1411_v49 = vpop.permute.xlu1 %1410  ;;  %vm3449_vm8 = vcmask 973824  }
 0x2c0   : > { %v1412_v52 = vrot.slane %v1411_v49, 1  ;;  %v1421_v53 = vpop.permute.xlu0 %1420 }
 0x2c1   : > { %v1405_v35 = vadd.f32 %v1403_v45, %v1395_v42  ;;  %v1422_v54 = vrot.slane %v1421_v53, 1 }
 0x2c2   : > { %v1413_v55 = vsel %vm506_vm11, %v1411_v49, %v1412_v52  ;;  %vm3450_vm11 = vcmask 965632  }
 0x2c3   : > { %v1415_v60 = vadd.f32 %v1413_v55, %v1405_v35  ;;  %v1423_v1 = vsel %vm3447_vm5, %v1421_v53, %v1422_v54  ;;  %v1431_v39 = vpop.permute.xlu1 %1430 }
 0x2c4   : > { %v1432_v2 = vrot.slane %v1431_v39, 1  ;;  %v1441_v5 = vpop.permute.xlu0 %1440 }
 0x2c5   : > { %v1425_v41 = vadd.f32 %v1423_v1, %v1415_v60  ;;  %v1442_v6 = vrot.slane %v1441_v5, 1 }
 0x2c6   : > { %v1433_v10 = vsel %vm3448_vm2, %v1431_v39, %v1432_v2 }
 0x2c7   : > { %v1435_v13 = vadd.f32 %v1433_v10, %v1425_v41  ;;  %v1443_v14 = vsel %vm3449_vm8, %v1441_v5, %v1442_v6  ;;  %v1451_v15 = vpop.permute.xlu1 %1450 }
 0x2c8   : > { %v1452_v22 = vrot.slane %v1451_v15, 1 }
 0x2c9   : > { %v1445_v23 = vadd.f32 %v1443_v14, %v1435_v13 }
 0x2ca   : > { %v1453_v17 = vsel %vm3450_vm11, %v1451_v15, %v1452_v22 }
 0x2cb   : > { %v1455_v56 = vadd.f32 %v1453_v17, %v1445_v23 }
 0x2cd   : > { %v1685_v57 = vmul.f32 -1.442695, %v1455_v56 }
 0x2cf   : > { %1836 = vpow2.f32 %v1685_v57 }
 0x2dc   : > { %v1837_v18 = vpop.eup %1836 }
 0x2dd   : > { %v1459_v26 = vadd.f32 1.0, %v1837_v18 }
 0x2df   : > { %1838 = vrcp.f32 %v1459_v26 }
 0x2ec   : > { %v1839_v58 = vpop.eup %1838 }
 0x2ed   : > { %1464 = vst.msk [vmem:[%s2192_s7] sm:$0x7] %vm1462_vm9, %v1839_v58 }
 0x2ee   : > { %1896 = shalt.err (!%p1893_p12)
}
 0x2ef   : > { %s1897_s7 = scalar_lea.hbm %s3092_s30, 48  ;;  %s1901_s27 = scalar_lea.hbm %s3132_s2, 96 }
 0x2f0   : > { %p1898_p5 = scmp.ne.s32.totalorder %s3092_s30, %s1897_s7  ;;  %p1902_p4 = scmp.lt.s32.totalorder %s3092_s30, %s3132_s2 }
 0x2f1   : > { %p1903_p8 = scmp.lt.s32.totalorder %s1901_s27, %s1897_s7 }
 0x2f2   : > { %p1899_p7 = pnand %p1898_p5, %p3451_p13 }
 0x2f3   : > { %p1904_p9 = por %p1903_p8, %p1902_p4 }
 0x2f4   : > { %p1900_p6 = pneg %p1899_p7 }
 0x2f6   : > { %p1905_p11 = pnand %p1904_p9, %p1900_p6 }
 0x2f8   : > { %1908 = shalt.err (!%p1905_p11)
}
 0x2f9   : > { %1699 = dma.vmem_to_hbm [thread:$0]  (%p3451_p13), %s1481_s25, 48, %s3092_s30, %s1466_s18  }
 0x2fa PF: > { %s1492_s17 = sand.u32 1, %s1951_s9   ;;  %p3452_p10 = scmp.ne.s32.totalorder %s3254_s16, 0 }
 0x2fb   : > { %p3453_p2 = scmp.ge.s32.totalorder %s1963_s12, 2  ;;  %s1493_s24 = scalar_lea.sflag [#allocation5], %s1492_s17 }
 0x2fd   : > { %p1710_p1 = pnand %p3453_p2, %p3452_p10 }
 0x2ff   : > { %p1711_p0 = pneg %p1710_p1 }
 0x301   : > { %1946 = dma.done.wait (%p1711_p0), %s1493_s24, 48  }
 0x302   : > { %1948 = vsyncadd (%p1711_p0), %s1493_s24, 4294967248  ;;  %p16_p3 = scmp.ge.s32.totalorder %s2108_s21, 4   ;;  %s3454_s9 = smov %s1955_s10 }
 0x303   : > { %s3455_s10 = smov %s1959_s11  ;;  %s3456_s11 = smov %s2132_s28 }
 0x304   : > { %s3457_s12 = smov %s2108_s21  ;;  %18 = sbr.rel (!%p16_p3) target bundleno = 6 (0x6), region = 98 }
 0x309   :  { %1498 = vsyncpa [#allocation4], 1 }
 0x30a   :  { %1500 = vsyncpa [#allocation4 + $0x1], 1 }
 0x30b   :  { %1501 = vsyncpa [#allocation5], 1 }
 0x30c   :  { %1503 = vsyncpa [#allocation5 + $0x1], 1 }
 0x30d   :  { %1504 = vsyncpa [#allocation6], 1 }
 0x30e   :  { %1506 = vsyncpa [#allocation6 + $0x1], 1 }

</bundles_post_ra>
